<compile_context>
chip_gen: v7x
topology: tpu7x:2x2x1
jax: 0.10.0
libtpu: 0.0.40
codegen_flags: <defaults>
</compile_context>

<pallas_src>
import functools

import jax
import jax.numpy as jnp
from jax.experimental import pallas as pl
from jax.experimental.pallas import tpu as pltpu


def _conv_out(n):
    return (n - 3) // 2 + 1


def _matmul_bias_relu(patches, w_ref, b_ref):
    acc = jnp.dot(patches, w_ref[...], preferred_element_type=jnp.float32)
    return jnp.maximum(acc + b_ref[...], 0.0)


# ----------------------------------------------------------------------------
# Fused encoder kernel (one batch element per grid step).
#
#   p1_ref             : (OH1*OW1, 9*4)  layer-1 im2col patches (lane-dense)
#   wX_ref             : (9*Cin, Cout)   pre-flattened weight, (ki,kj,cin) order
#   bX_ref             : (1, Cout)
#   o_ref              : (OH4*OW4, 256)  final activation (channels-last)
#   y1/y2/y3 (scratch) : per-layer activations, flattened (OH*OW, Cout)
#
# geom: static tuple of (input_width, out_h, out_w) for layers 2..4.
# ----------------------------------------------------------------------------
def _encoder_kernel(p1_ref, w1_ref, b1_ref, w2_ref, b2_ref, w3_ref, b3_ref,
                    w4_ref, b4_ref, o_ref, y1_ref, y2_ref, y3_ref, *, geom):
    # Layer 1: patches were prepared by the wrapper (pure layout plumbing on a
    # 17 KiB input), so this layer is a single MXU matmul + bias + ReLU.
    y1_ref[...] = _matmul_bias_relu(p1_ref[...], w1_ref, b1_ref)

    srcs = (y1_ref, y2_ref, y3_ref)
    dsts = (y2_ref, y3_ref, o_ref)
    ws = (w2_ref, w3_ref, w4_ref)
    bs = (b2_ref, b3_ref, b4_ref)

    for layer, (iw, oh, ow) in enumerate(geom):
        src, w_ref, b_ref, dst = srcs[layer], ws[layer], bs[layer], dsts[layer]

        # In-VMEM im2col over the previous (channels-last, flattened-spatial)
        # activation: for each output row, gather the 9 taps with static
        # stride-2 reads along the flattened-spatial (sublane) dim, lane-concat
        # to a (ow, 9*Cin) slab, then sublane-concat the rows. Fully unrolled
        # at trace time (trip counts are tiny and static).
        rows = []
        for r in range(oh):
            taps = []
            for ki in range(3):
                base = (2 * r + ki) * iw
                for kj in range(3):
                    if ow > 1:
                        idx = pl.ds(base + kj, ow, 2)   # stride-2 column gather
                    else:
                        idx = pl.ds(base + kj, 1)
                    taps.append(src[idx, :])            # (ow, Cin)
            rows.append(jnp.concatenate(taps, axis=-1))  # (ow, 9*Cin)
        patches = rows[0] if oh == 1 else jnp.concatenate(rows, axis=0)

        # TODO(synk): bf16 operands (with f32 accumulation) would halve MXU
        # operand bytes on v6e/v7x; kept f32 to preserve 1e-4 parity with the
        # f32 PyTorch/JAX reference.
        dst[...] = _matmul_bias_relu(patches, w_ref, b_ref)


# ----------------------------------------------------------------------------
# Wrapper: one pallas_call for the whole encoder.
# ----------------------------------------------------------------------------
def encoder_forward_pallas(x_nchw, prepared_params):
    N, C, H, W = x_nchw.shape

    # Static per-layer geometry for valid 3x3 / stride-2 convs.
    sizes = [(H, W, C)]
    for (w2d, _) in prepared_params:
        k_dim, cout = w2d.shape
        ih, iw, cin = sizes[-1]
        assert k_dim == 9 * cin, (k_dim, cin)
        oh, ow = _conv_out(ih), _conv_out(iw)
        assert oh >= 1 and ow >= 1, "input too small for 4 valid stride-2 convs"
        sizes.append((oh, ow, cout))
    (oh1, ow1, c1), (oh2, ow2, c2), (oh3, ow3, c3), (oh4, ow4, c4) = sizes[1:]

    # Single cheap layout change + layer-1 im2col on the tiny raw input
    # (17 KiB -> 36 KiB per element). Tap order (ki, kj, cin) matches the
    # flattened weight layout and the in-kernel gather for layers 2-4.
    x_nhwc = jnp.transpose(x_nchw.astype(jnp.float32), (0, 2, 3, 1))
    taps = []
    for ki in range(3):
        for kj in range(3):
            taps.append(jax.lax.slice(
                x_nhwc,
                (0, ki, kj, 0),
                (N, ki + 2 * (oh1 - 1) + 1, kj + 2 * (ow1 - 1) + 1, C),
                (1, 2, 2, 1)))                       # (N, oh1, ow1, C)
    patches1 = jnp.concatenate(taps, axis=-1).reshape(N, oh1 * ow1, 9 * C)

    geom = ((ow1, oh2, ow2), (ow2, oh3, ow3), (ow3, oh4, ow4))
    kernel = functools.partial(_encoder_kernel, geom=geom)

    def _full_spec(a):  # whole array resident in VMEM, single block
        return pl.BlockSpec(a.shape, lambda n: (0, 0))

    in_specs = [pl.BlockSpec((None, oh1 * ow1, 9 * C), lambda n: (n, 0, 0))]
    flat_args = [patches1]
    for (w2d, b2d) in prepared_params:
        in_specs += [_full_spec(w2d), _full_spec(b2d)]
        flat_args += [w2d, b2d]

    m4 = oh4 * ow4
    out = pl.pallas_call(
        kernel,
        out_shape=jax.ShapeDtypeStruct((N, m4, c4), jnp.float32),
        grid_spec=pltpu.PrefetchScalarGridSpec(
            num_scalar_prefetch=0,
            grid=(N,),
            in_specs=in_specs,
            out_specs=pl.BlockSpec((None, m4, c4), lambda n: (n, 0, 0)),
            scratch_shapes=[
                pltpu.VMEM((oh1 * ow1, c1), jnp.float32),   # y1
                pltpu.VMEM((oh2 * ow2, c2), jnp.float32),   # y2
                pltpu.VMEM((oh3 * ow3, c3), jnp.float32),   # y3
            ],
        ),
        compiler_params=pltpu.CompilerParams(
            dimension_semantics=("parallel",),
            vmem_limit_bytes=32 * 1024 * 1024,   # explicit; well under v7x 64 MiB
        ),
    )(*flat_args)

    # Free at (N, 1, 1, 256) -> NCHW to match PyTorch.
    return out.reshape(N, oh4, ow4, c4).transpose(0, 3, 1, 2)


encoder_forward = jax.jit(encoder_forward_pallas)


# ----------------------------------------------------------------------------
# Parameters: PyTorch-layout init + one-time flatten to (9*Cin, Cout).
# ----------------------------------------------------------------------------
def init_encoder_params(key):
    cfgs = [(4, 64), (64, 128), (128, 256), (256, 256)]
    params = []
    for cin, cout in cfgs:
        key, kw_, kb_ = jax.random.split(key, 3)
        fan_in = cin * 3 * 3
        std = (2.0 / fan_in) ** 0.5
        w = jax.random.normal(kw_, (cout, cin, 3, 3), jnp.float32) * std
        b = jax.random.normal(kb_, (cout,), jnp.float32) * 0.01
        params.append((w, b))
    return params


def prepare_encoder_params(params_oihw):
    """OIHW -> ((KH*KW*Cin, Cout), (1, Cout)); done once, outside jit."""
    prepared = []
    for w, b in params_oihw:
        cout, cin, kh, kw = w.shape
        w2d = jnp.transpose(w, (2, 3, 1, 0)).reshape(kh * kw * cin, cout)
        prepared.append((w2d, b.reshape(1, cout)))
    return prepared


# Pure-JAX reference (correctness check).
def encoder_forward_ref(x, params):
    for (w, b) in params:
        y = jax.lax.conv_general_dilated(
            x, w, window_strides=(2, 2), padding="VALID",
            dimension_numbers=("NCHW", "OIHW", "NCHW"))
        x = jnp.maximum(y + b[None, :, None, None], 0.0)
    return x


if __name__ == "__main__":
    key = jax.random.PRNGKey(0)
    kx, kp = jax.random.split(key)

    # batch=2, channels=4, spatial=33 (33 -> 16 -> 7 -> 3 -> 1 through four
    # valid stride-2 3x3 convs; 16 would leave nothing for conv4).
    x = jax.random.normal(kx, (2, 4, 33, 33), jnp.float32)
    params = init_encoder_params(kp)            # PyTorch-layout weights
    prepared = prepare_encoder_params(params)   # flattened once

    out = encoder_forward(x, prepared)
    out = jax.block_until_ready(out)
    assert out.shape == (2, 256, 1, 1), out.shape

    ref = encoder_forward_ref(x, params)
    assert jnp.allclose(out, ref, atol=1e-4, rtol=1e-4), "mismatch vs reference"

    print("KERNEL_OK")
</pallas_src>

<mosaic_0001>
module attributes {stable_mosaic.version = 11 : i64} {
  func.func @_encoder_kernel(%arg0: i32, %arg1: memref<1x256x36xf32, #tpu.memory_space<vmem>>, %arg2: memref<36x64xf32, #tpu.memory_space<vmem>>, %arg3: memref<1x64xf32, #tpu.memory_space<vmem>>, %arg4: memref<576x128xf32, #tpu.memory_space<vmem>>, %arg5: memref<1x128xf32, #tpu.memory_space<vmem>>, %arg6: memref<1152x256xf32, #tpu.memory_space<vmem>>, %arg7: memref<1x256xf32, #tpu.memory_space<vmem>>, %arg8: memref<2304x256xf32, #tpu.memory_space<vmem>>, %arg9: memref<1x256xf32, #tpu.memory_space<vmem>>, %arg10: memref<1x1x256xf32, #tpu.memory_space<vmem>>, %arg11: memref<256x64xf32, #tpu.memory_space<vmem>>, %arg12: memref<49x128xf32, #tpu.memory_space<vmem>>, %arg13: memref<9x256xf32, #tpu.memory_space<vmem>>) attributes {dimension_semantics = [#tpu.dimension_semantics<parallel>], iteration_bounds = array<i64: 2>, scalar_prefetch = 0 : i64, scratch_operands = 3 : i64, tpu.core_type = #tpu.core_type<tc>, window_params = [{transform_indices = @transform_0, window_bounds = array<i64: 1, 256, 36>}, {pipeline_mode = #tpu.pipeline_mode<synchronous>, transform_indices = @transform_1, window_bounds = array<i64: 36, 64>}, {pipeline_mode = #tpu.pipeline_mode<synchronous>, transform_indices = @transform_2, window_bounds = array<i64: 1, 64>}, {pipeline_mode = #tpu.pipeline_mode<synchronous>, transform_indices = @transform_3, window_bounds = array<i64: 576, 128>}, {pipeline_mode = #tpu.pipeline_mode<synchronous>, transform_indices = @transform_4, window_bounds = array<i64: 1, 128>}, {pipeline_mode = #tpu.pipeline_mode<synchronous>, transform_indices = @transform_5, window_bounds = array<i64: 1152, 256>}, {pipeline_mode = #tpu.pipeline_mode<synchronous>, transform_indices = @transform_6, window_bounds = array<i64: 1, 256>}, {pipeline_mode = #tpu.pipeline_mode<synchronous>, transform_indices = @transform_7, window_bounds = array<i64: 2304, 256>}, {pipeline_mode = #tpu.pipeline_mode<synchronous>, transform_indices = @transform_8, window_bounds = array<i64: 1, 256>}, {transform_indices = @transform_9, window_bounds = array<i64: 1, 1, 256>}]} {
    %c0 = arith.constant 0 : index
    %c0_0 = arith.constant 0 : index
    %c0_1 = arith.constant 0 : index
    %0 = vector.load %arg1[%c0, %c0_0, %c0_1] : memref<1x256x36xf32, #tpu.memory_space<vmem>>, vector<1x256x36xf32>
    %1 = vector.shape_cast %0 : vector<1x256x36xf32> to vector<256x36xf32>
    %c0_2 = arith.constant 0 : index
    %c0_3 = arith.constant 0 : index
    %2 = vector.load %arg2[%c0_2, %c0_3] : memref<36x64xf32, #tpu.memory_space<vmem>>, vector<36x64xf32>
    %cst = arith.constant dense<0.000000e+00> : vector<256x64xf32>
    %3 = tpu.matmul %1, %2, %cst {dimension_numbers = #tpu.dot_dimension_numbers<[1], [0], [0], [1], [0, 0, 1, 1], [], []>} : vector<256x36xf32>, vector<36x64xf32>, vector<256x64xf32> -> vector<256x64xf32>
    %c0_4 = arith.constant 0 : index
    %c0_5 = arith.constant 0 : index
    %4 = vector.load %arg3[%c0_4, %c0_5] : memref<1x64xf32, #tpu.memory_space<vmem>>, vector<1x64xf32>
    %5 = vector.broadcast %4 : vector<1x64xf32> to vector<256x64xf32>
    %6 = arith.addf %3, %5 : vector<256x64xf32>
    %cst_6 = arith.constant 0.000000e+00 : f32
    %7 = vector.broadcast %cst_6 : f32 to vector<256x64xf32>
    %8 = arith.maximumf %6, %7 : vector<256x64xf32>
    %c0_7 = arith.constant 0 : index
    %c0_8 = arith.constant 0 : index
    %9 = vector.load %arg11[%c0_7, %c0_8] : memref<256x64xf32, #tpu.memory_space<vmem>>, vector<256x64xf32>
    tpu.vector_store %arg11[%c0_7, %c0_8], %8 {strides = array<i32>} : memref<256x64xf32, #tpu.memory_space<vmem>>, vector<256x64xf32>,
    %c0_9 = arith.constant 0 : index
    %c0_10 = arith.constant 0 : index
    %10 = tpu.strided_load %arg11[%c0_9, %c0_10] {strides = array<i32: 2, 1>} : memref<256x64xf32, #tpu.memory_space<vmem>>, vector<7x64xf32>
    %c1 = arith.constant 1 : index
    %c0_11 = arith.constant 0 : index
    %11 = tpu.strided_load %arg11[%c1, %c0_11] {strides = array<i32: 2, 1>} : memref<256x64xf32, #tpu.memory_space<vmem>>, vector<7x64xf32>
    %c2 = arith.constant 2 : index
    %c0_12 = arith.constant 0 : index
    %12 = tpu.strided_load %arg11[%c2, %c0_12] {strides = array<i32: 2, 1>} : memref<256x64xf32, #tpu.memory_space<vmem>>, vector<7x64xf32>
    %c16 = arith.constant 16 : index
    %c0_13 = arith.constant 0 : index
    %13 = tpu.strided_load %arg11[%c16, %c0_13] {strides = array<i32: 2, 1>} : memref<256x64xf32, #tpu.memory_space<vmem>>, vector<7x64xf32>
    %c17 = arith.constant 17 : index
    %c0_14 = arith.constant 0 : index
    %14 = tpu.strided_load %arg11[%c17, %c0_14] {strides = array<i32: 2, 1>} : memref<256x64xf32, #tpu.memory_space<vmem>>, vector<7x64xf32>
    %c18 = arith.constant 18 : index
    %c0_15 = arith.constant 0 : index
    %15 = tpu.strided_load %arg11[%c18, %c0_15] {strides = array<i32: 2, 1>} : memref<256x64xf32, #tpu.memory_space<vmem>>, vector<7x64xf32>
    %c32 = arith.constant 32 : index
    %c0_16 = arith.constant 0 : index
    %16 = tpu.strided_load %arg11[%c32, %c0_16] {strides = array<i32: 2, 1>} : memref<256x64xf32, #tpu.memory_space<vmem>>, vector<7x64xf32>
    %c33 = arith.constant 33 : index
    %c0_17 = arith.constant 0 : index
    %17 = tpu.strided_load %arg11[%c33, %c0_17] {strides = array<i32: 2, 1>} : memref<256x64xf32, #tpu.memory_space<vmem>>, vector<7x64xf32>
    %c34 = arith.constant 34 : index
    %c0_18 = arith.constant 0 : index
    %18 = tpu.strided_load %arg11[%c34, %c0_18] {strides = array<i32: 2, 1>} : memref<256x64xf32, #tpu.memory_space<vmem>>, vector<7x64xf32>
    %19 = tpu.concatenate %10, %11, %12, %13, %14, %15, %16, %17, %18 in 1 : vector<7x64xf32>, vector<7x64xf32>, vector<7x64xf32>, vector<7x64xf32>, vector<7x64xf32>, vector<7x64xf32>, vector<7x64xf32>, vector<7x64xf32>, vector<7x64xf32> -> vector<7x576xf32>
    %c32_19 = arith.constant 32 : index
    %c0_20 = arith.constant 0 : index
    %20 = tpu.strided_load %arg11[%c32_19, %c0_20] {strides = array<i32: 2, 1>} : memref<256x64xf32, #tpu.memory_space<vmem>>, vector<7x64xf32>
    %c33_21 = arith.constant 33 : index
    %c0_22 = arith.constant 0 : index
    %21 = tpu.strided_load %arg11[%c33_21, %c0_22] {strides = array<i32: 2, 1>} : memref<256x64xf32, #tpu.memory_space<vmem>>, vector<7x64xf32>
    %c34_23 = arith.constant 34 : index
    %c0_24 = arith.constant 0 : index
    %22 = tpu.strided_load %arg11[%c34_23, %c0_24] {strides = array<i32: 2, 1>} : memref<256x64xf32, #tpu.memory_space<vmem>>, vector<7x64xf32>
    %c48 = arith.constant 48 : index
    %c0_25 = arith.constant 0 : index
    %23 = tpu.strided_load %arg11[%c48, %c0_25] {strides = array<i32: 2, 1>} : memref<256x64xf32, #tpu.memory_space<vmem>>, vector<7x64xf32>
    %c49 = arith.constant 49 : index
    %c0_26 = arith.constant 0 : index
    %24 = tpu.strided_load %arg11[%c49, %c0_26] {strides = array<i32: 2, 1>} : memref<256x64xf32, #tpu.memory_space<vmem>>, vector<7x64xf32>
    %c50 = arith.constant 50 : index
    %c0_27 = arith.constant 0 : index
    %25 = tpu.strided_load %arg11[%c50, %c0_27] {strides = array<i32: 2, 1>} : memref<256x64xf32, #tpu.memory_space<vmem>>, vector<7x64xf32>
    %c64 = arith.constant 64 : index
    %c0_28 = arith.constant 0 : index
    %26 = tpu.strided_load %arg11[%c64, %c0_28] {strides = array<i32: 2, 1>} : memref<256x64xf32, #tpu.memory_space<vmem>>, vector<7x64xf32>
    %c65 = arith.constant 65 : index
    %c0_29 = arith.constant 0 : index
    %27 = tpu.strided_load %arg11[%c65, %c0_29] {strides = array<i32: 2, 1>} : memref<256x64xf32, #tpu.memory_space<vmem>>, vector<7x64xf32>
    %c66 = arith.constant 66 : index
    %c0_30 = arith.constant 0 : index
    %28 = tpu.strided_load %arg11[%c66, %c0_30] {strides = array<i32: 2, 1>} : memref<256x64xf32, #tpu.memory_space<vmem>>, vector<7x64xf32>
    %29 = tpu.concatenate %20, %21, %22, %23, %24, %25, %26, %27, %28 in 1 : vector<7x64xf32>, vector<7x64xf32>, vector<7x64xf32>, vector<7x64xf32>, vector<7x64xf32>, vector<7x64xf32>, vector<7x64xf32>, vector<7x64xf32>, vector<7x64xf32> -> vector<7x576xf32>
    %c64_31 = arith.constant 64 : index
    %c0_32 = arith.constant 0 : index
    %30 = tpu.strided_load %arg11[%c64_31, %c0_32] {strides = array<i32: 2, 1>} : memref<256x64xf32, #tpu.memory_space<vmem>>, vector<7x64xf32>
    %c65_33 = arith.constant 65 : index
    %c0_34 = arith.constant 0 : index
    %31 = tpu.strided_load %arg11[%c65_33, %c0_34] {strides = array<i32: 2, 1>} : memref<256x64xf32, #tpu.memory_space<vmem>>, vector<7x64xf32>
    %c66_35 = arith.constant 66 : index
    %c0_36 = arith.constant 0 : index
    %32 = tpu.strided_load %arg11[%c66_35, %c0_36] {strides = array<i32: 2, 1>} : memref<256x64xf32, #tpu.memory_space<vmem>>, vector<7x64xf32>
    %c80 = arith.constant 80 : index
    %c0_37 = arith.constant 0 : index
    %33 = tpu.strided_load %arg11[%c80, %c0_37] {strides = array<i32: 2, 1>} : memref<256x64xf32, #tpu.memory_space<vmem>>, vector<7x64xf32>
    %c81 = arith.constant 81 : index
    %c0_38 = arith.constant 0 : index
    %34 = tpu.strided_load %arg11[%c81, %c0_38] {strides = array<i32: 2, 1>} : memref<256x64xf32, #tpu.memory_space<vmem>>, vector<7x64xf32>
    %c82 = arith.constant 82 : index
    %c0_39 = arith.constant 0 : index
    %35 = tpu.strided_load %arg11[%c82, %c0_39] {strides = array<i32: 2, 1>} : memref<256x64xf32, #tpu.memory_space<vmem>>, vector<7x64xf32>
    %c96 = arith.constant 96 : index
    %c0_40 = arith.constant 0 : index
    %36 = tpu.strided_load %arg11[%c96, %c0_40] {strides = array<i32: 2, 1>} : memref<256x64xf32, #tpu.memory_space<vmem>>, vector<7x64xf32>
    %c97 = arith.constant 97 : index
    %c0_41 = arith.constant 0 : index
    %37 = tpu.strided_load %arg11[%c97, %c0_41] {strides = array<i32: 2, 1>} : memref<256x64xf32, #tpu.memory_space<vmem>>, vector<7x64xf32>
    %c98 = arith.constant 98 : index
    %c0_42 = arith.constant 0 : index
    %38 = tpu.strided_load %arg11[%c98, %c0_42] {strides = array<i32: 2, 1>} : memref<256x64xf32, #tpu.memory_space<vmem>>, vector<7x64xf32>
    %39 = tpu.concatenate %30, %31, %32, %33, %34, %35, %36, %37, %38 in 1 : vector<7x64xf32>, vector<7x64xf32>, vector<7x64xf32>, vector<7x64xf32>, vector<7x64xf32>, vector<7x64xf32>, vector<7x64xf32>, vector<7x64xf32>, vector<7x64xf32> -> vector<7x576xf32>
    %c96_43 = arith.constant 96 : index
    %c0_44 = arith.constant 0 : index
    %40 = tpu.strided_load %arg11[%c96_43, %c0_44] {strides = array<i32: 2, 1>} : memref<256x64xf32, #tpu.memory_space<vmem>>, vector<7x64xf32>
    %c97_45 = arith.constant 97 : index
    %c0_46 = arith.constant 0 : index
    %41 = tpu.strided_load %arg11[%c97_45, %c0_46] {strides = array<i32: 2, 1>} : memref<256x64xf32, #tpu.memory_space<vmem>>, vector<7x64xf32>
    %c98_47 = arith.constant 98 : index
    %c0_48 = arith.constant 0 : index
    %42 = tpu.strided_load %arg11[%c98_47, %c0_48] {strides = array<i32: 2, 1>} : memref<256x64xf32, #tpu.memory_space<vmem>>, vector<7x64xf32>
    %c112 = arith.constant 112 : index
    %c0_49 = arith.constant 0 : index
    %43 = tpu.strided_load %arg11[%c112, %c0_49] {strides = array<i32: 2, 1>} : memref<256x64xf32, #tpu.memory_space<vmem>>, vector<7x64xf32>
    %c113 = arith.constant 113 : index
    %c0_50 = arith.constant 0 : index
    %44 = tpu.strided_load %arg11[%c113, %c0_50] {strides = array<i32: 2, 1>} : memref<256x64xf32, #tpu.memory_space<vmem>>, vector<7x64xf32>
    %c114 = arith.constant 114 : index
    %c0_51 = arith.constant 0 : index
    %45 = tpu.strided_load %arg11[%c114, %c0_51] {strides = array<i32: 2, 1>} : memref<256x64xf32, #tpu.memory_space<vmem>>, vector<7x64xf32>
    %c128 = arith.constant 128 : index
    %c0_52 = arith.constant 0 : index
    %46 = tpu.strided_load %arg11[%c128, %c0_52] {strides = array<i32: 2, 1>} : memref<256x64xf32, #tpu.memory_space<vmem>>, vector<7x64xf32>
    %c129 = arith.constant 129 : index
    %c0_53 = arith.constant 0 : index
    %47 = tpu.strided_load %arg11[%c129, %c0_53] {strides = array<i32: 2, 1>} : memref<256x64xf32, #tpu.memory_space<vmem>>, vector<7x64xf32>
    %c130 = arith.constant 130 : index
    %c0_54 = arith.constant 0 : index
    %48 = tpu.strided_load %arg11[%c130, %c0_54] {strides = array<i32: 2, 1>} : memref<256x64xf32, #tpu.memory_space<vmem>>, vector<7x64xf32>
    %49 = tpu.concatenate %40, %41, %42, %43, %44, %45, %46, %47, %48 in 1 : vector<7x64xf32>, vector<7x64xf32>, vector<7x64xf32>, vector<7x64xf32>, vector<7x64xf32>, vector<7x64xf32>, vector<7x64xf32>, vector<7x64xf32>, vector<7x64xf32> -> vector<7x576xf32>
    %c128_55 = arith.constant 128 : index
    %c0_56 = arith.constant 0 : index
    %50 = tpu.strided_load %arg11[%c128_55, %c0_56] {strides = array<i32: 2, 1>} : memref<256x64xf32, #tpu.memory_space<vmem>>, vector<7x64xf32>
    %c129_57 = arith.constant 129 : index
    %c0_58 = arith.constant 0 : index
    %51 = tpu.strided_load %arg11[%c129_57, %c0_58] {strides = array<i32: 2, 1>} : memref<256x64xf32, #tpu.memory_space<vmem>>, vector<7x64xf32>
    %c130_59 = arith.constant 130 : index
    %c0_60 = arith.constant 0 : index
    %52 = tpu.strided_load %arg11[%c130_59, %c0_60] {strides = array<i32: 2, 1>} : memref<256x64xf32, #tpu.memory_space<vmem>>, vector<7x64xf32>
    %c144 = arith.constant 144 : index
    %c0_61 = arith.constant 0 : index
    %53 = tpu.strided_load %arg11[%c144, %c0_61] {strides = array<i32: 2, 1>} : memref<256x64xf32, #tpu.memory_space<vmem>>, vector<7x64xf32>
    %c145 = arith.constant 145 : index
    %c0_62 = arith.constant 0 : index
    %54 = tpu.strided_load %arg11[%c145, %c0_62] {strides = array<i32: 2, 1>} : memref<256x64xf32, #tpu.memory_space<vmem>>, vector<7x64xf32>
    %c146 = arith.constant 146 : index
    %c0_63 = arith.constant 0 : index
    %55 = tpu.strided_load %arg11[%c146, %c0_63] {strides = array<i32: 2, 1>} : memref<256x64xf32, #tpu.memory_space<vmem>>, vector<7x64xf32>
    %c160 = arith.constant 160 : index
    %c0_64 = arith.constant 0 : index
    %56 = tpu.strided_load %arg11[%c160, %c0_64] {strides = array<i32: 2, 1>} : memref<256x64xf32, #tpu.memory_space<vmem>>, vector<7x64xf32>
    %c161 = arith.constant 161 : index
    %c0_65 = arith.constant 0 : index
    %57 = tpu.strided_load %arg11[%c161, %c0_65] {strides = array<i32: 2, 1>} : memref<256x64xf32, #tpu.memory_space<vmem>>, vector<7x64xf32>
    %c162 = arith.constant 162 : index
    %c0_66 = arith.constant 0 : index
    %58 = tpu.strided_load %arg11[%c162, %c0_66] {strides = array<i32: 2, 1>} : memref<256x64xf32, #tpu.memory_space<vmem>>, vector<7x64xf32>
    %59 = tpu.concatenate %50, %51, %52, %53, %54, %55, %56, %57, %58 in 1 : vector<7x64xf32>, vector<7x64xf32>, vector<7x64xf32>, vector<7x64xf32>, vector<7x64xf32>, vector<7x64xf32>, vector<7x64xf32>, vector<7x64xf32>, vector<7x64xf32> -> vector<7x576xf32>
    %c160_67 = arith.constant 160 : index
    %c0_68 = arith.constant 0 : index
    %60 = tpu.strided_load %arg11[%c160_67, %c0_68] {strides = array<i32: 2, 1>} : memref<256x64xf32, #tpu.memory_space<vmem>>, vector<7x64xf32>
    %c161_69 = arith.constant 161 : index
    %c0_70 = arith.constant 0 : index
    %61 = tpu.strided_load %arg11[%c161_69, %c0_70] {strides = array<i32: 2, 1>} : memref<256x64xf32, #tpu.memory_space<vmem>>, vector<7x64xf32>
    %c162_71 = arith.constant 162 : index
    %c0_72 = arith.constant 0 : index
    %62 = tpu.strided_load %arg11[%c162_71, %c0_72] {strides = array<i32: 2, 1>} : memref<256x64xf32, #tpu.memory_space<vmem>>, vector<7x64xf32>
    %c176 = arith.constant 176 : index
    %c0_73 = arith.constant 0 : index
    %63 = tpu.strided_load %arg11[%c176, %c0_73] {strides = array<i32: 2, 1>} : memref<256x64xf32, #tpu.memory_space<vmem>>, vector<7x64xf32>
    %c177 = arith.constant 177 : index
    %c0_74 = arith.constant 0 : index
    %64 = tpu.strided_load %arg11[%c177, %c0_74] {strides = array<i32: 2, 1>} : memref<256x64xf32, #tpu.memory_space<vmem>>, vector<7x64xf32>
    %c178 = arith.constant 178 : index
    %c0_75 = arith.constant 0 : index
    %65 = tpu.strided_load %arg11[%c178, %c0_75] {strides = array<i32: 2, 1>} : memref<256x64xf32, #tpu.memory_space<vmem>>, vector<7x64xf32>
    %c192 = arith.constant 192 : index
    %c0_76 = arith.constant 0 : index
    %66 = tpu.strided_load %arg11[%c192, %c0_76] {strides = array<i32: 2, 1>} : memref<256x64xf32, #tpu.memory_space<vmem>>, vector<7x64xf32>
    %c193 = arith.constant 193 : index
    %c0_77 = arith.constant 0 : index
    %67 = tpu.strided_load %arg11[%c193, %c0_77] {strides = array<i32: 2, 1>} : memref<256x64xf32, #tpu.memory_space<vmem>>, vector<7x64xf32>
    %c194 = arith.constant 194 : index
    %c0_78 = arith.constant 0 : index
    %68 = tpu.strided_load %arg11[%c194, %c0_78] {strides = array<i32: 2, 1>} : memref<256x64xf32, #tpu.memory_space<vmem>>, vector<7x64xf32>
    %69 = tpu.concatenate %60, %61, %62, %63, %64, %65, %66, %67, %68 in 1 : vector<7x64xf32>, vector<7x64xf32>, vector<7x64xf32>, vector<7x64xf32>, vector<7x64xf32>, vector<7x64xf32>, vector<7x64xf32>, vector<7x64xf32>, vector<7x64xf32> -> vector<7x576xf32>
    %c192_79 = arith.constant 192 : index
    %c0_80 = arith.constant 0 : index
    %70 = tpu.strided_load %arg11[%c192_79, %c0_80] {strides = array<i32: 2, 1>} : memref<256x64xf32, #tpu.memory_space<vmem>>, vector<7x64xf32>
    %c193_81 = arith.constant 193 : index
    %c0_82 = arith.constant 0 : index
    %71 = tpu.strided_load %arg11[%c193_81, %c0_82] {strides = array<i32: 2, 1>} : memref<256x64xf32, #tpu.memory_space<vmem>>, vector<7x64xf32>
    %c194_83 = arith.constant 194 : index
    %c0_84 = arith.constant 0 : index
    %72 = tpu.strided_load %arg11[%c194_83, %c0_84] {strides = array<i32: 2, 1>} : memref<256x64xf32, #tpu.memory_space<vmem>>, vector<7x64xf32>
    %c208 = arith.constant 208 : index
    %c0_85 = arith.constant 0 : index
    %73 = tpu.strided_load %arg11[%c208, %c0_85] {strides = array<i32: 2, 1>} : memref<256x64xf32, #tpu.memory_space<vmem>>, vector<7x64xf32>
    %c209 = arith.constant 209 : index
    %c0_86 = arith.constant 0 : index
    %74 = tpu.strided_load %arg11[%c209, %c0_86] {strides = array<i32: 2, 1>} : memref<256x64xf32, #tpu.memory_space<vmem>>, vector<7x64xf32>
    %c210 = arith.constant 210 : index
    %c0_87 = arith.constant 0 : index
    %75 = tpu.strided_load %arg11[%c210, %c0_87] {strides = array<i32: 2, 1>} : memref<256x64xf32, #tpu.memory_space<vmem>>, vector<7x64xf32>
    %c224 = arith.constant 224 : index
    %c0_88 = arith.constant 0 : index
    %76 = tpu.strided_load %arg11[%c224, %c0_88] {strides = array<i32: 2, 1>} : memref<256x64xf32, #tpu.memory_space<vmem>>, vector<7x64xf32>
    %c225 = arith.constant 225 : index
    %c0_89 = arith.constant 0 : index
    %77 = tpu.strided_load %arg11[%c225, %c0_89] {strides = array<i32: 2, 1>} : memref<256x64xf32, #tpu.memory_space<vmem>>, vector<7x64xf32>
    %c226 = arith.constant 226 : index
    %c0_90 = arith.constant 0 : index
    %78 = tpu.strided_load %arg11[%c226, %c0_90] {strides = array<i32: 2, 1>} : memref<256x64xf32, #tpu.memory_space<vmem>>, vector<7x64xf32>
    %79 = tpu.concatenate %70, %71, %72, %73, %74, %75, %76, %77, %78 in 1 : vector<7x64xf32>, vector<7x64xf32>, vector<7x64xf32>, vector<7x64xf32>, vector<7x64xf32>, vector<7x64xf32>, vector<7x64xf32>, vector<7x64xf32>, vector<7x64xf32> -> vector<7x576xf32>
    %80 = tpu.concatenate %19, %29, %39, %49, %59, %69, %79 in 0 : vector<7x576xf32>, vector<7x576xf32>, vector<7x576xf32>, vector<7x576xf32>, vector<7x576xf32>, vector<7x576xf32>, vector<7x576xf32> -> vector<49x576xf32>
    %c0_91 = arith.constant 0 : index
    %c0_92 = arith.constant 0 : index
    %81 = vector.load %arg4[%c0_91, %c0_92] : memref<576x128xf32, #tpu.memory_space<vmem>>, vector<576x128xf32>
    %cst_93 = arith.constant dense<0.000000e+00> : vector<49x128xf32>
    %82 = tpu.matmul %80, %81, %cst_93 {dimension_numbers = #tpu.dot_dimension_numbers<[1], [0], [0], [1], [0, 0, 1, 1], [], []>} : vector<49x576xf32>, vector<576x128xf32>, vector<49x128xf32> -> vector<49x128xf32>
    %c0_94 = arith.constant 0 : index
    %c0_95 = arith.constant 0 : index
    %83 = vector.load %arg5[%c0_94, %c0_95] : memref<1x128xf32, #tpu.memory_space<vmem>>, vector<1x128xf32>
    %84 = vector.broadcast %83 : vector<1x128xf32> to vector<49x128xf32>
    %85 = arith.addf %82, %84 : vector<49x128xf32>
    %cst_96 = arith.constant 0.000000e+00 : f32
    %86 = vector.broadcast %cst_96 : f32 to vector<49x128xf32>
    %87 = arith.maximumf %85, %86 : vector<49x128xf32>
    %c0_97 = arith.constant 0 : index
    %c0_98 = arith.constant 0 : index
    %88 = vector.load %arg12[%c0_97, %c0_98] : memref<49x128xf32, #tpu.memory_space<vmem>>, vector<49x128xf32>
    tpu.vector_store %arg12[%c0_97, %c0_98], %87 {strides = array<i32>} : memref<49x128xf32, #tpu.memory_space<vmem>>, vector<49x128xf32>,
    %c0_99 = arith.constant 0 : index
    %c0_100 = arith.constant 0 : index
    %89 = tpu.strided_load %arg12[%c0_99, %c0_100] {strides = array<i32: 2, 1>} : memref<49x128xf32, #tpu.memory_space<vmem>>, vector<3x128xf32>
    %c1_101 = arith.constant 1 : index
    %c0_102 = arith.constant 0 : index
    %90 = tpu.strided_load %arg12[%c1_101, %c0_102] {strides = array<i32: 2, 1>} : memref<49x128xf32, #tpu.memory_space<vmem>>, vector<3x128xf32>
    %c2_103 = arith.constant 2 : index
    %c0_104 = arith.constant 0 : index
    %91 = tpu.strided_load %arg12[%c2_103, %c0_104] {strides = array<i32: 2, 1>} : memref<49x128xf32, #tpu.memory_space<vmem>>, vector<3x128xf32>
    %c7 = arith.constant 7 : index
    %c0_105 = arith.constant 0 : index
    %92 = tpu.strided_load %arg12[%c7, %c0_105] {strides = array<i32: 2, 1>} : memref<49x128xf32, #tpu.memory_space<vmem>>, vector<3x128xf32>
    %c8 = arith.constant 8 : index
    %c0_106 = arith.constant 0 : index
    %93 = tpu.strided_load %arg12[%c8, %c0_106] {strides = array<i32: 2, 1>} : memref<49x128xf32, #tpu.memory_space<vmem>>, vector<3x128xf32>
    %c9 = arith.constant 9 : index
    %c0_107 = arith.constant 0 : index
    %94 = tpu.strided_load %arg12[%c9, %c0_107] {strides = array<i32: 2, 1>} : memref<49x128xf32, #tpu.memory_space<vmem>>, vector<3x128xf32>
    %c14 = arith.constant 14 : index
    %c0_108 = arith.constant 0 : index
    %95 = tpu.strided_load %arg12[%c14, %c0_108] {strides = array<i32: 2, 1>} : memref<49x128xf32, #tpu.memory_space<vmem>>, vector<3x128xf32>
    %c15 = arith.constant 15 : index
    %c0_109 = arith.constant 0 : index
    %96 = tpu.strided_load %arg12[%c15, %c0_109] {strides = array<i32: 2, 1>} : memref<49x128xf32, #tpu.memory_space<vmem>>, vector<3x128xf32>
    %c16_110 = arith.constant 16 : index
    %c0_111 = arith.constant 0 : index
    %97 = tpu.strided_load %arg12[%c16_110, %c0_111] {strides = array<i32: 2, 1>} : memref<49x128xf32, #tpu.memory_space<vmem>>, vector<3x128xf32>
    %98 = tpu.concatenate %89, %90, %91, %92, %93, %94, %95, %96, %97 in 1 : vector<3x128xf32>, vector<3x128xf32>, vector<3x128xf32>, vector<3x128xf32>, vector<3x128xf32>, vector<3x128xf32>, vector<3x128xf32>, vector<3x128xf32>, vector<3x128xf32> -> vector<3x1152xf32>
    %c14_112 = arith.constant 14 : index
    %c0_113 = arith.constant 0 : index
    %99 = tpu.strided_load %arg12[%c14_112, %c0_113] {strides = array<i32: 2, 1>} : memref<49x128xf32, #tpu.memory_space<vmem>>, vector<3x128xf32>
    %c15_114 = arith.constant 15 : index
    %c0_115 = arith.constant 0 : index
    %100 = tpu.strided_load %arg12[%c15_114, %c0_115] {strides = array<i32: 2, 1>} : memref<49x128xf32, #tpu.memory_space<vmem>>, vector<3x128xf32>
    %c16_116 = arith.constant 16 : index
    %c0_117 = arith.constant 0 : index
    %101 = tpu.strided_load %arg12[%c16_116, %c0_117] {strides = array<i32: 2, 1>} : memref<49x128xf32, #tpu.memory_space<vmem>>, vector<3x128xf32>
    %c21 = arith.constant 21 : index
    %c0_118 = arith.constant 0 : index
    %102 = tpu.strided_load %arg12[%c21, %c0_118] {strides = array<i32: 2, 1>} : memref<49x128xf32, #tpu.memory_space<vmem>>, vector<3x128xf32>
    %c22 = arith.constant 22 : index
    %c0_119 = arith.constant 0 : index
    %103 = tpu.strided_load %arg12[%c22, %c0_119] {strides = array<i32: 2, 1>} : memref<49x128xf32, #tpu.memory_space<vmem>>, vector<3x128xf32>
    %c23 = arith.constant 23 : index
    %c0_120 = arith.constant 0 : index
    %104 = tpu.strided_load %arg12[%c23, %c0_120] {strides = array<i32: 2, 1>} : memref<49x128xf32, #tpu.memory_space<vmem>>, vector<3x128xf32>
    %c28 = arith.constant 28 : index
    %c0_121 = arith.constant 0 : index
    %105 = tpu.strided_load %arg12[%c28, %c0_121] {strides = array<i32: 2, 1>} : memref<49x128xf32, #tpu.memory_space<vmem>>, vector<3x128xf32>
    %c29 = arith.constant 29 : index
    %c0_122 = arith.constant 0 : index
    %106 = tpu.strided_load %arg12[%c29, %c0_122] {strides = array<i32: 2, 1>} : memref<49x128xf32, #tpu.memory_space<vmem>>, vector<3x128xf32>
    %c30 = arith.constant 30 : index
    %c0_123 = arith.constant 0 : index
    %107 = tpu.strided_load %arg12[%c30, %c0_123] {strides = array<i32: 2, 1>} : memref<49x128xf32, #tpu.memory_space<vmem>>, vector<3x128xf32>
    %108 = tpu.concatenate %99, %100, %101, %102, %103, %104, %105, %106, %107 in 1 : vector<3x128xf32>, vector<3x128xf32>, vector<3x128xf32>, vector<3x128xf32>, vector<3x128xf32>, vector<3x128xf32>, vector<3x128xf32>, vector<3x128xf32>, vector<3x128xf32> -> vector<3x1152xf32>
    %c28_124 = arith.constant 28 : index
    %c0_125 = arith.constant 0 : index
    %109 = tpu.strided_load %arg12[%c28_124, %c0_125] {strides = array<i32: 2, 1>} : memref<49x128xf32, #tpu.memory_space<vmem>>, vector<3x128xf32>
    %c29_126 = arith.constant 29 : index
    %c0_127 = arith.constant 0 : index
    %110 = tpu.strided_load %arg12[%c29_126, %c0_127] {strides = array<i32: 2, 1>} : memref<49x128xf32, #tpu.memory_space<vmem>>, vector<3x128xf32>
    %c30_128 = arith.constant 30 : index
    %c0_129 = arith.constant 0 : index
    %111 = tpu.strided_load %arg12[%c30_128, %c0_129] {strides = array<i32: 2, 1>} : memref<49x128xf32, #tpu.memory_space<vmem>>, vector<3x128xf32>
    %c35 = arith.constant 35 : index
    %c0_130 = arith.constant 0 : index
    %112 = tpu.strided_load %arg12[%c35, %c0_130] {strides = array<i32: 2, 1>} : memref<49x128xf32, #tpu.memory_space<vmem>>, vector<3x128xf32>
    %c36 = arith.constant 36 : index
    %c0_131 = arith.constant 0 : index
    %113 = tpu.strided_load %arg12[%c36, %c0_131] {strides = array<i32: 2, 1>} : memref<49x128xf32, #tpu.memory_space<vmem>>, vector<3x128xf32>
    %c37 = arith.constant 37 : index
    %c0_132 = arith.constant 0 : index
    %114 = tpu.strided_load %arg12[%c37, %c0_132] {strides = array<i32: 2, 1>} : memref<49x128xf32, #tpu.memory_space<vmem>>, vector<3x128xf32>
    %c42 = arith.constant 42 : index
    %c0_133 = arith.constant 0 : index
    %115 = tpu.strided_load %arg12[%c42, %c0_133] {strides = array<i32: 2, 1>} : memref<49x128xf32, #tpu.memory_space<vmem>>, vector<3x128xf32>
    %c43 = arith.constant 43 : index
    %c0_134 = arith.constant 0 : index
    %116 = tpu.strided_load %arg12[%c43, %c0_134] {strides = array<i32: 2, 1>} : memref<49x128xf32, #tpu.memory_space<vmem>>, vector<3x128xf32>
    %c44 = arith.constant 44 : index
    %c0_135 = arith.constant 0 : index
    %117 = tpu.strided_load %arg12[%c44, %c0_135] {strides = array<i32: 2, 1>} : memref<49x128xf32, #tpu.memory_space<vmem>>, vector<3x128xf32>
    %118 = tpu.concatenate %109, %110, %111, %112, %113, %114, %115, %116, %117 in 1 : vector<3x128xf32>, vector<3x128xf32>, vector<3x128xf32>, vector<3x128xf32>, vector<3x128xf32>, vector<3x128xf32>, vector<3x128xf32>, vector<3x128xf32>, vector<3x128xf32> -> vector<3x1152xf32>
    %119 = tpu.concatenate %98, %108, %118 in 0 : vector<3x1152xf32>, vector<3x1152xf32>, vector<3x1152xf32> -> vector<9x1152xf32>
    %c0_136 = arith.constant 0 : index
    %c0_137 = arith.constant 0 : index
    %120 = vector.load %arg6[%c0_136, %c0_137] : memref<1152x256xf32, #tpu.memory_space<vmem>>, vector<1152x256xf32>
    %cst_138 = arith.constant dense<0.000000e+00> : vector<9x256xf32>
    %121 = tpu.matmul %119, %120, %cst_138 {dimension_numbers = #tpu.dot_dimension_numbers<[1], [0], [0], [1], [0, 0, 1, 1], [], []>} : vector<9x1152xf32>, vector<1152x256xf32>, vector<9x256xf32> -> vector<9x256xf32>
    %c0_139 = arith.constant 0 : index
    %c0_140 = arith.constant 0 : index
    %122 = vector.load %arg7[%c0_139, %c0_140] : memref<1x256xf32, #tpu.memory_space<vmem>>, vector<1x256xf32>
    %123 = vector.broadcast %122 : vector<1x256xf32> to vector<9x256xf32>
    %124 = arith.addf %121, %123 : vector<9x256xf32>
    %cst_141 = arith.constant 0.000000e+00 : f32
    %125 = vector.broadcast %cst_141 : f32 to vector<9x256xf32>
    %126 = arith.maximumf %124, %125 : vector<9x256xf32>
    %c0_142 = arith.constant 0 : index
    %c0_143 = arith.constant 0 : index
    %127 = vector.load %arg13[%c0_142, %c0_143] : memref<9x256xf32, #tpu.memory_space<vmem>>, vector<9x256xf32>
    tpu.vector_store %arg13[%c0_142, %c0_143], %126 {strides = array<i32>} : memref<9x256xf32, #tpu.memory_space<vmem>>, vector<9x256xf32>,
    %c0_144 = arith.constant 0 : index
    %c0_145 = arith.constant 0 : index
    %128 = vector.load %arg13[%c0_144, %c0_145] : memref<9x256xf32, #tpu.memory_space<vmem>>, vector<1x256xf32>
    %c1_146 = arith.constant 1 : index
    %c0_147 = arith.constant 0 : index
    %129 = vector.load %arg13[%c1_146, %c0_147] : memref<9x256xf32, #tpu.memory_space<vmem>>, vector<1x256xf32>
    %c2_148 = arith.constant 2 : index
    %c0_149 = arith.constant 0 : index
    %130 = vector.load %arg13[%c2_148, %c0_149] : memref<9x256xf32, #tpu.memory_space<vmem>>, vector<1x256xf32>
    %c3 = arith.constant 3 : index
    %c0_150 = arith.constant 0 : index
    %131 = vector.load %arg13[%c3, %c0_150] : memref<9x256xf32, #tpu.memory_space<vmem>>, vector<1x256xf32>
    %c4 = arith.constant 4 : index
    %c0_151 = arith.constant 0 : index
    %132 = vector.load %arg13[%c4, %c0_151] : memref<9x256xf32, #tpu.memory_space<vmem>>, vector<1x256xf32>
    %c5 = arith.constant 5 : index
    %c0_152 = arith.constant 0 : index
    %133 = vector.load %arg13[%c5, %c0_152] : memref<9x256xf32, #tpu.memory_space<vmem>>, vector<1x256xf32>
    %c6 = arith.constant 6 : index
    %c0_153 = arith.constant 0 : index
    %134 = vector.load %arg13[%c6, %c0_153] : memref<9x256xf32, #tpu.memory_space<vmem>>, vector<1x256xf32>
    %c7_154 = arith.constant 7 : index
    %c0_155 = arith.constant 0 : index
    %135 = vector.load %arg13[%c7_154, %c0_155] : memref<9x256xf32, #tpu.memory_space<vmem>>, vector<1x256xf32>
    %c8_156 = arith.constant 8 : index
    %c0_157 = arith.constant 0 : index
    %136 = vector.load %arg13[%c8_156, %c0_157] : memref<9x256xf32, #tpu.memory_space<vmem>>, vector<1x256xf32>
    %137 = tpu.concatenate %128, %129, %130, %131, %132, %133, %134, %135, %136 in 1 : vector<1x256xf32>, vector<1x256xf32>, vector<1x256xf32>, vector<1x256xf32>, vector<1x256xf32>, vector<1x256xf32>, vector<1x256xf32>, vector<1x256xf32>, vector<1x256xf32> -> vector<1x2304xf32>
    %c0_158 = arith.constant 0 : index
    %c0_159 = arith.constant 0 : index
    %138 = vector.load %arg8[%c0_158, %c0_159] : memref<2304x256xf32, #tpu.memory_space<vmem>>, vector<2304x256xf32>
    %cst_160 = arith.constant dense<0.000000e+00> : vector<1x256xf32>
    %139 = tpu.matmul %137, %138, %cst_160 {dimension_numbers = #tpu.dot_dimension_numbers<[1], [0], [0], [1], [0, 0, 1, 1], [], []>} : vector<1x2304xf32>, vector<2304x256xf32>, vector<1x256xf32> -> vector<1x256xf32>
    %c0_161 = arith.constant 0 : index
    %c0_162 = arith.constant 0 : index
    %140 = vector.load %arg9[%c0_161, %c0_162] : memref<1x256xf32, #tpu.memory_space<vmem>>, vector<1x256xf32>
    %141 = arith.addf %139, %140 : vector<1x256xf32>
    %cst_163 = arith.constant 0.000000e+00 : f32
    %142 = vector.broadcast %cst_163 : f32 to vector<1x256xf32>
    %143 = arith.maximumf %141, %142 : vector<1x256xf32>
    %c0_164 = arith.constant 0 : index
    %c0_165 = arith.constant 0 : index
    %c0_166 = arith.constant 0 : index
    %144 = vector.load %arg10[%c0_164, %c0_165, %c0_166] : memref<1x1x256xf32, #tpu.memory_space<vmem>>, vector<1x1x256xf32>
    %145 = vector.shape_cast %144 : vector<1x1x256xf32> to vector<1x256xf32>
    %146 = vector.shape_cast %143 : vector<1x256xf32> to vector<1x1x256xf32>
    tpu.vector_store %arg10[%c0_164, %c0_165, %c0_166], %146 {strides = array<i32>} : memref<1x1x256xf32, #tpu.memory_space<vmem>>, vector<1x1x256xf32>,
    return
  }
  func.func @transform_0(%arg0: i32) -> (i32, i32, i32) {
    %c0_i32 = arith.constant 0 : i32
    %c0_i32_0 = arith.constant 0 : i32
    %c0_i32_1 = arith.constant 0 : i32
    return %arg0, %c0_i32, %c0_i32_0 : i32, i32, i32
  }
  func.func @transform_1(%arg0: i32) -> (i32, i32) {
    %c0_i32 = arith.constant 0 : i32
    %c0_i32_0 = arith.constant 0 : i32
    %c0_i32_1 = arith.constant 0 : i32
    return %c0_i32, %c0_i32_0 : i32, i32
  }
  func.func @transform_2(%arg0: i32) -> (i32, i32) {
    %c0_i32 = arith.constant 0 : i32
    %c0_i32_0 = arith.constant 0 : i32
    %c0_i32_1 = arith.constant 0 : i32
    return %c0_i32, %c0_i32_0 : i32, i32
  }
  func.func @transform_3(%arg0: i32) -> (i32, i32) {
    %c0_i32 = arith.constant 0 : i32
    %c0_i32_0 = arith.constant 0 : i32
    %c0_i32_1 = arith.constant 0 : i32
    return %c0_i32, %c0_i32_0 : i32, i32
  }
  func.func @transform_4(%arg0: i32) -> (i32, i32) {
    %c0_i32 = arith.constant 0 : i32
    %c0_i32_0 = arith.constant 0 : i32
    %c0_i32_1 = arith.constant 0 : i32
    return %c0_i32, %c0_i32_0 : i32, i32
  }
  func.func @transform_5(%arg0: i32) -> (i32, i32) {
    %c0_i32 = arith.constant 0 : i32
    %c0_i32_0 = arith.constant 0 : i32
    %c0_i32_1 = arith.constant 0 : i32
    return %c0_i32, %c0_i32_0 : i32, i32
  }
  func.func @transform_6(%arg0: i32) -> (i32, i32) {
    %c0_i32 = arith.constant 0 : i32
    %c0_i32_0 = arith.constant 0 : i32
    %c0_i32_1 = arith.constant 0 : i32
    return %c0_i32, %c0_i32_0 : i32, i32
  }
  func.func @transform_7(%arg0: i32) -> (i32, i32) {
    %c0_i32 = arith.constant 0 : i32
    %c0_i32_0 = arith.constant 0 : i32
    %c0_i32_1 = arith.constant 0 : i32
    return %c0_i32, %c0_i32_0 : i32, i32
  }
  func.func @transform_8(%arg0: i32) -> (i32, i32) {
    %c0_i32 = arith.constant 0 : i32
    %c0_i32_0 = arith.constant 0 : i32
    %c0_i32_1 = arith.constant 0 : i32
    return %c0_i32, %c0_i32_0 : i32, i32
  }
  func.func @transform_9(%arg0: i32) -> (i32, i32, i32) {
    %c0_i32 = arith.constant 0 : i32
    %c0_i32_0 = arith.constant 0 : i32
    %c0_i32_1 = arith.constant 0 : i32
    return %arg0, %c0_i32, %c0_i32_0 : i32, i32, i32
  }
}

</mosaic_0001>

<bundles_post_ra>
// kernel: encoder_forward_pallas.1
= control target key start
LH: loop header
LB: loop body
LE: loop exit
PB: predicated region body
PF: predicated region fallthrough
CT: control target
= control target key end

     0   :  { %14 = vsyncpa [#allocation6], 0  ;;  %s8572_s0 = inlined_call_operand.vmem [shape: f32[2,256,36], index: 0, kind: input, shape index: {}]   ;;  %s8573_s1 = inlined_call_operand.vmem [shape: f32[36,64], index: 1, kind: input, shape index: {}]   ;;  %s8574_s2 = inlined_call_operand.vmem [shape: f32[1,64], index: 2, kind: input, shape index: {}]   ;;  %s8575_s3 = inlined_call_operand.vmem [shape: f32[576,128], index: 3, kind: input, shape index: {}]   ;;  %s8576_s4 = inlined_call_operand.vmem [shape: f32[1,128], index: 4, kind: input, shape index: {}]   ;;  %s8577_s5 = inlined_call_operand.vmem [shape: f32[1152,256], index: 5, kind: input, shape index: {}]   ;;  %s8578_s6 = inlined_call_operand.vmem [shape: f32[1,256], index: 6, kind: input, shape index: {}]   ;;  %s8579_s7 = inlined_call_operand.vmem [shape: f32[2304,256], index: 7, kind: input, shape index: {}]   ;;  %s8580_s8 = inlined_call_operand.vmem [shape: f32[1,256], index: 8, kind: input, shape index: {}]   ;;  %s8581_s9 = inlined_call_operand.hbm [shape: f32[2,1,256], index: 9, kind: output, shape index: {}]  }
   0x1   :  { %16 = vsyncpa [#allocation6 + $0x1], 0  ;;  %s5243_s30 = smov 0   ;;  %s5245_s10 = smov 0  }
   0x2   :  { %s5247_s11 = smov 0   ;;  %s5249_s12 = smov 0  }
   0x3 LB: > { %s5264_s13 = sadd.s32 4294967295, %s5185_s12   ;;  %s3743_s14 = sadd.s32 4294967294, %s5185_s12   ;;  %s5185_s12 = sphi %s5249_s12, %s8587_s12   ;;  %s5181_s11 = sphi %s5247_s11, %s8586_s11   ;;  %s5177_s10 = sphi %s5245_s10, %s8585_s10   ;;  %s5173_s30 = sphi %s5243_s30, %s8584_s30  }
   0x4   : > { %s5268_s15 = sadd.s32 1, %s5185_s12   ;;  %s223_s16 = sadd.s32 1, %s5181_s11 }
   0x5   : > { %s220_s17 = ssub.s32 %s5185_s12, %s5268_s15  ;;  %p233_p0 = scmp.ne.s32.totalorder %s5181_s11, %s5177_s10 }
   0x6   : > { %p221_p1 = scmp.eq.s32.totalorder %s220_s17, 0  ;;  %p234_p2 = scmp.eq.s32.totalorder %s5264_s13, 1 }
   0x7   : > { %p239_p3 = scmp.ne.s32.totalorder %s5177_s10, %s5173_s30  ;;  %p240_p4 = scmp.eq.s32.totalorder %s3743_s14, 1 }
   0x8   : > { %s5279_s18 = scalar_select %p221_p1, %s5181_s11, %s223_s16  }
   0x9   : > { %p5281_p5 = por %p234_p2, %p233_p0  ;;  %p5285_p6 = por %p240_p4, %p239_p3 }
   0xa   : > { %p3746_p7 = scmp.ge.s32.totalorder %s5185_s12, 1  ;;  %p290_p8 = scmp.lt.s32.totalorder %s5185_s12, 3 }
   0xc   : > { %p291_p9 = pnand %p3746_p7, %p290_p8 }
   0xd   : > { %v363_v0 = vld [vmem:[%s8573_s1] sm:$0xff] (!%p291_p9)  ;;  %v364_v1 = vld [vmem:[%s8573_s1 + $0x8] sm:$0xff] (!%p291_p9)  ;;  %v365_v2 = vld [vmem:[%s8573_s1 + $0x10] sm:$0xff] (!%p291_p9)  ;;  %p326_p10 = scmp.lt.s32.totalorder (!%p291_p9), %s5264_s13, 1  ;;  %vm375_vm0 = vcmask (!%p291_p9), 293888   ;;  %vm472_vm1 = vcmask (!%p291_p9), 1043456  }
   0xe   : > { %294 = sbr.rel (%p291_p9) target bundleno = 1781 (0x6f5), region = 56  ;;  %v4052_v3 = vpack.c.bf16 (!%p291_p9), %v364_v1, %v363_v0  ;;  %v366_v4 = vld [vmem:[%s8573_s1 + $0x18] sm:$0xff] (!%p291_p9)  ;;  %v367_v6 = vld [vmem:[%s8573_s1 + $0x20] sm:$0xf] (!%p291_p9)  ;;  %v1102_v38 = vld [vmem:[%s8575_s3 + $0x88] sm:$0xff] (!%p291_p9)  ;;  %vm733_vm2 = vcmask (!%p291_p9), 523264  }
   0xf   : > { %v4056_v5 = vpack.c.bf16 (!%p291_p9), %v366_v4, %v365_v2  ;;  %v1101_v37 = vld [vmem:[%s8575_s3 + $0x80] sm:$0xff] (!%p291_p9)  ;;  %v1086_v41 = vld [vmem:[%s8575_s3 + $0x8] sm:$0xff] (!%p291_p9)  ;;  %v1103_v42 = vld [vmem:[%s8575_s3 + $0x90] sm:$0xff] (!%p291_p9)  ;;  %s5187_s24 = smov (!%p291_p9), 64   ;;  %vm1050_vm3 = vcmask (!%p291_p9), 1046528   ;;  %vm1056_vm4 = vcmask (!%p291_p9), 1045504  }
  0x10   : > { %4053 = vmatprep.subr.bf16.mxu0 (!%p291_p9), %v4052_v3  ;;  %v1085_v39 = vld [vmem:[%s8575_s3] sm:$0xff] (!%p291_p9)  ;;  %v4060_v40 = vpack.c.bf16 (!%p291_p9), %v1102_v38, %v1101_v37  ;;  %v1104_v43 = vld [vmem:[%s8575_s3 + $0x98] sm:$0xff] (!%p291_p9)  ;;  %v1087_v46 = vld [vmem:[%s8575_s3 + $0x10] sm:$0xff] (!%p291_p9)  ;;  %vm1062_vm5 = vcmask (!%p291_p9), 1044480   ;;  %vm1073_vm6 = vcmask (!%p291_p9), 1042432   ;;  %vm1079_vm7 = vcmask (!%p291_p9), 1041408  }
  0x11   : > { %4055 = vmatpush3.bf16.msra.mxu0 (!%p291_p9), %v4052_v3  ;;  %v4062_v44 = vpack.c.bf16 (!%p291_p9), %v1086_v41, %v1085_v39  ;;  %v4064_v45 = vpack.c.bf16 (!%p291_p9), %v1104_v43, %v1103_v42  ;;  %v1088_v47 = vld [vmem:[%s8575_s3 + $0x18] sm:$0xff] (!%p291_p9)  ;;  %v1105_v48 = vld [vmem:[%s8575_s3 + $0xa0] sm:$0xff] (!%p291_p9)  ;;  %v1106_v49 = vld [vmem:[%s8575_s3 + $0xa8] sm:$0xff] (!%p291_p9)  ;;  %vm5189_vm8 = vmmov (!%p291_p9), 0   ;;  %s323_s25 = sand.u32 (!%p291_p9), 1, %s5177_s10   ;;  %s3798_s27 = sshll.u32 (!%p291_p9), %s5264_s13, 5 }
  0x12   : > { %4057 = vmatprep.subr.bf16.mxu0 (!%p291_p9), %v4056_v5  ;;  %4061 = vmatprep.subr.bf16.mxu1 (!%p291_p9), %v4060_v40  ;;  %v4066_v50 = vpack.c.bf16 (!%p291_p9), %v1088_v47, %v1087_v46  ;;  %v4068_v51 = vpack.c.bf16 (!%p291_p9), %v1106_v49, %v1105_v48  ;;  %v1089_v52 = vld [vmem:[%s8575_s3 + $0x20] sm:$0xff] (!%p291_p9)  ;;  %v1090_v53 = vld [vmem:[%s8575_s3 + $0x28] sm:$0xff] (!%p291_p9)  ;;  %v1107_v54 = vld [vmem:[%s8575_s3 + $0xb0] sm:$0xff] (!%p291_p9)  ;;  %s3747_s26 = sshll.u32 (!%p291_p9), %s323_s25, 1  ;;  %s8530_s16 = scalar_lea.hbm (!%p291_p9), %s8581_s9, %s3798_s27 }
  0x13   : > { %4063 = vmatpush3.bf16.msra.mxu1 (!%p291_p9), %v4062_v44  ;;  %v1108_v55 = vld [vmem:[%s8575_s3 + $0xb8] sm:$0xff] (!%p291_p9)  ;;  %v4070_v56 = vpack.c.bf16 (!%p291_p9), %v1090_v53, %v1089_v52  ;;  %v1091_v58 = vld [vmem:[%s8575_s3 + $0x30] sm:$0xff] (!%p291_p9)  ;;  %v1109_v60 = vld [vmem:[%s8575_s3 + $0xc0] sm:$0xff] (!%p291_p9)  ;;  %s325_s28 = scalar_lea.vmem (!%p291_p9), [#allocation5], %s3747_s26  ;;  %s3670_s17 = scalar_lea.sflag (!%p291_p9), [#allocation6], %s323_s25 }
  0x14   : > { %4065 = vmatprep.subr.bf16.mxu1 (!%p291_p9), %v4064_v45  ;;  %v4072_v57 = vpack.c.bf16 (!%p291_p9), %v1108_v55, %v1107_v54  ;;  %v1092_v59 = vld [vmem:[%s8575_s3 + $0x38] sm:$0xff] (!%p291_p9)  ;;  %v1110_v61 = vld [vmem:[%s8575_s3 + $0xc8] sm:$0xff] (!%p291_p9)  ;;  %v1093_v0 = vld [vmem:[%s8575_s3 + $0x40] sm:$0xff] (!%p291_p9) }
  0x15   : > { %s327_s29 = scalar_select %p326_p10, %s5264_s13, 1  ;;  %4059 = vmatpush3.bf16.msra.mxu0 %v4056_v5  ;;  %v4074_v62 = vpack.c.bf16 %v1092_v59, %v1091_v58  ;;  %v4076_v63 = vpack.c.bf16 %v1110_v61, %v1109_v60  ;;  %v1094_v1 = vld [vmem:[%s8575_s3 + $0x48] sm:$0xff]  ;;  %v1111_v2 = vld [vmem:[%s8575_s3 + $0xd0] sm:$0xff]  ;;  %v1112_v3 = vld [vmem:[%s8575_s3 + $0xd8] sm:$0xff] }
  0x16   : > { %3965 = vmatprep.subr.msk.mxu0 %vm472_vm1, %v367_v6  ;;  %v4078_v4 = vpack.c.bf16 %v1094_v1, %v1093_v0  ;;  %v4080_v5 = vpack.c.bf16 %v1112_v3, %v1111_v2  ;;  %v1098_v37 = vld [vmem:[%s8575_s3 + $0x68] sm:$0xff]  ;;  %v1115_v44 = vld [vmem:[%s8575_s3 + $0xf0] sm:$0xff]  ;;  %v1116_v45 = vld [vmem:[%s8575_s3 + $0xf8] sm:$0xff]  ;;  %s5192_s13 = smov [#allocation5]  }
  0x17   : > { %s3797_s14 = sshll.u32 %s327_s29, 8  ;;  %4067 = vmatpush3.bf16.msra.mxu1 %v4066_v50  ;;  %v4088_v47 = vpack.c.bf16 %v1116_v45, %v1115_v44  ;;  %v1099_v48 = vld [vmem:[%s8575_s3 + $0x70] sm:$0xff]  ;;  %v1100_v49 = vld [vmem:[%s8575_s3 + $0x78] sm:$0xff]  ;;  %s5127_s23 = sshll.u32 %s5192_s13, 4  ;;  %s5128_s23 = int_to_ptr.vmem [resolvable:$false] %s5127_s23 }
  0x18   : > { %s5308_s21 = scalar_lea.vmem %s8572_s0, %s3797_s14  ;;  %4069 = vmatprep.subr.bf16.mxu1 %v4068_v51  ;;  %v4090_v52 = vpack.c.bf16 %v1100_v49, %v1099_v48 }
  0x19   : > { %v331_v7 = vld [vmem:[%s5308_s21] sm:$0xff]  ;;  %v332_v8 = vld [vmem:[%s5308_s21 + $0x8] sm:$0xff]  ;;  %v333_v9 = vld [vmem:[%s5308_s21 + $0x10] sm:$0xff]  ;;  %3966 = vmatpush3.msk.msra.mxu0 %vm472_vm1, %v367_v6 }
  0x1a   : > { %3967 = vmatprep.mubr.msk.f32.mxu0 %vm375_vm0, %v331_v7  ;;  %v334_v10 = vld [vmem:[%s5308_s21 + $0x18] sm:$0xff]  ;;  %v335_v11 = vld [vmem:[%s5308_s21 + $0x20] sm:$0xff]  ;;  %v336_v12 = vld [vmem:[%s5308_s21 + $0x28] sm:$0xff] }
  0x1b   : > { %3968 = vmatmul.mubr.msk.f32.vlgmr.msra.gmra.mrb[0].mxu0 %vm375_vm0, %v332_v8  ;;  %v337_v13 = vld [vmem:[%s5308_s21 + $0x30] sm:$0xff]  ;;  %v338_v14 = vld [vmem:[%s5308_s21 + $0x38] sm:$0xff]  ;;  %v339_v15 = vld [vmem:[%s5308_s21 + $0x40] sm:$0xff]  ;;  %4071 = vmatpush3.bf16.msra.mxu1 %v4070_v56 }
  0x1c   : > { %3970 = vmatprep.mubr.msk.f32.mxu0 %vm375_vm0, %v333_v9  ;;  %v340_v16 = vld [vmem:[%s5308_s21 + $0x48] sm:$0xff]  ;;  %v341_v17 = vld [vmem:[%s5308_s21 + $0x50] sm:$0xff]  ;;  %v342_v18 = vld [vmem:[%s5308_s21 + $0x58] sm:$0xff]  ;;  %4073 = vmatprep.subr.bf16.mxu1 %v4072_v57 }
  0x1d   : > { %v343_v19 = vld [vmem:[%s5308_s21 + $0x60] sm:$0xff]  ;;  %v344_v20 = vld [vmem:[%s5308_s21 + $0x68] sm:$0xff]  ;;  %v345_v21 = vld [vmem:[%s5308_s21 + $0x70] sm:$0xff] }
  0x1e   : > { %v346_v22 = vld [vmem:[%s5308_s21 + $0x78] sm:$0xff]  ;;  %v347_v23 = vld [vmem:[%s5308_s21 + $0x80] sm:$0xff]  ;;  %v348_v24 = vld [vmem:[%s5308_s21 + $0x88] sm:$0xff] }
  0x1f   : > { %3971 = vmatmul.mubr.msk.f32.gmra.mrb[2].mxu0 %vm375_vm0, %v334_v10  ;;  %v349_v25 = vld [vmem:[%s5308_s21 + $0x90] sm:$0xff]  ;;  %v350_v26 = vld [vmem:[%s5308_s21 + $0x98] sm:$0xff]  ;;  %v351_v27 = vld [vmem:[%s5308_s21 + $0xa0] sm:$0xff]  ;;  %4075 = vmatpush3.bf16.msra.mxu1 %v4074_v62 }
  0x20   : > { %3973 = vmatprep.mubr.msk.f32.mxu0 %vm375_vm0, %v335_v11  ;;  %v352_v28 = vld [vmem:[%s5308_s21 + $0xa8] sm:$0xff]  ;;  %v353_v29 = vld [vmem:[%s5308_s21 + $0xb0] sm:$0xff]  ;;  %v354_v30 = vld [vmem:[%s5308_s21 + $0xb8] sm:$0xff]  ;;  %4077 = vmatprep.subr.bf16.mxu1 %v4076_v63 }
  0x21   : > { %v355_v31 = vld [vmem:[%s5308_s21 + $0xc0] sm:$0xff]  ;;  %v356_v32 = vld [vmem:[%s5308_s21 + $0xc8] sm:$0xff]  ;;  %v357_v33 = vld [vmem:[%s5308_s21 + $0xd0] sm:$0xff] }
  0x22   : > { %v358_v34 = vld [vmem:[%s5308_s21 + $0xd8] sm:$0xff]  ;;  %v359_v35 = vld [vmem:[%s5308_s21 + $0xe0] sm:$0xff]  ;;  %v360_v36 = vld [vmem:[%s5308_s21 + $0xe8] sm:$0xff] }
  0x23   : > { %3974 = vmatmul.mubr.msk.f32.gmra.mrb[4].mxu0 %vm375_vm0, %v336_v12  ;;  %v1095_v6 = vld [vmem:[%s8575_s3 + $0x50] sm:$0xff]  ;;  %v1096_v7 = vld [vmem:[%s8575_s3 + $0x58] sm:$0xff]  ;;  %4079 = vmatpush3.bf16.msra.mxu1 %v4078_v4  ;;  %v5450_v9 = vld [vmem:[%s8574_s2] ss:$0 sm:$0xff] }
  0x24   : > { %3976 = vmatprep.mubr.msk.f32.mxu0 %vm375_vm0, %v337_v13  ;;  %v4082_v8 = vpack.c.bf16 %v1096_v7, %v1095_v6  ;;  %4081 = vmatprep.subr.bf16.mxu1 %v4080_v5 }
  0x27   : > { %3977 = vmatmul.mubr.msk.f32.gmra.mrb[6].mxu0 %vm375_vm0, %v338_v14  ;;  %4083 = vmatpush3.bf16.msra.mxu1 %v4082_v8 }
  0x28   : > { %3979 = vmatprep.mubr.msk.f32.mxu0 %vm375_vm0, %v339_v15 }
  0x2b   : > { %3980 = vmatmul.mubr.msk.f32.gmra.mrb[8].mxu0 %vm375_vm0, %v340_v16 }
  0x2c   : > { %3982 = vmatprep.mubr.msk.f32.mxu0 %vm375_vm0, %v341_v17 }
  0x2f   : > { %3983 = vmatmul.mubr.msk.f32.gmra.mrb[10].mxu0 %vm375_vm0, %v342_v18 }
  0x30   : > { %3985 = vmatprep.mubr.msk.f32.mxu0 %vm375_vm0, %v343_v19 }
  0x33   : > { %3986 = vmatmul.mubr.msk.f32.gmra.mrb[12].mxu0 %vm375_vm0, %v344_v20 }
  0x34   : > { %3988 = vmatprep.mubr.msk.f32.mxu0 %vm375_vm0, %v345_v21 }
  0x37   : > { %3989 = vmatmul.mubr.msk.f32.gmra.mrb[14].mxu0 %vm375_vm0, %v346_v22 }
  0x38   : > { %3991 = vmatprep.mubr.msk.f32.mxu0 %vm375_vm0, %v347_v23 }
  0x3b   : > { %3992 = vmatmul.mubr.msk.f32.gmra.mrb[16].mxu0 %vm375_vm0, %v348_v24 }
  0x3c   : > { %3994 = vmatprep.mubr.msk.f32.mxu0 %vm375_vm0, %v349_v25 }
  0x3f   : > { %3995 = vmatmul.mubr.msk.f32.gmra.mrb[18].mxu0 %vm375_vm0, %v350_v26 }
  0x40   : > { %3997 = vmatprep.mubr.msk.f32.mxu0 %vm375_vm0, %v351_v27 }
  0x43   : > { %3998 = vmatmul.mubr.msk.f32.gmra.mrb[20].mxu0 %vm375_vm0, %v352_v28 }
  0x44   : > { %4000 = vmatprep.mubr.msk.f32.mxu0 %vm375_vm0, %v353_v29 }
  0x47   : > { %4001 = vmatmul.mubr.msk.f32.gmra.mrb[22].mxu0 %vm375_vm0, %v354_v30 }
  0x48   : > { %4003 = vmatprep.mubr.msk.f32.mxu0 %vm375_vm0, %v355_v31 }
  0x4b   : > { %4004 = vmatmul.mubr.msk.f32.gmra.mrb[24].mxu0 %vm375_vm0, %v356_v32  ;;  %v1113_v32 = vld [vmem:[%s8575_s3 + $0xe0] sm:$0xff] }
  0x4c   : > { %4006 = vmatprep.mubr.msk.f32.mxu0 %vm375_vm0, %v357_v33  ;;  %v1114_v33 = vld [vmem:[%s8575_s3 + $0xe8] sm:$0xff] }
  0x4f   : > { %4007 = vmatmul.mubr.msk.f32.gmra.mrb[26].mxu0 %vm375_vm0, %v358_v34 }
  0x50   : > { %4009 = vmatprep.mubr.msk.f32.mxu0 %vm375_vm0, %v359_v35  ;;  %v4084_v35 = vpack.c.bf16 %v1114_v33, %v1113_v32 }
  0x52   : > { %4085 = vmatprep.subr.bf16.mxu1 %v4084_v35 }
  0x53   : > { %4010 = vmatmul.mubr.msk.f32.gmra.mrb[28].mxu0 %vm375_vm0, %v360_v36  ;;  %v1097_v36 = vld [vmem:[%s8575_s3 + $0x60] sm:$0xff] }
  0x54   : > { %v4086_v40 = vpack.c.bf16 %v1098_v37, %v1097_v36 }
  0x56   : > { %4087 = vmatpush3.bf16.msra.mxu1 %v4086_v40 }
  0x57   : > { %4089 = vmatprep.subr.bf16.mxu1 %v4088_v47 }
  0x5a   : > { %4091 = vmatpush3.bf16.msra.mxu1 %v4090_v52 }
  0xee   : > { %v3969_v10 = vpop.f32.mrb[0].mxu0 }
  0xef   : > { %v548_v11 = vadd.f32 %v3969_v10, %v5450_v9  ;;  %v542_v12 = vpop.f32.mrb[1].mxu0 }
  0xf0   : > { %v543_v13 = vadd.f32 %v5450_v9, %v542_v12 }
  0xf1   : > { %v702_v14 = vmax.f32 %v548_v11, 0.0 }
  0xf2   : > { %v701_v15 = vmax.f32 %v543_v13, 0.0  ;;  %v3972_v16 = vpop.f32.mrb[2].mxu0 }
  0xf3   : > { %735 = vst.msk [vmem:[#allocation2 + $0x8] sm:$0xff] %vm733_vm2, %v702_v14  ;;  %v558_v17 = vadd.f32 %v3972_v16, %v5450_v9  ;;  %v552_v18 = vpop.f32.mrb[3].mxu0 }
  0xf4   : > { %734 = vst.msk [vmem:[#allocation2] sm:$0xff] %vm733_vm2, %v701_v15  ;;  %v553_v19 = vadd.f32 %v5450_v9, %v552_v18 }
  0xf5   : > { %v704_v20 = vmax.f32 %v558_v17, 0.0 }
  0xf6   : > { %v703_v21 = vmax.f32 %v553_v19, 0.0  ;;  %v3975_v22 = vpop.f32.mrb[4].mxu0 }
  0xf7   : > { %737 = vst.msk [vmem:[#allocation2 + $0x18] sm:$0xff] %vm733_vm2, %v704_v20  ;;  %v568_v23 = vadd.f32 %v3975_v22, %v5450_v9  ;;  %v562_v24 = vpop.f32.mrb[5].mxu0 }
  0xf8   : > { %736 = vst.msk [vmem:[#allocation2 + $0x10] sm:$0xff] %vm733_vm2, %v703_v21  ;;  %v563_v25 = vadd.f32 %v5450_v9, %v562_v24 }
  0xf9   : > { %v706_v26 = vmax.f32 %v568_v23, 0.0 }
  0xfa   : > { %v705_v27 = vmax.f32 %v563_v25, 0.0  ;;  %v3978_v28 = vpop.f32.mrb[6].mxu0  ;;  %v1133_v25 = vld [vmem:[%s8575_s3 + $0x180] sm:$0xff] }
  0xfb   : > { %739 = vst.msk [vmem:[#allocation2 + $0x28] sm:$0xff] %vm733_vm2, %v706_v26  ;;  %v578_v29 = vadd.f32 %v3978_v28, %v5450_v9  ;;  %v572_v30 = vpop.f32.mrb[7].mxu0  ;;  %v768_v7 = vld [vmem:[#allocation2 + $0x1] ss:$2 sm:$0x7f] }
  0xfc   : > { %738 = vst.msk [vmem:[#allocation2 + $0x20] sm:$0xff] %vm733_vm2, %v705_v27  ;;  %v573_v31 = vadd.f32 %v5450_v9, %v572_v30  ;;  %v1134_v26 = vld [vmem:[%s8575_s3 + $0x188] sm:$0xff] }
  0xfd   : > { %v708_v34 = vmax.f32 %v578_v29, 0.0  ;;  %v4092_v28 = vpack.c.bf16 %v1134_v26, %v1133_v25  ;;  %v1117_v26 = vld [vmem:[%s8575_s3 + $0x100] sm:$0xff] }
  0xfe   : > { %v707_v38 = vmax.f32 %v573_v31, 0.0  ;;  %v3981_v39 = vpop.f32.mrb[8].mxu0 }
  0xff   : > { %741 = vst.msk [vmem:[#allocation2 + $0x38] sm:$0xff] %vm733_vm2, %v708_v34  ;;  %v588_v41 = vadd.f32 %v3981_v39, %v5450_v9  ;;  %v582_v42 = vpop.f32.mrb[9].mxu0  ;;  %v772_v2 = vld [vmem:[#allocation2 + $0x10] ss:$2 sm:$0x7f]  ;;  %4093 = vmatprep.subr.bf16.mxu1 %v4092_v28 }
 0x100   : > { %740 = vst.msk [vmem:[#allocation2 + $0x30] sm:$0xff] %vm733_vm2, %v707_v38  ;;  %v583_v43 = vadd.f32 %v5450_v9, %v582_v42  ;;  %v5087_v10 = vpack.i.bf16 %v768_v7, %v772_v2 }
 0x101   : > { %v710_v46 = vmax.f32 %v588_v41, 0.0 }
 0x102   : > { %v709_v50 = vmax.f32 %v583_v43, 0.0  ;;  %v3984_v51 = vpop.f32.mrb[10].mxu0 }
 0x103   : > { %743 = vst.msk [vmem:[#allocation2 + $0x48] sm:$0xff] %vm733_vm2, %v710_v46  ;;  %v598_v53 = vadd.f32 %v3984_v51, %v5450_v9  ;;  %v592_v54 = vpop.f32.mrb[11].mxu0  ;;  %v780_v59 = vld [vmem:[#allocation2 + $0x21] ss:$2 sm:$0x7f] }
 0x104   : > { %742 = vst.msk [vmem:[#allocation2 + $0x40] sm:$0xff] %vm733_vm2, %v709_v50  ;;  %v593_v55 = vadd.f32 %v5450_v9, %v592_v54 }
 0x105   : > { %v712_v56 = vmax.f32 %v598_v53, 0.0 }
 0x106   : > { %v711_v57 = vmax.f32 %v593_v55, 0.0  ;;  %v3987_v58 = vpop.f32.mrb[12].mxu0 }
 0x107   : > { %745 = vst.msk [vmem:[#allocation2 + $0x58] sm:$0xff] %vm733_vm2, %v712_v56  ;;  %v608_v60 = vadd.f32 %v3987_v58, %v5450_v9  ;;  %v602_v61 = vpop.f32.mrb[13].mxu0  ;;  %v804_v62 = vld [vmem:[#allocation2 + $0x30] ss:$2 sm:$0x7f] }
 0x108   : > { %744 = vst.msk [vmem:[#allocation2 + $0x50] sm:$0xff] %vm733_vm2, %v711_v57  ;;  %v603_v63 = vadd.f32 %v5450_v9, %v602_v61  ;;  %v5082_v0 = vpack.i.bf16 %v780_v59, %v804_v62 }
 0x109   : > { %v714_v1 = vmax.f32 %v608_v60, 0.0 }
 0x10a   : > { %v713_v3 = vmax.f32 %v603_v63, 0.0  ;;  %v3990_v4 = vpop.f32.mrb[14].mxu0  ;;  %5083 = vrot.lane.b32.xlu0 %v5082_v0, %s5187_s24 }
 0x10b   : > { %747 = vst.msk [vmem:[#allocation2 + $0x68] sm:$0xff] %vm733_vm2, %v714_v1  ;;  %v618_v5 = vadd.f32 %v3990_v4, %v5450_v9  ;;  %v612_v6 = vpop.f32.mrb[15].mxu0  ;;  %v812_v14 = vld [vmem:[#allocation2 + $0x41] ss:$2 sm:$0x7f] }
 0x10c   : > { %746 = vst.msk [vmem:[#allocation2 + $0x60] sm:$0xff] %vm733_vm2, %v713_v3  ;;  %v613_v8 = vadd.f32 %v5450_v9, %v612_v6  ;;  %v808_v6 = vld [vmem:[#allocation2 + $0x32] ss:$2 sm:$0x7f] }
 0x10d   : > { %v716_v11 = vmax.f32 %v618_v5, 0.0 }
 0x10e   : > { %v715_v12 = vmax.f32 %v613_v8, 0.0  ;;  %v3993_v13 = vpop.f32.mrb[16].mxu0  ;;  %5088 = vrot.lane.b32.xlu0 %v5087_v10, %s5187_s24 }
 0x10f   : > { %749 = vst.msk [vmem:[#allocation2 + $0x78] sm:$0xff] %vm733_vm2, %v716_v11  ;;  %v628_v15 = vadd.f32 %v3993_v13, %v5450_v9  ;;  %v622_v16 = vpop.f32.mrb[17].mxu0  ;;  %v831_v17 = vld [vmem:[#allocation2 + $0x50] ss:$2 sm:$0x7f] }
 0x110   : > { %748 = vst.msk [vmem:[#allocation2 + $0x70] sm:$0xff] %vm733_vm2, %v715_v12  ;;  %v623_v18 = vadd.f32 %v5450_v9, %v622_v16  ;;  %v5092_v19 = vpack.i.bf16 %v812_v14, %v831_v17  ;;  %v835_v11 = vld [vmem:[#allocation2 + $0x52] ss:$2 sm:$0x7f] }
 0x111   : > { %v718_v20 = vmax.f32 %v628_v15, 0.0 }
 0x112   : > { %v717_v21 = vmax.f32 %v623_v18, 0.0  ;;  %v3996_v22 = vpop.f32.mrb[18].mxu0  ;;  %5093 = vrot.lane.b32.xlu1 %v5092_v19, %s5187_s24 }
 0x113   : > { %751 = vst.msk [vmem:[#allocation2 + $0x88] sm:$0xff] %vm733_vm2, %v718_v20  ;;  %v638_v23 = vadd.f32 %v3996_v22, %v5450_v9  ;;  %v632_v24 = vpop.f32.mrb[19].mxu0  ;;  %v839_v32 = vld [vmem:[#allocation2 + $0x61] ss:$2 sm:$0x7f] }
 0x114   : > { %750 = vst.msk [vmem:[#allocation2 + $0x80] sm:$0xff] %vm733_vm2, %v717_v21  ;;  %v633_v27 = vadd.f32 %v5450_v9, %v632_v24  ;;  %v778_v21 = vld [vmem:[#allocation2 + $0x20] ss:$2 sm:$0x7f] }
 0x115   : > { %v720_v29 = vmax.f32 %v638_v23, 0.0  ;;  %v5556_v22 = vld [vmem:[#allocation2 + $0x22] ss:$2 sm:$0x7f] }
 0x116   : > { %v719_v30 = vmax.f32 %v633_v27, 0.0  ;;  %v3999_v31 = vpop.f32.mrb[20].mxu0  ;;  %v1118_v27 = vld [vmem:[%s8575_s3 + $0x108] sm:$0xff] }
 0x117   : > { %753 = vst.msk [vmem:[#allocation2 + $0x98] sm:$0xff] %vm733_vm2, %v720_v29  ;;  %v648_v33 = vadd.f32 %v3999_v31, %v5450_v9  ;;  %v642_v34 = vpop.f32.mrb[21].mxu0  ;;  %v858_v35 = vld [vmem:[#allocation2 + $0x70] ss:$2 sm:$0x7f] }
 0x118   : > { %752 = vst.msk [vmem:[#allocation2 + $0x90] sm:$0xff] %vm733_vm2, %v719_v30  ;;  %v643_v36 = vadd.f32 %v5450_v9, %v642_v34  ;;  %v5097_v37 = vpack.i.bf16 %v839_v32, %v858_v35  ;;  %v862_v16 = vld [vmem:[#allocation2 + $0x72] ss:$2 sm:$0x7f] }
 0x119   : > { %v722_v38 = vmax.f32 %v648_v33, 0.0  ;;  %v770_v30 = vld [vmem:[#allocation2 + $0x2] ss:$2 sm:$0x7f]  ;;  %v1135_v31 = vld [vmem:[%s8575_s3 + $0x190] sm:$0xff]  ;;  %v1136_v32 = vld [vmem:[%s8575_s3 + $0x198] sm:$0xff] }
 0x11a   : > { %v721_v39 = vmax.f32 %v643_v36, 0.0  ;;  %v4002_v40 = vpop.f32.mrb[22].mxu0  ;;  %5098 = vrot.lane.b32.xlu1 %v5097_v37, %s5187_s24  ;;  %v766_v34 = vld [vmem:[#allocation2] ss:$2 sm:$0x7f] }
 0x11b   : > { %755 = vst.msk [vmem:[#allocation2 + $0xa8] sm:$0xff] %vm733_vm2, %v722_v38  ;;  %v658_v41 = vadd.f32 %v4002_v40, %v5450_v9  ;;  %v652_v42 = vpop.f32.mrb[23].mxu0  ;;  %v866_v47 = vld [vmem:[#allocation2 + $0x81] ss:$2 sm:$0x7f]  ;;  %v4094_v38 = vpack.c.bf16 %v1118_v27, %v1117_v26  ;;  %v1127_v27 = vld [vmem:[%s8575_s3 + $0x150] sm:$0xff] }
 0x11c   : > { %754 = vst.msk [vmem:[#allocation2 + $0xa0] sm:$0xff] %vm733_vm2, %v721_v39  ;;  %v653_v43 = vadd.f32 %v5450_v9, %v652_v42  ;;  %v4096_v42 = vpack.c.bf16 %v1136_v32, %v1135_v31  ;;  %v1145_v31 = vld [vmem:[%s8575_s3 + $0x1e0] sm:$0xff]  ;;  %v1146_v32 = vld [vmem:[%s8575_s3 + $0x1e8] sm:$0xff] }
 0x11d   : > { %v724_v44 = vmax.f32 %v658_v41, 0.0 }
 0x11e   : > { %v723_v45 = vmax.f32 %v653_v43, 0.0  ;;  %v4005_v46 = vpop.f32.mrb[24].mxu0  ;;  %v1119_v43 = vld [vmem:[%s8575_s3 + $0x110] sm:$0xff] }
 0x11f   : > { %757 = vst.msk [vmem:[#allocation2 + $0xb8] sm:$0xff] %vm733_vm2, %v724_v44  ;;  %v668_v48 = vadd.f32 %v4005_v46, %v5450_v9  ;;  %v662_v49 = vpop.f32.mrb[25].mxu0  ;;  %v885_v50 = vld [vmem:[#allocation2 + $0x90] ss:$2 sm:$0x7f] }
 0x120   : > { %756 = vst.msk [vmem:[#allocation2 + $0xb0] sm:$0xff] %vm733_vm2, %v723_v45  ;;  %v663_v51 = vadd.f32 %v5450_v9, %v662_v49  ;;  %v5102_v52 = vpack.i.bf16 %v866_v47, %v885_v50  ;;  %v889_v12 = vld [vmem:[#allocation2 + $0x92] ss:$2 sm:$0x7f]  ;;  %v1137_v47 = vld [vmem:[%s8575_s3 + $0x1a0] sm:$0xff] }
 0x121   : > { %v726_v53 = vmax.f32 %v668_v48, 0.0  ;;  %v1120_v44 = vld [vmem:[%s8575_s3 + $0x118] sm:$0xff]  ;;  %v1138_v48 = vld [vmem:[%s8575_s3 + $0x1a8] sm:$0xff] }
 0x122   : > { %v725_v54 = vmax.f32 %v663_v51, 0.0  ;;  %v4008_v55 = vpop.f32.mrb[26].mxu0  ;;  %5103 = vrot.lane.b32.xlu0 %v5102_v52, %s5187_s24  ;;  %v5592_v49 = vld [vmem:[#allocation2 + $0x42] ss:$2 sm:$0x7f] }
 0x123   : > { %759 = vst.msk [vmem:[#allocation2 + $0xc8] sm:$0xff] %vm733_vm2, %v726_v53  ;;  %v678_v56 = vadd.f32 %v4008_v55, %v5450_v9  ;;  %v672_v57 = vpop.f32.mrb[27].mxu0  ;;  %v893_v62 = vld [vmem:[#allocation2 + $0xa1] ss:$2 sm:$0x7f]  ;;  %v4098_v53 = vpack.c.bf16 %v1120_v44, %v1119_v43  ;;  %v1147_v43 = vld [vmem:[%s8575_s3 + $0x1f0] sm:$0xff] }
 0x124   : > { %758 = vst.msk [vmem:[#allocation2 + $0xc0] sm:$0xff] %vm733_vm2, %v725_v54  ;;  %v673_v58 = vadd.f32 %v5450_v9, %v672_v57  ;;  %v810_v50 = vld [vmem:[#allocation2 + $0x40] ss:$2 sm:$0x7f]  ;;  %v1148_v44 = vld [vmem:[%s8575_s3 + $0x1f8] sm:$0xff] }
 0x125   : > { %v728_v59 = vmax.f32 %v678_v56, 0.0  ;;  %v4100_v56 = vpack.c.bf16 %v1138_v48, %v1137_v47  ;;  %v1121_v57 = vld [vmem:[%s8575_s3 + $0x120] sm:$0xff] }
 0x126   : > { %v727_v60 = vmax.f32 %v673_v58, 0.0  ;;  %v4011_v61 = vpop.f32.mrb[28].mxu0  ;;  %v1122_v58 = vld [vmem:[%s8575_s3 + $0x128] sm:$0xff] }
 0x127   : > { %761 = vst.msk [vmem:[#allocation2 + $0xd8] sm:$0xff] %vm733_vm2, %v728_v59  ;;  %v688_v63 = vadd.f32 %v4011_v61, %v5450_v9  ;;  %v682_v0 = vpop.f32.mrb[29].mxu0  ;;  %v912_v1 = vld [vmem:[#allocation2 + $0xb0] ss:$2 sm:$0x7f] }
 0x128   : > { %760 = vst.msk [vmem:[#allocation2 + $0xd0] sm:$0xff] %vm733_vm2, %v727_v60  ;;  %v683_v2 = vadd.f32 %v5450_v9, %v682_v0  ;;  %v5107_v3 = vpack.i.bf16 %v893_v62, %v912_v1  ;;  %v776_v9 = vld [vmem:[#allocation2 + $0x12] ss:$2 sm:$0x7f] }
 0x129   : > { %v730_v4 = vmax.f32 %v688_v63, 0.0  ;;  %v916_v17 = vld [vmem:[#allocation2 + $0xb2] ss:$2 sm:$0x7f]  ;;  %v4102_v63 = vpack.c.bf16 %v1122_v58, %v1121_v57 }
 0x12a   : > { %v729_v5 = vmax.f32 %v683_v2, 0.0  ;;  %5108 = vrot.lane.b32.xlu1 %v5107_v3, %s5187_s24  ;;  %v1139_v59 = vld [vmem:[%s8575_s3 + $0x1b0] sm:$0xff]  ;;  %v1140_v60 = vld [vmem:[%s8575_s3 + $0x1b8] sm:$0xff]  ;;  %v5688_v57 = vld [vmem:[#allocation2 + $0xa2] ss:$2 sm:$0x7f] }
 0x12b   : > { %763 = vst.msk [vmem:[#allocation2 + $0xe8] sm:$0xff] %vm733_vm2, %v730_v4  ;;  %v920_v7 = vld [vmem:[#allocation2 + $0xc1] ss:$2 sm:$0x7f]  ;;  %v4104_v1 = vpack.c.bf16 %v1140_v60, %v1139_v59  ;;  %v1123_v2 = vld [vmem:[%s8575_s3 + $0x130] sm:$0xff]  ;;  %v1124_v3 = vld [vmem:[%s8575_s3 + $0x138] sm:$0xff] }
 0x12c   : > { %762 = vst.msk [vmem:[#allocation2 + $0xe0] sm:$0xff] %vm733_vm2, %v729_v5 }
 0x12e   : > { %820 = vrot.lane.b32.xlu1 %v808_v6, %s5187_s24  ;;  %v1141_v6 = vld [vmem:[%s8575_s3 + $0x1c0] sm:$0xff] }
 0x12f   : > { %v939_v8 = vld [vmem:[#allocation2 + $0xd0] ss:$2 sm:$0x7f] }
 0x130   : > { %v5112_v10 = vpack.i.bf16 %v920_v7, %v939_v8  ;;  %v943_v14 = vld [vmem:[#allocation2 + $0xd2] ss:$2 sm:$0x7f]  ;;  %v1142_v7 = vld [vmem:[%s8575_s3 + $0x1c8] sm:$0xff] }
 0x131   : > { %v837_v8 = vld [vmem:[#allocation2 + $0x60] ss:$2 sm:$0x7f] }
 0x132   : > { %847 = vrot.lane.b32.xlu1 %v835_v11, %s5187_s24  ;;  %5113 = vrot.lane.b32.xlu0 %v5112_v10, %s5187_s24  ;;  %v5626_v10 = vld [vmem:[#allocation2 + $0x62] ss:$2 sm:$0x7f] }
 0x133   : > { %v947_v13 = vld [vmem:[#allocation2 + $0xe1] ss:$2 sm:$0x7f] }
 0x134   : > { %v5117_v15 = vpack.i.bf16 %v943_v14, %v947_v13 }
 0x136   : > { %901 = vrot.lane.b32.xlu1 %v889_v12, %s5187_s24  ;;  %792 = vrot.lane.b32.xlu0 %v776_v9, %s5187_s24  ;;  %v4106_v12 = vpack.c.bf16 %v1124_v3, %v1123_v2  ;;  %v5188_v3 = vmov 0.0|0.0  }
 0x13a   : > { %5118 = vrot.lane.b32.xlu1 %v5117_v15, %s5187_s24  ;;  %874 = vrot.lane.b32.xlu0 %v862_v16, %s5187_s24  ;;  %v4108_v15 = vpack.c.bf16 %v1142_v7, %v1141_v6  ;;  %v1125_v16 = vld [vmem:[%s8575_s3 + $0x140] sm:$0xff] }
 0x13b   : > { %v918_v6 = vld [vmem:[#allocation2 + $0xc0] ss:$2 sm:$0x7f] }
 0x13c   : > { %v5699_v7 = vld [vmem:[#allocation2 + $0xc2] ss:$2 sm:$0x7f] }
 0x13e   : > { %928 = vrot.lane.b32.xlu0 %v916_v17, %s5187_s24  ;;  %v1126_v17 = vld [vmem:[%s8575_s3 + $0x148] sm:$0xff]  ;;  %s5129_s24 = scalar_lea.vmem %s5128_s23, 64 }
 0x17c   : > { %v5084_v18 = vpop.permute.xlu0 %5083 }
 0x17d   : > { %v5086_v19 = vunpack.i.h.bf16 %v5084_v18  ;;  %v5085_v20 = vunpack.i.l.bf16 %v5084_v18  ;;  %v1143_v18 = vld [vmem:[%s8575_s3 + $0x1d0] sm:$0xff] }
 0x17f   : > { %v5559_v23 = vsel %vm733_vm2, %v778_v21, %v5086_v19  ;;  %v827_v24 = vsel %vm733_vm2, %v5556_v22, %v5085_v20  ;;  %v1144_v19 = vld [vmem:[%s8575_s3 + $0x1d8] sm:$0xff] }
 0x180   : > { %v5089_v25 = vpop.permute.xlu0 %5088  ;;  %v971_v33 = vrot.slane %v827_v24, 1  ;;  %v970_v35 = vrot.slane %v5559_v23, 1  ;;  %v4110_v24 = vpack.c.bf16 %v1126_v17, %v1125_v16  ;;  %v4112_v26 = vpack.c.bf16 %v1144_v19, %v1143_v18  ;;  %v806_v19 = vld [vmem:[#allocation2 + $0x31] ss:$2 sm:$0x7f] }
 0x181   : > { %v5091_v28 = vunpack.i.h.bf16 %v5089_v25  ;;  %v5090_v29 = vunpack.i.l.bf16 %v5089_v25 }
 0x183   : > { %v800_v36 = vsel %vm733_vm2, %v770_v30, %v5090_v29  ;;  %v799_v37 = vsel %vm733_vm2, %v766_v34, %v5091_v28  ;;  %v1128_v28 = vld [vmem:[%s8575_s3 + $0x158] sm:$0xff]  ;;  %v5660_v34 = vld [vmem:[#allocation2 + $0x82] ss:$2 sm:$0x7f] }
 0x184   : > { %v5094_v39 = vpop.permute.xlu1 %5093  ;;  %v1052_v40 = vsel %vm1050_vm3, %v800_v36, %v971_v33  ;;  %v1051_v41 = vsel %vm1050_vm3, %v799_v37, %v970_v35  ;;  %v4114_v37 = vpack.c.bf16 %v1128_v28, %v1127_v27 }
 0x185   : > { %v5096_v45 = vunpack.i.h.bf16 %v5094_v39  ;;  %v5095_v46 = vunpack.i.l.bf16 %v5094_v39  ;;  %1248 = vmatprep.mubr.f32.mxu1 %v1052_v40  ;;  %v4116_v40 = vpack.c.bf16 %v1146_v32, %v1145_v31 }
 0x186   : > { %1249 = vmatmul.mubr.f32.vlgmr.msra.gmra.mrb[0].mxu1 %v1051_v41  ;;  %v1129_v41 = vld [vmem:[%s8575_s3 + $0x160] sm:$0xff] }
 0x187   : > { %v5595_v51 = vsel %vm733_vm2, %v810_v50, %v5096_v45  ;;  %v854_v52 = vsel %vm733_vm2, %v5592_v49, %v5095_v46  ;;  %4095 = vmatpush3.bf16.msra.mxu1 %v4094_v38  ;;  %v4120_v50 = vpack.c.bf16 %v1148_v44, %v1147_v43  ;;  %v1153_v44 = vld [vmem:[%s8575_s3 + $0x220] sm:$0xff] }
 0x188   : > { %v985_v54 = vrot.slane %v854_v52, 2  ;;  %v984_v55 = vrot.slane %v5595_v51, 2  ;;  %4097 = vmatprep.subr.bf16.mxu1 %v4096_v42  ;;  %v1130_v42 = vld [vmem:[%s8575_s3 + $0x168] sm:$0xff]  ;;  %v1131_v52 = vld [vmem:[%s8575_s3 + $0x170] sm:$0xff]  ;;  %v973_v18 = vrot.slane %v5595_v51, 1 }
 0x189   : > { %v4118_v47 = vpack.c.bf16 %v1130_v42, %v1129_v41 }
 0x18a   : > { %v1058_v61 = vsel %vm1056_vm4, %v971_v33, %v985_v54  ;;  %v1057_v62 = vsel %vm1056_vm4, %v970_v35, %v984_v55  ;;  %v864_v33 = vld [vmem:[#allocation2 + $0x80] ss:$2 sm:$0x7f]  ;;  %v1054_v51 = vsel %vm1050_vm3, %v5559_v23, %v973_v18 }
 0x18b   : > { %1253 = vmatprep.mubr.f32.mxu1 %v1058_v61  ;;  %4099 = vmatpush3.bf16.msra.mxu1 %v4098_v53  ;;  %v1132_v53 = vld [vmem:[%s8575_s3 + $0x178] sm:$0xff] }
 0x18c   : > { %v5099_v0 = vpop.permute.xlu1 %5098  ;;  %1254 = vmatmul.mubr.f32.gmra.mrb[2].mxu1 %v1057_v62  ;;  %4101 = vmatprep.subr.bf16.mxu1 %v4100_v56  ;;  %v891_v56 = vld [vmem:[#allocation2 + $0xa0] ss:$2 sm:$0x7f]  ;;  %v4122_v60 = vpack.c.bf16 %v1132_v53, %v1131_v52 }
 0x18d   : > { %v5101_v4 = vunpack.i.h.bf16 %v5099_v0  ;;  %v5100_v5 = vunpack.i.l.bf16 %v5099_v0 }
 0x18f   : > { %v5629_v11 = vsel %vm733_vm2, %v837_v8, %v5101_v4  ;;  %v881_v9 = vsel %vm733_vm2, %v5626_v10, %v5100_v5  ;;  %4103 = vmatpush3.bf16.msra.mxu1 %v4102_v63 }
 0x190   : > { %v999_v13 = vrot.slane %v881_v9, 3  ;;  %v998_v14 = vrot.slane %v5629_v11, 3  ;;  %4105 = vmatprep.subr.bf16.mxu1 %v4104_v1 }
 0x192   : > { %v1064_v20 = vsel %vm1062_vm5, %v985_v54, %v999_v13  ;;  %v1063_v21 = vsel %vm1062_vm5, %v984_v55, %v998_v14 }
 0x193   : > { %1258 = vmatprep.mubr.f32.mxu1 %v1064_v20  ;;  %4107 = vmatpush3.bf16.msra.mxu1 %v4106_v12 }
 0x194   : > { %v5104_v25 = vpop.permute.xlu0 %5103  ;;  %1259 = vmatmul.mubr.f32.gmra.mrb[4].mxu1 %v1063_v21  ;;  %4109 = vmatprep.subr.bf16.mxu1 %v4108_v15  ;;  %v1149_v21 = vld [vmem:[%s8575_s3 + $0x200] sm:$0xff] }
 0x195   : > { %v5106_v29 = vunpack.i.h.bf16 %v5104_v25  ;;  %v5105_v30 = vunpack.i.l.bf16 %v5104_v25  ;;  %v833_v25 = vld [vmem:[#allocation2 + $0x51] ss:$2 sm:$0x7f] }
 0x197   : > { %v5663_v35 = vsel %vm733_vm2, %v864_v33, %v5106_v29  ;;  %v908_v36 = vsel %vm733_vm2, %v5660_v34, %v5105_v30  ;;  %4111 = vmatpush3.bf16.msra.mxu1 %v4110_v24  ;;  %v1150_v24 = vld [vmem:[%s8575_s3 + $0x208] sm:$0xff]  ;;  %v987_v30 = vrot.slane %v5629_v11, 2 }
 0x198   : > { %v1013_v38 = vrot.slane %v908_v36, 4  ;;  %v1012_v39 = vrot.slane %v5663_v35, 4  ;;  %4113 = vmatprep.subr.bf16.mxu1 %v4112_v26  ;;  %v774_v26 = vld [vmem:[#allocation2 + $0x11] ss:$2 sm:$0x7f]  ;;  %v4125_v33 = vpack.c.bf16 %v1150_v24, %v1149_v21  ;;  %v1001_v41 = vrot.slane %v5663_v35, 3 }
 0x199   : > { %v1151_v36 = vld [vmem:[%s8575_s3 + $0x210] sm:$0xff]  ;;  %v1060_v11 = vsel %vm1056_vm4, %v973_v18, %v987_v30  ;;  %v974_v18 = vrot.slane %v5592_v49, 1  ;;  %v988_v21 = vrot.slane %v5626_v10, 2  ;;  %v1002_v49 = vrot.slane %v5660_v34, 3 }
 0x19a   : > { %v1069_v45 = vsel %vm472_vm1, %v999_v13, %v1013_v38  ;;  %v1068_v46 = vsel %vm472_vm1, %v998_v14, %v1012_v39  ;;  %v1066_v35 = vsel %vm1062_vm5, %v987_v30, %v1001_v41  ;;  %v949_v34 = vld [vmem:[#allocation2 + $0xe2] ss:$2 sm:$0x7f] }
 0x19b   : > { %1263 = vmatprep.mubr.f32.mxu1 %v1069_v45  ;;  %4115 = vmatpush3.bf16.msra.mxu1 %v4114_v37  ;;  %v1152_v37 = vld [vmem:[%s8575_s3 + $0x218] sm:$0xff]  ;;  %v1154_v45 = vld [vmem:[%s8575_s3 + $0x228] sm:$0xff]  ;;  %v1061_v24 = vsel %vm1056_vm4, %v974_v18, %v988_v21  ;;  %v1608_v30 = vld [vmem:[%s8577_s5] sm:$0xff] }
 0x19c   : > { %v5109_v48 = vpop.permute.xlu1 %5108  ;;  %1264 = vmatmul.mubr.f32.gmra.mrb[6].mxu1 %v1068_v46  ;;  %4117 = vmatprep.subr.bf16.mxu1 %v4116_v40  ;;  %v860_v40 = vld [vmem:[#allocation2 + $0x71] ss:$2 sm:$0x7f]  ;;  %v4128_v42 = vpack.c.bf16 %v1152_v37, %v1151_v36 }
 0x19d   : > { %v5111_v54 = vunpack.i.h.bf16 %v5109_v48  ;;  %v5110_v55 = vunpack.i.l.bf16 %v5109_v48  ;;  %v1615_v36 = vld [vmem:[%s8577_s5 + $0x38] sm:$0xff] }
 0x19f   : > { %v5691_v58 = vsel %vm733_vm2, %v891_v56, %v5111_v54  ;;  %v935_v59 = vsel %vm733_vm2, %v5688_v57, %v5110_v55  ;;  %4119 = vmatpush3.bf16.msra.mxu1 %v4118_v47  ;;  %v4131_v54 = vpack.c.bf16 %v1154_v45, %v1153_v44  ;;  %v1155_v56 = vld [vmem:[%s8575_s3 + $0x230] sm:$0xff]  ;;  %v1621_v45 = vld [vmem:[%s8577_s5 + $0x68] sm:$0xff] }
 0x1a0   : > { %v1027_v61 = vrot.slane %v935_v59, 5  ;;  %v1026_v62 = vrot.slane %v5691_v58, 5  ;;  %4121 = vmatprep.subr.bf16.mxu1 %v4120_v50  ;;  %v821_v1 = vpop.permute.xlu1 %820  ;;  %v1015_v48 = vrot.slane %v5691_v58, 4  ;;  %v887_v50 = vld [vmem:[#allocation2 + $0x91] ss:$2 sm:$0x7f] }
 0x1a1   : > { %v828_v20 = vsel %vm733_vm2, %v806_v19, %v821_v1  ;;  %v1156_v59 = vld [vmem:[%s8575_s3 + $0x238] sm:$0xff]  ;;  %v5190_v19 = vmov 0.0  }
 0x1a2   : > { %v1075_v63 = vsel %vm1073_vm6, %v1013_v38, %v1027_v61  ;;  %v1074_v0 = vsel %vm1073_vm6, %v1012_v39, %v1026_v62  ;;  %v972_v31 = vrot.slane %v828_v20, 1  ;;  %v1055_v20 = vsel %vm1050_vm3, %v5556_v22, %v974_v18 }
 0x1a3   : > { %1268 = vmatprep.mubr.f32.mxu1 %v1075_v63  ;;  %4123 = vmatpush3.bf16.msra.mxu1 %v4122_v60  ;;  %v914_v60 = vld [vmem:[#allocation2 + $0xb1] ss:$2 sm:$0x7f]  ;;  %v1071_v63 = vsel %vm472_vm1, %v1001_v41, %v1015_v48  ;;  %v1016_v22 = vrot.slane %v5688_v57, 4 }
 0x1a4   : > { %v5114_v2 = vpop.permute.xlu0 %5113  ;;  %1269 = vmatmul.mubr.f32.gmra.mrb[8].mxu1 %v1074_v0  ;;  %4124 = vmatprep.subr.bf16.mxu1 %v5188_v3  ;;  %v848_v14 = vpop.permute.xlu1 %847 }
 0x1a5   : > { %v5116_v4 = vunpack.i.h.bf16 %v5114_v2  ;;  %v5115_v5 = vunpack.i.l.bf16 %v5114_v2  ;;  %v855_v27 = vsel %vm733_vm2, %v833_v25, %v848_v14  ;;  %v941_v14 = vld [vmem:[#allocation2 + $0xd1] ss:$2 sm:$0x7f]  ;;  %v1067_v25 = vsel %vm1062_vm5, %v988_v21, %v1002_v49 }
 0x1a6   : > { %v986_v38 = vrot.slane %v855_v27, 2  ;;  %v1072_v10 = vsel %vm472_vm1, %v1002_v49, %v1016_v22  ;;  %v1642_v21 = vld [vmem:[%s8577_s5 + $0x110] sm:$0xff]  ;;  %v1645_v49 = vld [vmem:[%s8577_s5 + $0x128] sm:$0xff] }
 0x1a7   : > { %v5702_v8 = vsel %vm733_vm2, %v918_v6, %v5116_v4  ;;  %v962_v9 = vsel %vm733_vm2, %v5699_v7, %v5115_v5  ;;  %v4134_v4 = vpack.c.bf16 %v1156_v59, %v1155_v56  ;;  %v1626_v56 = vld [vmem:[%s8577_s5 + $0x90] sm:$0xff] }
 0x1a8   : > { %v1041_v12 = vrot.slane %v962_v9, 6  ;;  %v1040_v13 = vrot.slane %v5702_v8, 6  ;;  %v793_v17 = vpop.permute.xlu0 %792  ;;  %v902_v28 = vpop.permute.xlu1 %901  ;;  %v1059_v47 = vsel %vm1056_vm4, %v972_v31, %v986_v38  ;;  %v1029_v0 = vrot.slane %v5702_v8, 5 }
 0x1a9   : > { %v801_v29 = vsel %vm733_vm2, %v774_v26, %v793_v17  ;;  %v909_v55 = vsel %vm733_vm2, %v887_v50, %v902_v28  ;;  %v1030_v26 = vrot.slane %v5699_v7, 5  ;;  %v1044_v28 = vrot.slane %v949_v34, 6  ;;  %v1609_v7 = vld [vmem:[%s8577_s5 + $0x8] sm:$0xff] }
 0x1aa   : > { %v1081_v15 = vsel %vm1079_vm7, %v1027_v61, %v1041_v12  ;;  %v1080_v16 = vsel %vm1079_vm7, %v1026_v62, %v1040_v13  ;;  %v1053_v39 = vsel %vm1050_vm3, %v801_v29, %v972_v31  ;;  %v945_v61 = vld [vmem:[#allocation2 + $0xe0] ss:$2 sm:$0x7f]  ;;  %v1014_v1 = vrot.slane %v909_v55, 4  ;;  %v1611_v29 = vld [vmem:[%s8577_s5 + $0x18] sm:$0xff]  ;;  %v1610_v31 = vld [vmem:[%s8577_s5 + $0x10] sm:$0xff] }
 0x1ab   : > { %1273 = vmatprep.mubr.f32.mxu1 %v1081_v15  ;;  %v1078_v27 = vsel %vm1073_vm6, %v1016_v22, %v1030_v26  ;;  %v1084_v57 = vsel %vm1079_vm7, %v1030_v26, %v1044_v28  ;;  %v1624_v55 = vld [vmem:[%s8577_s5 + $0x80] sm:$0xff]  ;;  %v1646_v26 = vld [vmem:[%s8577_s5 + $0x130] sm:$0xff] }
 0x1ac   : > { %1274 = vmatmul.mubr.f32.gmra.mrb[10].mxu1 %v1080_v16  ;;  %v875_v32 = vpop.permute.xlu0 %874  ;;  %v5119_v43 = vpop.permute.xlu1 %5118  ;;  %v4154_v59 = vpack.c.bf16 %v1626_v56, %v1624_v55  ;;  %v1669_v55 = vld [vmem:[%s8577_s5 + $0x1e8] sm:$0xff]  ;;  %v1671_v56 = vld [vmem:[%s8577_s5 + $0x1f8] sm:$0xff] }
 0x1ad   : > { %1278 = vmatprep.mubr.f32.mxu1 %v1041_v12  ;;  %v882_v23 = vsel %vm733_vm2, %v860_v40, %v875_v32  ;;  %v5120_v52 = vunpack.i.l.bf16 %v5119_v43  ;;  %v5121_v5 = vunpack.i.h.bf16 %v5119_v43  ;;  %v4138_v32 = vpack.c.bf16 %v1610_v31, %v1608_v30  ;;  %v1618_v43 = vld [vmem:[%s8577_s5 + $0x50] sm:$0xff]  ;;  %v1653_v30 = vld [vmem:[%s8577_s5 + $0x168] sm:$0xff]  ;;  %v1655_v31 = vld [vmem:[%s8577_s5 + $0x178] sm:$0xff] }
 0x1ae   : > { %v1000_v46 = vrot.slane %v882_v23, 3  ;;  %v1617_v23 = vld [vmem:[%s8577_s5 + $0x48] sm:$0xff] }
 0x1af   : > { %v964_v2 = vsel %vm733_vm2, %v945_v61, %v5120_v52  ;;  %v963_v8 = vsel %vm733_vm2, %v941_v14, %v5121_v5  ;;  %v1625_v52 = vld [vmem:[%s8577_s5 + $0x88] sm:$0xff]  ;;  %v1632_v5 = vld [vmem:[%s8577_s5 + $0xc0] sm:$0xff] }
 0x1b0   : > { %1279 = vmatmul.mubr.f32.gmra.mrb[12].mxu1 %v1040_v13  ;;  %v929_v53 = vpop.permute.xlu0 %928  ;;  %v1065_v58 = vsel %vm1062_vm5, %v986_v38, %v1000_v46  ;;  %v1070_v9 = vsel %vm472_vm1, %v1000_v46, %v1014_v1  ;;  %v1043_v12 = vrot.slane %v964_v2, 6  ;;  %v1077_v13 = vsel %vm1073_vm6, %v1015_v48, %v1029_v0  ;;  %v1612_v38 = vld [vmem:[%s8577_s5 + $0x20] sm:$0xff]  ;;  %v1623_v46 = vld [vmem:[%s8577_s5 + $0x78] sm:$0xff]  ;;  %v1622_v48 = vld [vmem:[%s8577_s5 + $0x70] sm:$0xff] }
 0x1b1   : > { %1348 = vmatprep.mubr.f32.mxu1 %v1054_v51  ;;  %v936_v62 = vsel %vm733_vm2, %v914_v60, %v929_v53  ;;  %v1042_v17 = vrot.slane %v963_v8, 6  ;;  %v4136_v51 = vpack.c.bf16 %v1611_v29, %v1609_v7  ;;  %v1627_v53 = vld [vmem:[%s8577_s5 + $0x98] sm:$0xff]  ;;  %v1629_v60 = vld [vmem:[%s8577_s5 + $0xa8] sm:$0xff]  ;;  %v1636_v8 = vld [vmem:[%s8577_s5 + $0xe0] sm:$0xff] }
 0x1b2   : > { %v1028_v6 = vrot.slane %v936_v62, 5  ;;  %v1083_v16 = vsel %vm1079_vm7, %v1029_v0, %v1043_v12  ;;  %v1628_v62 = vld [vmem:[%s8577_s5 + $0xa0] sm:$0xff]  ;;  %v1635_v2 = vld [vmem:[%s8577_s5 + $0xd8] sm:$0xff]  ;;  %v1650_v29 = vld [vmem:[%s8577_s5 + $0x150] sm:$0xff] }
 0x1b3   : > { %v1648_v7 = vld [vmem:[%s8577_s5 + $0x140] sm:$0xff] }
 0x1b4   : > { %1349 = vmatmul.mubr.f32.vlgmr.msra.gmra.mrb[14].mxu1 %v1053_v39  ;;  %v1076_v15 = vsel %vm1073_vm6, %v1014_v1, %v1028_v6  ;;  %v1614_v39 = vld [vmem:[%s8577_s5 + $0x30] sm:$0xff]  ;;  %v1633_v1 = vld [vmem:[%s8577_s5 + $0xc8] sm:$0xff] }
 0x1b5   : > { %4126 = vmatpush3.bf16.msra.mxu1 %v4125_v33  ;;  %1353 = vmatprep.mubr.f32.mxu1 %v1060_v11  ;;  %v1613_v33 = vld [vmem:[%s8577_s5 + $0x28] sm:$0xff]  ;;  %v4142_v40 = vpack.c.bf16 %v1614_v39, %v1612_v38  ;;  %v1619_v11 = vld [vmem:[%s8577_s5 + $0x58] sm:$0xff] }
 0x1b6   : > { %4127 = vmatprep.subr.bf16.mxu1 %v5188_v3  ;;  %v4140_v37 = vpack.c.bf16 %v1615_v36, %v1613_v33  ;;  %v4144_v41 = vpack.c.bf16 %v1619_v11, %v1617_v23  ;;  %v1652_v33 = vld [vmem:[%s8577_s5 + $0x160] sm:$0xff]  ;;  %v1654_v36 = vld [vmem:[%s8577_s5 + $0x170] sm:$0xff]  ;;  %v1657_v38 = vld [vmem:[%s8577_s5 + $0x188] sm:$0xff] }
 0x1b7   : > { %v1659_v39 = vld [vmem:[%s8577_s5 + $0x198] sm:$0xff]  ;;  %v1656_v23 = vld [vmem:[%s8577_s5 + $0x180] sm:$0xff]  ;;  %v1658_v11 = vld [vmem:[%s8577_s5 + $0x190] sm:$0xff] }
 0x1b8   : > { %1354 = vmatmul.mubr.f32.gmra.mrb[16].mxu1 %v1059_v47  ;;  %v4148_v47 = vpack.c.bf16 %v1623_v46, %v1621_v45  ;;  %v1660_v45 = vld [vmem:[%s8577_s5 + $0x1a0] sm:$0xff]  ;;  %v1662_v46 = vld [vmem:[%s8577_s5 + $0x1b0] sm:$0xff] }
 0x1b9   : > { %1358 = vmatprep.mubr.f32.mxu1 %v1066_v35  ;;  %4129 = vmatpush3.bf16.msra.mxu1 %v4128_v42  ;;  %v1616_v42 = vld [vmem:[%s8577_s5 + $0x40] sm:$0xff] }
 0x1ba   : > { %4130 = vmatprep.subr.bf16.mxu1 %v5188_v3  ;;  %v4146_v44 = vpack.c.bf16 %v1618_v43, %v1616_v42  ;;  %v1620_v35 = vld [vmem:[%s8577_s5 + $0x60] sm:$0xff]  ;;  %v1661_v42 = vld [vmem:[%s8577_s5 + $0x1a8] sm:$0xff]  ;;  %v1663_v43 = vld [vmem:[%s8577_s5 + $0x1b8] sm:$0xff] }
 0x1bb   : > { %v4150_v50 = vpack.c.bf16 %v1622_v48, %v1620_v35  ;;  %v1665_v35 = vld [vmem:[%s8577_s5 + $0x1c8] sm:$0xff]  ;;  %v1667_v48 = vld [vmem:[%s8577_s5 + $0x1d8] sm:$0xff] }
 0x1bc   : > { %1359 = vmatmul.mubr.f32.gmra.mrb[18].mxu1 %v1065_v58  ;;  %v1631_v58 = vld [vmem:[%s8577_s5 + $0xb8] sm:$0xff] }
 0x1bd   : > { %1363 = vmatprep.mubr.f32.mxu1 %v1071_v63  ;;  %4132 = vmatpush3.bf16.msra.mxu1 %v4131_v54  ;;  %v4152_v54 = vpack.c.bf16 %v1627_v53, %v1625_v52  ;;  %v4156_v61 = vpack.c.bf16 %v1631_v58, %v1629_v60  ;;  %v1630_v63 = vld [vmem:[%s8577_s5 + $0xb0] sm:$0xff]  ;;  %v1664_v52 = vld [vmem:[%s8577_s5 + $0x1c0] sm:$0xff] }
 0x1be   : > { %4133 = vmatprep.subr.bf16.mxu1 %v5188_v3  ;;  %v1082_v3 = vsel %vm1079_vm7, %v1028_v6, %v1042_v17  ;;  %v4158_v0 = vpack.c.bf16 %v1630_v63, %v1628_v62  ;;  %v1634_v6 = vld [vmem:[%s8577_s5 + $0xd0] sm:$0xff]  ;;  %v1668_v60 = vld [vmem:[%s8577_s5 + $0x1e0] sm:$0xff]  ;;  %v1673_v62 = vld [vmem:[%s8577_s5 + $0x208] sm:$0xff] }
 0x1bf   : > { %v1666_v53 = vld [vmem:[%s8577_s5 + $0x1d0] sm:$0xff]  ;;  %v1675_v63 = vld [vmem:[%s8577_s5 + $0x218] sm:$0xff] }
 0x1c0   : > { %1364 = vmatmul.mubr.f32.gmra.mrb[20].mxu1 %v1070_v9  ;;  %v4162_v9 = vpack.c.bf16 %v1634_v6, %v1632_v5  ;;  %v1670_v58 = vld [vmem:[%s8577_s5 + $0x1f0] sm:$0xff] }
 0x1c1   : > { %1368 = vmatprep.mubr.f32.mxu1 %v1077_v13  ;;  %4135 = vmatpush3.bf16.msra.mxu1 %v4134_v4  ;;  %v4160_v4 = vpack.c.bf16 %v1635_v2, %v1633_v1  ;;  %v1639_v13 = vld [vmem:[%s8577_s5 + $0xf8] sm:$0xff] }
 0x1c2   : > { %4137 = vmatprep.subr.bf16.mxu1 %v4136_v51  ;;  %v4178_v51 = vpack.c.bf16 %v1650_v29, %v1648_v7 }
 0x1c4   : > { %1369 = vmatmul.mubr.f32.gmra.mrb[22].mxu1 %v1076_v15  ;;  %v1638_v15 = vld [vmem:[%s8577_s5 + $0xf0] sm:$0xff] }
 0x1c5   : > { %1373 = vmatprep.mubr.f32.mxu1 %v1083_v16  ;;  %v4166_v16 = vpack.c.bf16 %v1638_v15, %v1636_v8 }
 0x1c8   : > { %1374 = vmatmul.mubr.f32.gmra.mrb[24].mxu1 %v1082_v3  ;;  %v1643_v3 = vld [vmem:[%s8577_s5 + $0x118] sm:$0xff] }
 0x1c9   : > { %1378 = vmatprep.mubr.f32.mxu1 %v1043_v12  ;;  %v1637_v12 = vld [vmem:[%s8577_s5 + $0xe8] sm:$0xff] }
 0x1ca   : > { %v4164_v14 = vpack.c.bf16 %v1639_v13, %v1637_v12 }
 0x1cc   : > { %1379 = vmatmul.mubr.f32.gmra.mrb[26].mxu1 %v1042_v17  ;;  %v1641_v17 = vld [vmem:[%s8577_s5 + $0x108] sm:$0xff] }
 0x1cd   : > { %4031 = vmatprep.mubr.msk.f32.mxu1 %vm5189_vm8, %v5190_v19  ;;  %v4168_v18 = vpack.c.bf16 %v1643_v3, %v1641_v17 }
 0x1d0   : > { %4032 = vmatmul.mubr.msk.f32.vlgmr.msra.gmra.mrb[28].mxu1 %vm733_vm2, %v1055_v20  ;;  %v1640_v20 = vld [vmem:[%s8577_s5 + $0x100] sm:$0xff] }
 0x1d1   : > { %4034 = vmatprep.mubr.msk.f32.mxu1 %vm5189_vm8, %v5190_v19  ;;  %4139 = vmatpush1.bf16.msra.mxu1 %v4138_v32  ;;  %v4180_v32 = vpack.c.bf16 %v1655_v31, %v1653_v30 }
 0x1d2   : > { %4141 = vmatprep.subr.bf16.mxu1 %v4140_v37  ;;  %v4182_v37 = vpack.c.bf16 %v1654_v36, %v1652_v33 }
 0x1d4   : > { %4035 = vmatmul.mubr.msk.f32.gmra.mrb[30].mxu1 %vm733_vm2, %v1061_v24  ;;  %v4170_v24 = vpack.c.bf16 %v1642_v21, %v1640_v20 }
 0x1d5   : > { %4037 = vmatprep.mubr.msk.f32.mxu1 %vm5189_vm8, %v5190_v19  ;;  %4143 = vmatpush1.bf16.msra.mxu1 %v4142_v40  ;;  %v4184_v40 = vpack.c.bf16 %v1659_v39, %v1657_v38 }
 0x1d6   : > { %4145 = vmatprep.subr.bf16.mxu1 %v4144_v41  ;;  %v4186_v41 = vpack.c.bf16 %v1658_v11, %v1656_v23 }
 0x1d8   : > { %4038 = vmatmul.mubr.msk.f32.gmra.mrb[32].mxu1 %vm733_vm2, %v1067_v25  ;;  %v1647_v25 = vld [vmem:[%s8577_s5 + $0x138] sm:$0xff] }
 0x1d9   : > { %4040 = vmatprep.mubr.msk.f32.mxu1 %vm5189_vm8, %v5190_v19  ;;  %4147 = vmatpush1.bf16.msra.mxu1 %v4146_v44  ;;  %v4172_v22 = vpack.c.bf16 %v1647_v25, %v1645_v49  ;;  %v4188_v44 = vpack.c.bf16 %v1663_v43, %v1661_v42 }
 0x1da   : > { %4149 = vmatprep.subr.bf16.mxu1 %v4148_v47  ;;  %v4190_v47 = vpack.c.bf16 %v1662_v46, %v1660_v45 }
 0x1dc   : > { %4041 = vmatmul.mubr.msk.f32.gmra.mrb[34].mxu1 %vm733_vm2, %v1072_v10  ;;  %v1644_v10 = vld [vmem:[%s8577_s5 + $0x120] sm:$0xff] }
 0x1dd   : > { %4043 = vmatprep.mubr.msk.f32.mxu1 %vm5189_vm8, %v5190_v19  ;;  %4151 = vmatpush1.bf16.msra.mxu1 %v4150_v50  ;;  %v4174_v34 = vpack.c.bf16 %v1646_v26, %v1644_v10  ;;  %v4192_v50 = vpack.c.bf16 %v1667_v48, %v1665_v35  ;;  %v3784_v10 = vld [vmem:[%s8576_s4] ss:$0 sm:$0xff] }
 0x1de   : > { %4153 = vmatprep.subr.bf16.mxu1 %v4152_v54  ;;  %v4194_v54 = vpack.c.bf16 %v1666_v53, %v1664_v52 }
 0x1e0   : > { %4044 = vmatmul.mubr.msk.f32.gmra.mrb[36].mxu1 %vm733_vm2, %v1078_v27  ;;  %v1649_v27 = vld [vmem:[%s8577_s5 + $0x148] sm:$0xff] }
 0x1e1   : > { %4046 = vmatprep.mubr.msk.f32.mxu1 %vm5189_vm8, %v5190_v19  ;;  %4155 = vmatpush1.bf16.msra.mxu1 %v4154_v59  ;;  %v4196_v59 = vpack.c.bf16 %v1671_v56, %v1669_v55 }
 0x1e2   : > { %4157 = vmatprep.subr.bf16.mxu1 %v4156_v61  ;;  %v4198_v61 = vpack.c.bf16 %v1670_v58, %v1668_v60 }
 0x1e4   : > { %4047 = vmatmul.mubr.msk.f32.gmra.mrb[38].mxu1 %vm733_vm2, %v1084_v57 }
 0x1e5   : > { %4049 = vmatprep.mubr.msk.f32.mxu1 %vm5189_vm8, %v5190_v19  ;;  %4159 = vmatpush1.bf16.msra.mxu1 %v4158_v0  ;;  %v4200_v0 = vpack.c.bf16 %v1675_v63, %v1673_v62 }
 0x1e6   : > { %4161 = vmatprep.subr.bf16.mxu1 %v4160_v4 }
 0x1e8   : > { %4050 = vmatmul.mubr.msk.f32.gmra.mrb[40].mxu1 %vm733_vm2, %v1044_v28  ;;  %v1651_v28 = vld [vmem:[%s8577_s5 + $0x158] sm:$0xff] }
 0x1e9   : > { %4163 = vmatpush1.bf16.msra.mxu1 %v4162_v9  ;;  %v4176_v57 = vpack.c.bf16 %v1651_v28, %v1649_v27 }
 0x1ea   : > { %4165 = vmatprep.subr.bf16.mxu1 %v4164_v14 }
 0x1ed   : > { %4167 = vmatpush1.bf16.msra.mxu1 %v4166_v16 }
 0x1ee   : > { %4169 = vmatprep.subr.bf16.mxu1 %v4168_v18 }
 0x1f1   : > { %4171 = vmatpush1.bf16.msra.mxu1 %v4170_v24 }
 0x1f2   : > { %4173 = vmatprep.subr.bf16.mxu1 %v4172_v22 }
 0x1f5   : > { %4175 = vmatpush1.bf16.msra.mxu1 %v4174_v34 }
 0x1f6   : > { %4177 = vmatprep.subr.bf16.mxu1 %v4176_v57 }
 0x1f9   : > { %4179 = vmatpush1.bf16.msra.mxu1 %v4178_v51 }
 0x1fa   : > { %4181 = vmatprep.subr.bf16.mxu1 %v4180_v32 }
 0x1fd   : > { %4183 = vmatpush1.bf16.msra.mxu1 %v4182_v37 }
 0x1fe   : > { %4185 = vmatprep.subr.bf16.mxu1 %v4184_v40 }
 0x201   : > { %4187 = vmatpush1.bf16.msra.mxu1 %v4186_v41 }
 0x202   : > { %4189 = vmatprep.subr.bf16.mxu1 %v4188_v44 }
 0x205   : > { %4191 = vmatpush1.bf16.msra.mxu1 %v4190_v47 }
 0x206   : > { %4193 = vmatprep.subr.bf16.mxu1 %v4192_v50 }
 0x209   : > { %4195 = vmatpush1.bf16.msra.mxu1 %v4194_v54 }
 0x20a   : > { %4197 = vmatprep.subr.bf16.mxu1 %v4196_v59 }
 0x20d   : > { %4199 = vmatpush1.bf16.msra.mxu1 %v4198_v61 }
 0x20e   : > { %4201 = vmatprep.subr.bf16.mxu1 %v4200_v0 }
 0x259   : > { %v3868_v1 = vpop.f32.mrb[0].mxu1 }
 0x25a   : > { %v3869_v2 = vpop.f32.mrb[1].mxu1 }
 0x25b   : > { %v3870_v4 = vadd.f32 %v3869_v2, %v3868_v1 }
 0x25d   : > { %v1251_v27 = vadd.f32 %v3870_v4, %v3784_v10 }
 0x25f   : > { %v3871_v5 = vpop.f32.mrb[2].mxu1 }
 0x260   : > { %v3872_v6 = vpop.f32.mrb[3].mxu1 }
 0x261   : > { %v3873_v9 = vadd.f32 %v3872_v6, %v3871_v5 }
 0x263   : > { %v1256_v51 = vadd.f32 %v3873_v9, %v3784_v10 }
 0x267   : > { %v3874_v12 = vpop.f32.mrb[4].mxu1 }
 0x268   : > { %v3875_v13 = vpop.f32.mrb[5].mxu1 }
 0x269   : > { %v3876_v14 = vadd.f32 %v3875_v13, %v3874_v12 }
 0x26b   : > { %v1261_v36 = vadd.f32 %v3876_v14, %v3784_v10 }
 0x26f   : > { %v3877_v8 = vpop.f32.mrb[6].mxu1 }
 0x270   : > { %v3878_v15 = vpop.f32.mrb[7].mxu1 }
 0x271   : > { %v3879_v16 = vadd.f32 %v3878_v15, %v3877_v8 }
 0x273   : > { %v1266_v23 = vadd.f32 %v3879_v16, %v3784_v10 }
 0x277   : > { %v3880_v17 = vpop.f32.mrb[8].mxu1 }
 0x278   : > { %v3881_v3 = vpop.f32.mrb[9].mxu1 }
 0x279   : > { %v3882_v18 = vadd.f32 %v3881_v3, %v3880_v17 }
 0x27b   : > { %v1271_v44 = vadd.f32 %v3882_v18, %v3784_v10 }
 0x27f   : > { %v3883_v20 = vpop.f32.mrb[10].mxu1 }
 0x280   : > { %v3884_v21 = vpop.f32.mrb[11].mxu1 }
 0x281   : > { %v3885_v24 = vadd.f32 %v3884_v21, %v3883_v20 }
 0x283   : > { %v3886_v49 = vpop.f32.mrb[12].mxu1  ;;  %v1276_v48 = vadd.f32 %v3885_v24, %v3784_v10 }
 0x284   : > { %v3887_v25 = vpop.f32.mrb[13].mxu1 }
 0x285   : > { %v3888_v22 = vadd.f32 %v3887_v25, %v3886_v49 }
 0x287   : > { %v3921_v26 = vpop.f32.mrb[14].mxu1  ;;  %v1281_v55 = vadd.f32 %v3888_v22, %v3784_v10 }
 0x288   : > { %v3922_v34 = vpop.f32.mrb[15].mxu1 }
 0x289   : > { %v3923_v28 = vadd.f32 %v3922_v34, %v3921_v26 }
 0x28b   : > { %v3924_v57 = vpop.f32.mrb[16].mxu1  ;;  %v1351_v7 = vadd.f32 %v3923_v28, %v1251_v27  ;;  %v1672_v28 = vld [vmem:[%s8577_s5 + $0x200] sm:$0xff] }
 0x28c   : > { %v3925_v29 = vpop.f32.mrb[17].mxu1 }
 0x28d   : > { %v3926_v30 = vadd.f32 %v3925_v29, %v3924_v57  ;;  %v1674_v57 = vld [vmem:[%s8577_s5 + $0x210] sm:$0xff] }
 0x28f   : > { %v3927_v31 = vpop.f32.mrb[18].mxu1  ;;  %v1356_v32 = vadd.f32 %v3926_v30, %v1256_v51  ;;  %v1677_v30 = vld [vmem:[%s8577_s5 + $0x228] sm:$0xff] }
 0x290   : > { %v3928_v33 = vpop.f32.mrb[19].mxu1 }
 0x291   : > { %v3929_v37 = vadd.f32 %v3928_v33, %v3927_v31  ;;  %v1679_v31 = vld [vmem:[%s8577_s5 + $0x238] sm:$0xff] }
 0x293   : > { %v3930_v38 = vpop.f32.mrb[20].mxu1  ;;  %v1361_v39 = vadd.f32 %v3929_v37, %v1261_v36 }
 0x294   : > { %v3931_v40 = vpop.f32.mrb[21].mxu1 }
 0x295   : > { %v3932_v11 = vadd.f32 %v3931_v40, %v3930_v38 }
 0x297   : > { %v3933_v41 = vpop.f32.mrb[22].mxu1  ;;  %v1366_v42 = vadd.f32 %v3932_v11, %v1266_v23 }
 0x298   : > { %v3934_v43 = vpop.f32.mrb[23].mxu1 }
 0x299   : > { %v3935_v45 = vadd.f32 %v3934_v43, %v3933_v41  ;;  %v4202_v41 = vpack.c.bf16 %v1674_v57, %v1672_v28  ;;  %v1698_v28 = vld [vmem:[%s8577_s5 + $0x2d0] sm:$0xff]  ;;  %v1701_v57 = vld [vmem:[%s8577_s5 + $0x2e8] sm:$0xff] }
 0x29b   : > { %v3936_v46 = vpop.f32.mrb[24].mxu1  ;;  %v1371_v47 = vadd.f32 %v3935_v45, %v1271_v44 }
 0x29c   : > { %v3937_v35 = vpop.f32.mrb[25].mxu1 }
 0x29d   : > { %v3938_v50 = vadd.f32 %v3937_v35, %v3936_v46  ;;  %v4204_v46 = vpack.c.bf16 %v1679_v31, %v1677_v30  ;;  %v1678_v35 = vld [vmem:[%s8577_s5 + $0x230] sm:$0xff]  ;;  %v1700_v30 = vld [vmem:[%s8577_s5 + $0x2e0] sm:$0xff] }
 0x29e   : > { %v1702_v31 = vld [vmem:[%s8577_s5 + $0x2f0] sm:$0xff] }
 0x29f   : > { %v3939_v52 = vpop.f32.mrb[26].mxu1  ;;  %v1376_v53 = vadd.f32 %v3938_v50, %v1276_v48 }
 0x2a0   : > { %v3940_v54 = vpop.f32.mrb[27].mxu1 }
 0x2a1   : > { %v3941_v56 = vadd.f32 %v3940_v54, %v3939_v52  ;;  %v1681_v52 = vld [vmem:[%s8577_s5 + $0x248] sm:$0xff] }
 0x2a3   : > { %v1450_v59 = vpop.f32.mrb[28].mxu1  ;;  %v1381_v60 = vadd.f32 %v3941_v56, %v1281_v55 }
 0x2a4   : > { %v1451_v58 = vadd.f32 %v1450_v59, %v1351_v7  ;;  %v4033_v61 = vpop.f32.mrb[29].mxu1 }
 0x2a6   : > { %v1484_v62 = vmax.f32 %v1451_v58, 0.0 }
 0x2a7   : > { %v1455_v63 = vpop.f32.mrb[30].mxu1 }
 0x2a8   : > { %1491 = vst [vmem:[#allocation3] sm:$0xff] %v1484_v62  ;;  %v1456_v0 = vadd.f32 %v1455_v63, %v1356_v32  ;;  %v4036_v1 = vpop.f32.mrb[31].mxu1  ;;  %v1680_v63 = vld [vmem:[%s8577_s5 + $0x240] sm:$0xff] }
 0x2aa   : > { %v1485_v2 = vmax.f32 %v1456_v0, 0.0  ;;  %v1682_v0 = vld [vmem:[%s8577_s5 + $0x250] sm:$0xff] }
 0x2ab   : > { %v1460_v4 = vpop.f32.mrb[32].mxu1 }
 0x2ac   : > { %1492 = vst [vmem:[#allocation3 + $0x8] sm:$0xff] %v1485_v2  ;;  %v1461_v5 = vadd.f32 %v1460_v4, %v1361_v39  ;;  %v4039_v6 = vpop.f32.mrb[33].mxu1  ;;  %v1685_v2 = vld [vmem:[%s8577_s5 + $0x268] sm:$0xff]  ;;  %v1687_v4 = vld [vmem:[%s8577_s5 + $0x278] sm:$0xff] }
 0x2ad   : > { %v4210_v6 = vpack.c.bf16 %v1682_v0, %v1680_v63  ;;  %v1716_v63 = vld [vmem:[%s8577_s5 + $0x360] sm:$0xff]  ;;  %v1718_v0 = vld [vmem:[%s8577_s5 + $0x370] sm:$0xff] }
 0x2ae   : > { %v1486_v9 = vmax.f32 %v1461_v5, 0.0 }
 0x2af   : > { %v1465_v12 = vpop.f32.mrb[34].mxu1  ;;  %v1500_v29 = vld [vmem:[#allocation3 + $0x1] ss:$2 sm:$0x7] }
 0x2b0   : > { %1493 = vst [vmem:[#allocation3 + $0x10] sm:$0xff] %v1486_v9  ;;  %v1466_v13 = vadd.f32 %v1465_v12, %v1366_v42  ;;  %v4042_v14 = vpop.f32.mrb[35].mxu1  ;;  %v1498_v51 = vld [vmem:[#allocation3] ss:$2 sm:$0x7]  ;;  %v4212_v9 = vpack.c.bf16 %v1687_v4, %v1685_v2  ;;  %v1723_v2 = vld [vmem:[%s8577_s5 + $0x398] sm:$0xff]  ;;  %v4246_v4 = vpack.c.bf16 %v1718_v0, %v1716_v63 }
 0x2b1   : > { %v1684_v12 = vld [vmem:[%s8577_s5 + $0x260] sm:$0xff]  ;;  %v1689_v14 = vld [vmem:[%s8577_s5 + $0x288] sm:$0xff]  ;;  %v1750_v0 = vld [vmem:[%s8577_s5 + $0x470] sm:$0xff] }
 0x2b2   : > { %v1487_v8 = vmax.f32 %v1466_v13, 0.0  ;;  %v1686_v13 = vld [vmem:[%s8577_s5 + $0x270] sm:$0xff]  ;;  %v1748_v63 = vld [vmem:[%s8577_s5 + $0x460] sm:$0xff] }
 0x2b3   : > { %v1470_v15 = vpop.f32.mrb[36].mxu1  ;;  %v1504_v61 = vld [vmem:[#allocation3 + $0x7] ss:$2 sm:$0x7] }
 0x2b4   : > { %1494 = vst [vmem:[#allocation3 + $0x18] sm:$0xff] %v1487_v8  ;;  %v1471_v16 = vadd.f32 %v1470_v15, %v1371_v47  ;;  %v4045_v17 = vpop.f32.mrb[37].mxu1  ;;  %v1676_v47 = vld [vmem:[%s8577_s5 + $0x220] sm:$0xff]  ;;  %v1691_v8 = vld [vmem:[%s8577_s5 + $0x298] sm:$0xff]  ;;  %v4214_v15 = vpack.c.bf16 %v1686_v13, %v1684_v12  ;;  %v1725_v12 = vld [vmem:[%s8577_s5 + $0x3a8] sm:$0xff] }
 0x2b5   : > { %v4206_v58 = vpack.c.bf16 %v1678_v35, %v1676_v47  ;;  %v1688_v17 = vld [vmem:[%s8577_s5 + $0x280] sm:$0xff]  ;;  %v1715_v47 = vld [vmem:[%s8577_s5 + $0x358] sm:$0xff] }
 0x2b6   : > { %v1488_v3 = vmax.f32 %v1471_v16, 0.0  ;;  %v4216_v16 = vpack.c.bf16 %v1691_v8, %v1689_v14  ;;  %v1727_v13 = vld [vmem:[%s8577_s5 + $0x3b8] sm:$0xff] }
 0x2b7   : > { %v1475_v18 = vpop.f32.mrb[38].mxu1  ;;  %v1512_v24 = vld [vmem:[#allocation3 + $0xf] ss:$2 sm:$0x7]  ;;  %v4252_v8 = vpack.c.bf16 %v1727_v13, %v1725_v12  ;;  %v1759_v13 = vld [vmem:[%s8577_s5 + $0x4b8] sm:$0xff] }
 0x2b8   : > { %1495 = vst [vmem:[#allocation3 + $0x20] sm:$0xff] %v1488_v3  ;;  %v1476_v20 = vadd.f32 %v1475_v18, %v1376_v53  ;;  %v4048_v21 = vpop.f32.mrb[39].mxu1  ;;  %v1510_v25 = vld [vmem:[#allocation3 + $0xe] ss:$2 sm:$0x7]  ;;  %v1549_v34 = vrot.slane %v1512_v24, 5 }
 0x2b9   : > { %v1548_v27 = vrot.slane %v1510_v25, 5  ;;  %v1683_v53 = vld [vmem:[%s8577_s5 + $0x258] sm:$0xff]  ;;  %v6029_v54 = vld [vmem:[#allocation3 + $0x10] ss:$2 sm:$0x7]  ;;  %v1693_v18 = vld [vmem:[%s8577_s5 + $0x2a8] sm:$0xff] }
 0x2ba   : > { %v1489_v49 = vmax.f32 %v1476_v20, 0.0  ;;  %v1591_v23 = vsel %vm1073_vm6, %v1500_v29, %v1549_v34  ;;  %v4208_v62 = vpack.c.bf16 %v1683_v53, %v1681_v52  ;;  %v1690_v3 = vld [vmem:[%s8577_s5 + $0x290] sm:$0xff]  ;;  %v1695_v20 = vld [vmem:[%s8577_s5 + $0x2b8] sm:$0xff]  ;;  %v1717_v53 = vld [vmem:[%s8577_s5 + $0x368] sm:$0xff] }
 0x2bb   : > { %v1480_v22 = vpop.f32.mrb[40].mxu1  ;;  %v1516_v32 = vld [vmem:[#allocation3 + $0x15] ss:$2 sm:$0x7]  ;;  %v1590_v11 = vsel %vm1073_vm6, %v1498_v51, %v1548_v27  ;;  %v4218_v21 = vpack.c.bf16 %v1690_v3, %v1688_v17  ;;  %v1696_v27 = vld [vmem:[%s8577_s5 + $0x2c0] sm:$0xff]  ;;  %v1729_v17 = vld [vmem:[%s8577_s5 + $0x3c8] sm:$0xff] }
 0x2bc   : > { %1496 = vst [vmem:[#allocation3 + $0x28] sm:$0xff] %v1489_v49  ;;  %v1481_v10 = vadd.f32 %v1480_v22, %v1381_v60  ;;  %v4051_v26 = vpop.f32.mrb[41].mxu1  ;;  %v1551_v50 = vrot.slane %v1516_v32, 5  ;;  %v1692_v49 = vld [vmem:[%s8577_s5 + $0x2a0] sm:$0xff]  ;;  %v1697_v22 = vld [vmem:[%s8577_s5 + $0x2c8] sm:$0xff]  ;;  %v4226_v29 = vpack.c.bf16 %v1698_v28, %v1696_v27  ;;  %v1714_v52 = vld [vmem:[%s8577_s5 + $0x350] sm:$0xff] }
 0x2bd   : > { %v1705_v32 = vld [vmem:[%s8577_s5 + $0x308] sm:$0xff]  ;;  %v1731_v3 = vld [vmem:[%s8577_s5 + $0x3d8] sm:$0xff] }
 0x2be   : > { %v1490_v7 = vmax.f32 %v1481_v10, 0.0  ;;  %v1593_v1 = vsel %vm1073_vm6, %v1504_v61, %v1551_v50  ;;  %v1699_v10 = vld [vmem:[%s8577_s5 + $0x2d8] sm:$0xff]  ;;  %v1712_v50 = vld [vmem:[%s8577_s5 + $0x340] sm:$0xff]  ;;  %v1737_v27 = vld [vmem:[%s8577_s5 + $0x408] sm:$0xff] }
 0x2bf   : > { %v1524_v33 = vld [vmem:[#allocation3 + $0x1d] ss:$2 sm:$0x7]  ;;  %v1522_v36 = vld [vmem:[#allocation3 + $0x1c] ss:$2 sm:$0x7]  ;;  %v4224_v34 = vpack.c.bf16 %v1699_v10, %v1697_v22  ;;  %v4242_v61 = vpack.c.bf16 %v1714_v52, %v1712_v50 }
 0x2c0   : > { %1497 = vst [vmem:[#allocation3 + $0x30] sm:$0x1] %v1490_v7  ;;  %v1555_v37 = vrot.slane %v1524_v33, 5  ;;  %v1573_v38 = vrot.slane %v1524_v33, 2  ;;  %v1554_v39 = vrot.slane %v1522_v36, 5  ;;  %v1572_v40 = vrot.slane %v1522_v36, 2 }
 0x2c1   : > { %v6010_v42 = vld [vmem:[#allocation3 + $0x23] ss:$2 sm:$0x7]  ;;  %v6012_v43 = vld [vmem:[#allocation3 + $0x1e] ss:$2 sm:$0x7]  ;;  %v4230_v36 = vpack.c.bf16 %v1702_v31, %v1700_v30 }
 0x2c2   : > { %v1600_v44 = vsel %vm1056_vm4, %v1591_v23, %v1573_v38  ;;  %v1599_v45 = vsel %vm1056_vm4, %v1590_v11, %v1572_v40  ;;  %v1556_v48 = vrot.slane %v6012_v43, 5  ;;  %v6032_v55 = vsel %vm1073_vm6, %v1512_v24, %v1555_v37  ;;  %v1703_v7 = vld [vmem:[%s8577_s5 + $0x2f8] sm:$0xff]  ;;  %v1738_v30 = vld [vmem:[%s8577_s5 + $0x410] sm:$0xff]  ;;  %v1744_v50 = vld [vmem:[%s8577_s5 + $0x440] sm:$0xff] }
 0x2c3   : > { %1972 = vmatprep.mubr.f32.mxu1 %v1600_v44  ;;  %v6035_v56 = vsel %vm1073_vm6, %v1510_v25, %v1554_v39  ;;  %v1575_v59 = vrot.slane %v6010_v42, 2  ;;  %v4220_v24 = vpack.c.bf16 %v1695_v20, %v1693_v18  ;;  %v1694_v25 = vld [vmem:[%s8577_s5 + $0x2b0] sm:$0xff]  ;;  %v4228_v51 = vpack.c.bf16 %v1703_v7, %v1701_v57  ;;  %v1707_v33 = vld [vmem:[%s8577_s5 + $0x318] sm:$0xff]  ;;  %v1708_v44 = vld [vmem:[%s8577_s5 + $0x320] sm:$0xff] }
 0x2c4   : > { %1973 = vmatmul.mubr.f32.vlgmr.msra.gmra.mrb[42].mxu1 %v1599_v45  ;;  %v6040_v60 = vsel %vm1073_vm6, %v6029_v54, %v1556_v48  ;;  %v4222_v26 = vpack.c.bf16 %v1694_v25, %v1692_v49  ;;  %v4232_v37 = vpack.c.bf16 %v1707_v33, %v1705_v32  ;;  %v1706_v39 = vld [vmem:[%s8577_s5 + $0x310] sm:$0xff]  ;;  %v1711_v23 = vld [vmem:[%s8577_s5 + $0x338] sm:$0xff]  ;;  %v4256_v20 = vpack.c.bf16 %v1731_v3, %v1729_v17  ;;  %v1733_v49 = vld [vmem:[%s8577_s5 + $0x3e8] sm:$0xff] }
 0x2c5   : > { %4203 = vmatpush1.bf16.msra.mxu1 %v4202_v41  ;;  %1978 = vmatprep.mubr.f32.mxu1 %v1573_v38  ;;  %v1602_v5 = vsel %vm1056_vm4, %v1593_v1, %v1575_v59  ;;  %v1704_v38 = vld [vmem:[%s8577_s5 + $0x300] sm:$0xff]  ;;  %v1710_v45 = vld [vmem:[%s8577_s5 + $0x330] sm:$0xff]  ;;  %v1721_v1 = vld [vmem:[%s8577_s5 + $0x388] sm:$0xff]  ;;  %v1550_v7 = vrot.slane %v6029_v54, 5  ;;  %v1574_v31 = vrot.slane %v6012_v43, 2 }
 0x2c6   : > { %4205 = vmatprep.subr.bf16.mxu1 %v4204_v46  ;;  %v4234_v11 = vpack.c.bf16 %v1706_v39, %v1704_v38  ;;  %v1713_v46 = vld [vmem:[%s8577_s5 + $0x348] sm:$0xff]  ;;  %v4238_v35 = vpack.c.bf16 %v1710_v45, %v1708_v44  ;;  %v1735_v25 = vld [vmem:[%s8577_s5 + $0x3f8] sm:$0xff]  ;;  %v1740_v43 = vld [vmem:[%s8577_s5 + $0x420] sm:$0xff] }
 0x2c7   : > { %v4240_v48 = vpack.c.bf16 %v1715_v47, %v1713_v46  ;;  %v4260_v10 = vpack.c.bf16 %v1735_v25, %v1733_v49  ;;  %v1739_v28 = vld [vmem:[%s8577_s5 + $0x418] sm:$0xff]  ;;  %v1741_v32 = vld [vmem:[%s8577_s5 + $0x428] sm:$0xff]  ;;  %v1746_v52 = vld [vmem:[%s8577_s5 + $0x450] sm:$0xff] }
 0x2c8   : > { %1979 = vmatmul.mubr.f32.gmra.mrb[44].mxu1 %v1572_v40  ;;  %v1709_v40 = vld [vmem:[%s8577_s5 + $0x328] sm:$0xff]  ;;  %v1743_v33 = vld [vmem:[%s8577_s5 + $0x438] sm:$0xff] }
 0x2c9   : > { %4207 = vmatpush1.bf16.msra.mxu1 %v4206_v58  ;;  %2049 = vmatprep.mubr.f32.mxu1 %v1602_v5  ;;  %v4236_v41 = vpack.c.bf16 %v1711_v23, %v1709_v40  ;;  %v1719_v58 = vld [vmem:[%s8577_s5 + $0x378] sm:$0xff]  ;;  %v4248_v5 = vpack.c.bf16 %v1723_v2, %v1721_v1  ;;  %v6228_v38 = vld [vmem:[#allocation3 + $0x25] ss:$2 sm:$0x7]  ;;  %v4268_v40 = vpack.c.bf16 %v1743_v33, %v1741_v32  ;;  %v1742_v23 = vld [vmem:[%s8577_s5 + $0x430] sm:$0xff] }
 0x2ca   : > { %4209 = vmatprep.subr.bf16.mxu1 %v4208_v62  ;;  %v4244_v62 = vpack.c.bf16 %v1719_v58, %v1717_v53  ;;  %v1520_v54 = vld [vmem:[#allocation3 + $0x17] ss:$2 sm:$0x7]  ;;  %v1745_v44 = vld [vmem:[%s8577_s5 + $0x448] sm:$0xff]  ;;  %v1577_v46 = vrot.slane %v6228_v38, 2  ;;  %v4270_v47 = vpack.c.bf16 %v1742_v23, %v1740_v43  ;;  %v1776_v23 = vld [vmem:[%s8577_s5 + $0x540] sm:$0xff] }
 0x2cb   : > { %v1747_v45 = vld [vmem:[%s8577_s5 + $0x458] sm:$0xff]  ;;  %v1749_v42 = vld [vmem:[%s8577_s5 + $0x468] sm:$0xff] }
 0x2cc   : > { %v1753_v1 = vld [vmem:[%s8577_s5 + $0x488] sm:$0xff]  ;;  %v1755_v2 = vld [vmem:[%s8577_s5 + $0x498] sm:$0xff] }
 0x2cd   : > { %4211 = vmatpush1.bf16.msra.mxu1 %v4210_v6  ;;  %v1720_v6 = vld [vmem:[%s8577_s5 + $0x380] sm:$0xff]  ;;  %v1757_v12 = vld [vmem:[%s8577_s5 + $0x4a8] sm:$0xff]  ;;  %v1763_v3 = vld [vmem:[%s8577_s5 + $0x4d8] sm:$0xff] }
 0x2ce   : > { %4213 = vmatprep.subr.bf16.mxu1 %v4212_v9  ;;  %v1722_v9 = vld [vmem:[%s8577_s5 + $0x390] sm:$0xff]  ;;  %v1761_v17 = vld [vmem:[%s8577_s5 + $0x4c8] sm:$0xff]  ;;  %v1767_v25 = vld [vmem:[%s8577_s5 + $0x4f8] sm:$0xff] }
 0x2cf   : > { %v4250_v14 = vpack.c.bf16 %v1722_v9, %v1720_v6  ;;  %v1752_v6 = vld [vmem:[%s8577_s5 + $0x480] sm:$0xff]  ;;  %v1754_v9 = vld [vmem:[%s8577_s5 + $0x490] sm:$0xff]  ;;  %v1765_v49 = vld [vmem:[%s8577_s5 + $0x4e8] sm:$0xff] }
 0x2d0   : > { %v1815_v38 = vld [vmem:[%s8577_s5 + $0x678] sm:$0xff] }
 0x2d1   : > { %4215 = vmatpush1.bf16.msra.mxu1 %v4214_v15  ;;  %v1724_v15 = vld [vmem:[%s8577_s5 + $0x3a0] sm:$0xff] }
 0x2d2   : > { %4217 = vmatprep.subr.bf16.mxu1 %v4216_v16  ;;  %v1726_v16 = vld [vmem:[%s8577_s5 + $0x3b0] sm:$0xff] }
 0x2d3   : > { %v4254_v18 = vpack.c.bf16 %v1726_v16, %v1724_v15  ;;  %v1756_v15 = vld [vmem:[%s8577_s5 + $0x4a0] sm:$0xff]  ;;  %v1758_v16 = vld [vmem:[%s8577_s5 + $0x4b0] sm:$0xff] }
 0x2d5   : > { %4219 = vmatpush1.bf16.msra.mxu1 %v4218_v21  ;;  %v1728_v21 = vld [vmem:[%s8577_s5 + $0x3c0] sm:$0xff] }
 0x2d6   : > { %4221 = vmatprep.subr.bf16.mxu1 %v4220_v24  ;;  %v1730_v24 = vld [vmem:[%s8577_s5 + $0x3d0] sm:$0xff] }
 0x2d7   : > { %v4258_v22 = vpack.c.bf16 %v1730_v24, %v1728_v21  ;;  %v1760_v21 = vld [vmem:[%s8577_s5 + $0x4c0] sm:$0xff]  ;;  %v1762_v24 = vld [vmem:[%s8577_s5 + $0x4d0] sm:$0xff] }
 0x2d9   : > { %4223 = vmatpush1.bf16.msra.mxu1 %v4222_v26  ;;  %v1732_v26 = vld [vmem:[%s8577_s5 + $0x3e0] sm:$0xff] }
 0x2da   : > { %4225 = vmatprep.subr.bf16.mxu1 %v4224_v34  ;;  %v1734_v34 = vld [vmem:[%s8577_s5 + $0x3f0] sm:$0xff] }
 0x2db   : > { %v4262_v57 = vpack.c.bf16 %v1734_v34, %v1732_v26  ;;  %v1764_v26 = vld [vmem:[%s8577_s5 + $0x4e0] sm:$0xff]  ;;  %v1766_v34 = vld [vmem:[%s8577_s5 + $0x4f0] sm:$0xff] }
 0x2dd   : > { %4227 = vmatpush1.bf16.msra.mxu1 %v4226_v29  ;;  %v4264_v29 = vpack.c.bf16 %v1739_v28, %v1737_v27  ;;  %v1769_v27 = vld [vmem:[%s8577_s5 + $0x508] sm:$0xff]  ;;  %v1771_v28 = vld [vmem:[%s8577_s5 + $0x518] sm:$0xff] }
 0x2de   : > { %4229 = vmatprep.subr.bf16.mxu1 %v4228_v51  ;;  %v1736_v51 = vld [vmem:[%s8577_s5 + $0x400] sm:$0xff] }
 0x2e1   : > { %4231 = vmatpush1.bf16.msra.mxu1 %v4230_v36  ;;  %v1502_v36 = vld [vmem:[#allocation3 + $0x2] ss:$2 sm:$0x7] }
 0x2e2   : > { %4233 = vmatprep.subr.bf16.mxu1 %v4232_v37  ;;  %v4266_v37 = vpack.c.bf16 %v1738_v30, %v1736_v51  ;;  %v1592_v39 = vsel %vm1073_vm6, %v1502_v36, %v1550_v7  ;;  %v4296_v7 = vpack.c.bf16 %v1771_v28, %v1769_v27  ;;  %v1770_v51 = vld [vmem:[%s8577_s5 + $0x510] sm:$0xff]  ;;  %v1773_v30 = vld [vmem:[%s8577_s5 + $0x528] sm:$0xff]  ;;  %v2557_v27 = vld [vmem:[%s8579_s7 + $0x460] sm:$0xff] }
 0x2e3   : > { %v1774_v36 = vld [vmem:[%s8577_s5 + $0x530] sm:$0xff] }
 0x2e4   : > { %v2559_v28 = vld [vmem:[%s8579_s7 + $0x470] sm:$0xff] }
 0x2e5   : > { %4235 = vmatpush1.bf16.msra.mxu1 %v4234_v11  ;;  %v1601_v11 = vsel %vm1056_vm4, %v1592_v39, %v1574_v31  ;;  %v1779_v39 = vld [vmem:[%s8577_s5 + $0x558] sm:$0xff] }
 0x2e6   : > { %4237 = vmatprep.subr.bf16.mxu1 %v4236_v41  ;;  %v1553_v41 = vrot.slane %v1520_v54, 5  ;;  %v1772_v54 = vld [vmem:[%s8577_s5 + $0x520] sm:$0xff] }
 0x2e9   : > { %4239 = vmatpush1.bf16.msra.mxu1 %v4238_v35  ;;  %v1508_v35 = vld [vmem:[#allocation3 + $0x9] ss:$2 sm:$0x7] }
 0x2ea   : > { %4241 = vmatprep.subr.bf16.mxu1 %v4240_v48  ;;  %v4272_v48 = vpack.c.bf16 %v1747_v45, %v1745_v44  ;;  %v1595_v53 = vsel %vm1073_vm6, %v1508_v35, %v1553_v41  ;;  %v1781_v41 = vld [vmem:[%s8577_s5 + $0x568] sm:$0xff]  ;;  %v1783_v44 = vld [vmem:[%s8577_s5 + $0x578] sm:$0xff]  ;;  %v1780_v35 = vld [vmem:[%s8577_s5 + $0x560] sm:$0xff] }
 0x2eb   : > { %v1604_v58 = vsel %vm1056_vm4, %v1595_v53, %v1577_v46  ;;  %v2546_v45 = vld [vmem:[%s8579_s7 + $0x408] sm:$0xff] }
 0x2ec   : > { %v1785_v53 = vld [vmem:[%s8577_s5 + $0x588] sm:$0xff] }
 0x2ed   : > { %4243 = vmatpush1.bf16.msra.mxu1 %v4242_v61  ;;  %v4274_v61 = vpack.c.bf16 %v1746_v52, %v1744_v50  ;;  %v2548_v50 = vld [vmem:[%s8579_s7 + $0x418] sm:$0xff]  ;;  %v4308_v52 = vpack.c.bf16 %v1783_v44, %v1781_v41  ;;  %v1796_v41 = vld [vmem:[%s8577_s5 + $0x5e0] sm:$0xff]  ;;  %v1798_v44 = vld [vmem:[%s8577_s5 + $0x5f0] sm:$0xff] }
 0x2ee   : > { %4245 = vmatprep.subr.bf16.mxu1 %v4244_v62 }
 0x2f1   : > { %4247 = vmatpush1.bf16.msra.mxu1 %v4246_v4  ;;  %v4278_v4 = vpack.c.bf16 %v1750_v0, %v1748_v63  ;;  %v2550_v63 = vld [vmem:[%s8579_s7 + $0x428] sm:$0xff]  ;;  %v2552_v0 = vld [vmem:[%s8579_s7 + $0x438] sm:$0xff] }
 0x2f2   : > { %4249 = vmatprep.subr.bf16.mxu1 %v4248_v5  ;;  %v4280_v5 = vpack.c.bf16 %v1755_v2, %v1753_v1  ;;  %v4556_v1 = vpack.c.bf16 %v2552_v0, %v2550_v63  ;;  %v2549_v2 = vld [vmem:[%s8579_s7 + $0x420] sm:$0xff] }
 0x2f5   : > { %4251 = vmatpush1.bf16.msra.mxu1 %v4250_v14  ;;  %v4282_v14 = vpack.c.bf16 %v1754_v9, %v1752_v6  ;;  %v1786_v6 = vld [vmem:[%s8577_s5 + $0x590] sm:$0xff] }
 0x2f6   : > { %4253 = vmatprep.subr.bf16.mxu1 %v4252_v8  ;;  %v4284_v8 = vpack.c.bf16 %v1759_v13, %v1757_v12  ;;  %v2551_v9 = vld [vmem:[%s8579_s7 + $0x430] sm:$0xff]  ;;  %v1789_v13 = vld [vmem:[%s8577_s5 + $0x5a8] sm:$0xff] }
 0x2f9   : > { %4255 = vmatpush1.bf16.msra.mxu1 %v4254_v18  ;;  %v4286_v18 = vpack.c.bf16 %v1758_v16, %v1756_v15  ;;  %v2556_v15 = vld [vmem:[%s8579_s7 + $0x458] sm:$0xff] }
 0x2fa   : > { %4257 = vmatprep.subr.bf16.mxu1 %v4256_v20  ;;  %v4288_v20 = vpack.c.bf16 %v1763_v3, %v1761_v17  ;;  %v1791_v16 = vld [vmem:[%s8577_s5 + $0x5b8] sm:$0xff]  ;;  %v2553_v3 = vld [vmem:[%s8579_s7 + $0x440] sm:$0xff] }
 0x2fd   : > { %4259 = vmatpush1.bf16.msra.mxu1 %v4258_v22  ;;  %v4290_v22 = vpack.c.bf16 %v1762_v24, %v1760_v21  ;;  %v1788_v24 = vld [vmem:[%s8577_s5 + $0x5a0] sm:$0xff] }
 0x2fe   : > { %4261 = vmatprep.subr.bf16.mxu1 %v4260_v10  ;;  %v4292_v10 = vpack.c.bf16 %v1767_v25, %v1765_v49  ;;  %v1790_v49 = vld [vmem:[%s8577_s5 + $0x5b0] sm:$0xff] }
 0x301   : > { %4263 = vmatpush1.bf16.msra.mxu1 %v4262_v57  ;;  %v4294_v57 = vpack.c.bf16 %v1766_v34, %v1764_v26  ;;  %v1793_v26 = vld [vmem:[%s8577_s5 + $0x5c8] sm:$0xff] }
 0x302   : > { %4265 = vmatprep.subr.bf16.mxu1 %v4264_v29  ;;  %v1768_v29 = vld [vmem:[%s8577_s5 + $0x500] sm:$0xff] }
 0x303   : > { %v4298_v32 = vpack.c.bf16 %v1770_v51, %v1768_v29  ;;  %v2564_v29 = vld [vmem:[%s8579_s7 + $0x498] sm:$0xff]  ;;  %v4318_v51 = vpack.c.bf16 %v1790_v49, %v1788_v24  ;;  %v1806_v24 = vld [vmem:[%s8577_s5 + $0x630] sm:$0xff]  ;;  %v1809_v49 = vld [vmem:[%s8577_s5 + $0x648] sm:$0xff] }
 0x304   : > { %2050 = vmatmul.mubr.f32.vlgmr.msra.gmra.mrb[42].mxu1 %v1601_v11  ;;  %v1778_v11 = vld [vmem:[%s8577_s5 + $0x550] sm:$0xff] }
 0x305   : > { %2055 = vmatprep.mubr.f32.mxu1 %v1575_v59  ;;  %4267 = vmatpush1.bf16.msra.mxu1 %v4266_v37  ;;  %v1751_v59 = vld [vmem:[%s8577_s5 + $0x478] sm:$0xff]  ;;  %v1777_v37 = vld [vmem:[%s8577_s5 + $0x548] sm:$0xff] }
 0x306   : > { %4269 = vmatprep.subr.bf16.mxu1 %v4268_v40  ;;  %v4276_v62 = vpack.c.bf16 %v1751_v59, %v1749_v42  ;;  %v4302_v40 = vpack.c.bf16 %v1774_v36, %v1772_v54  ;;  %v4304_v43 = vpack.c.bf16 %v1779_v39, %v1777_v37  ;;  %v4552_v42 = vpack.c.bf16 %v2548_v50, %v2546_v45  ;;  %v2545_v59 = vld [vmem:[%s8579_s7 + $0x400] sm:$0xff]  ;;  %v1797_v54 = vld [vmem:[%s8577_s5 + $0x5e8] sm:$0xff]  ;;  %v2563_v39 = vld [vmem:[%s8579_s7 + $0x490] sm:$0xff] }
 0x307   : > { %v2561_v37 = vld [vmem:[%s8579_s7 + $0x480] sm:$0xff]  ;;  %v1518_v45 = vld [vmem:[#allocation3 + $0x16] ss:$2 sm:$0x7] }
 0x308   : > { %2056 = vmatmul.mubr.f32.gmra.mrb[44].mxu1 %v1574_v31  ;;  %v1775_v31 = vld [vmem:[%s8577_s5 + $0x538] sm:$0xff]  ;;  %4553 = vmatprep.subr.bf16.mxu0 %v4552_v42  ;;  %v1552_v0 = vrot.slane %v1518_v45, 5 }
 0x309   : > { %4271 = vmatpush1.bf16.msra.mxu1 %v4270_v47  ;;  %2126 = vmatprep.mubr.f32.mxu1 %v1604_v58  ;;  %v4300_v33 = vpack.c.bf16 %v1775_v31, %v1773_v30  ;;  %v4306_v47 = vpack.c.bf16 %v1778_v11, %v1776_v23  ;;  %v2547_v58 = vld [vmem:[%s8579_s7 + $0x410] sm:$0xff]  ;;  %v1792_v30 = vld [vmem:[%s8577_s5 + $0x5c0] sm:$0xff]  ;;  %v2568_v23 = vld [vmem:[%s8579_s7 + $0x4b8] sm:$0xff] }
 0x30a   : > { %4273 = vmatprep.subr.bf16.mxu1 %v4272_v48  ;;  %v1782_v48 = vld [vmem:[%s8577_s5 + $0x570] sm:$0xff]  ;;  %v1803_v42 = vld [vmem:[%s8577_s5 + $0x618] sm:$0xff] }
 0x30b   : > { %v1794_v31 = vld [vmem:[%s8577_s5 + $0x5d0] sm:$0xff]  ;;  %v1819_v45 = vld [vmem:[%s8577_s5 + $0x698] sm:$0xff] }
 0x30c   : > { %v4322_v11 = vpack.c.bf16 %v1794_v31, %v1792_v30  ;;  %v1808_v30 = vld [vmem:[%s8577_s5 + $0x640] sm:$0xff]  ;;  %v1810_v31 = vld [vmem:[%s8577_s5 + $0x650] sm:$0xff] }
 0x30d   : > { %4275 = vmatpush1.bf16.msra.mxu1 %v4274_v61  ;;  %v1787_v61 = vld [vmem:[%s8577_s5 + $0x598] sm:$0xff] }
 0x30e   : > { %4277 = vmatprep.subr.bf16.mxu1 %v4276_v62  ;;  %v4554_v62 = vpack.c.bf16 %v2547_v58, %v2545_v59  ;;  %v4312_v12 = vpack.c.bf16 %v1787_v61, %v1785_v53  ;;  %v2567_v53 = vld [vmem:[%s8579_s7 + $0x4b0] sm:$0xff]  ;;  %v2570_v59 = vld [vmem:[%s8579_s7 + $0x4c8] sm:$0xff]  ;;  %v2572_v58 = vld [vmem:[%s8579_s7 + $0x4d8] sm:$0xff] }
 0x30f   : > { %v1530_v61 = vld [vmem:[#allocation3 + $0x24] ss:$2 sm:$0x7] }
 0x310   : > { %4555 = vmatpush1.bf16.msra.mxu0 %v4554_v62  ;;  %v4326_v62 = vpack.c.bf16 %v1798_v44, %v1796_v41  ;;  %v1817_v41 = vld [vmem:[%s8577_s5 + $0x688] sm:$0xff] }
 0x311   : > { %4279 = vmatpush1.bf16.msra.mxu1 %v4278_v4  ;;  %v4310_v4 = vpack.c.bf16 %v1782_v48, %v1780_v35  ;;  %4557 = vmatprep.subr.bf16.mxu0 %v4556_v1  ;;  %v1801_v48 = vld [vmem:[%s8577_s5 + $0x608] sm:$0xff] }
 0x312   : > { %4281 = vmatprep.subr.bf16.mxu1 %v4280_v5  ;;  %v1784_v5 = vld [vmem:[%s8577_s5 + $0x580] sm:$0xff]  ;;  %v4328_v1 = vpack.c.bf16 %v1803_v42, %v1801_v48  ;;  %v2583_v48 = vld [vmem:[%s8579_s7 + $0x530] sm:$0xff]  ;;  %v4344_v42 = vpack.c.bf16 %v1819_v45, %v1817_v41  ;;  %v1845_v41 = vld [vmem:[%s8577_s5 + $0x768] sm:$0xff] }
 0x313   : > { %v4314_v21 = vpack.c.bf16 %v1786_v6, %v1784_v5  ;;  %v1805_v5 = vld [vmem:[%s8577_s5 + $0x628] sm:$0xff]  ;;  %v4576_v6 = vpack.c.bf16 %v2572_v58, %v2570_v59  ;;  %v1816_v59 = vld [vmem:[%s8577_s5 + $0x680] sm:$0xff]  ;;  %v1818_v58 = vld [vmem:[%s8577_s5 + $0x690] sm:$0xff] }
 0x315   : > { %4283 = vmatpush1.bf16.msra.mxu1 %v4282_v14  ;;  %v4558_v14 = vpack.c.bf16 %v2551_v9, %v2549_v2  ;;  %v1800_v2 = vld [vmem:[%s8577_s5 + $0x600] sm:$0xff]  ;;  %v1576_v9 = vrot.slane %v1530_v61, 2  ;;  %v1821_v61 = vld [vmem:[%s8577_s5 + $0x6a8] sm:$0xff] }
 0x316   : > { %4285 = vmatprep.subr.bf16.mxu1 %v4284_v8  ;;  %v2554_v8 = vld [vmem:[%s8579_s7 + $0x448] sm:$0xff] }
 0x317   : > { %v4560_v17 = vpack.c.bf16 %v2556_v15, %v2554_v8  ;;  %4559 = vmatpush1.bf16.msra.mxu0 %v4558_v14  ;;  %v2571_v14 = vld [vmem:[%s8579_s7 + $0x4d0] sm:$0xff]  ;;  %v2574_v8 = vld [vmem:[%s8579_s7 + $0x4e8] sm:$0xff]  ;;  %v2576_v15 = vld [vmem:[%s8579_s7 + $0x4f8] sm:$0xff] }
 0x319   : > { %4287 = vmatpush1.bf16.msra.mxu1 %v4286_v18  ;;  %v2555_v18 = vld [vmem:[%s8579_s7 + $0x450] sm:$0xff]  ;;  %4561 = vmatprep.subr.bf16.mxu0 %v4560_v17 }
 0x31a   : > { %4289 = vmatprep.subr.bf16.mxu1 %v4288_v20  ;;  %v2558_v20 = vld [vmem:[%s8579_s7 + $0x468] sm:$0xff]  ;;  %v4562_v25 = vpack.c.bf16 %v2555_v18, %v2553_v3 }
 0x31b   : > { %v6521_v3 = vld [vmem:[#allocation3 + $0x2b] ss:$2 sm:$0x7] }
 0x31c   : > { %4563 = vmatpush1.bf16.msra.mxu0 %v4562_v25 }
 0x31d   : > { %4291 = vmatpush1.bf16.msra.mxu1 %v4290_v22  ;;  %v2560_v22 = vld [vmem:[%s8579_s7 + $0x478] sm:$0xff] }
 0x31e   : > { %4293 = vmatprep.subr.bf16.mxu1 %v4292_v10  ;;  %v4316_v10 = vpack.c.bf16 %v1791_v16, %v1789_v13  ;;  %v4564_v34 = vpack.c.bf16 %v2560_v22, %v2558_v20  ;;  %v2569_v13 = vld [vmem:[%s8579_s7 + $0x4c0] sm:$0xff]  ;;  %v1506_v16 = vld [vmem:[#allocation3 + $0x8] ss:$2 sm:$0x7] }
 0x31f   : > { %v1594_v18 = vsel %vm1073_vm6, %v1506_v16, %v1552_v0  ;;  %v4578_v25 = vpack.c.bf16 %v2571_v14, %v2569_v13  ;;  %v1822_v13 = vld [vmem:[%s8577_s5 + $0x6b0] sm:$0xff]  ;;  %v1825_v14 = vld [vmem:[%s8577_s5 + $0x6c8] sm:$0xff] }
 0x320   : > { %4565 = vmatprep.subr.bf16.mxu0 %v4564_v34  ;;  %v1603_v22 = vsel %vm1056_vm4, %v1594_v18, %v1576_v9  ;;  %v2573_v34 = vld [vmem:[%s8579_s7 + $0x4e0] sm:$0xff]  ;;  %v2591_v18 = vld [vmem:[%s8579_s7 + $0x570] sm:$0xff] }
 0x321   : > { %4295 = vmatpush1.bf16.msra.mxu1 %v4294_v57  ;;  %v1795_v57 = vld [vmem:[%s8577_s5 + $0x5d8] sm:$0xff] }
 0x322   : > { %4297 = vmatprep.subr.bf16.mxu1 %v4296_v7  ;;  %v2562_v7 = vld [vmem:[%s8579_s7 + $0x488] sm:$0xff] }
 0x323   : > { %v4568_v36 = vpack.c.bf16 %v2564_v29, %v2562_v7  ;;  %v2580_v7 = vld [vmem:[%s8579_s7 + $0x518] sm:$0xff] }
 0x325   : > { %4299 = vmatpush1.bf16.msra.mxu1 %v4298_v32  ;;  %v4566_v32 = vpack.c.bf16 %v2559_v28, %v2557_v27  ;;  %v2575_v27 = vld [vmem:[%s8579_s7 + $0x4f0] sm:$0xff]  ;;  %v1579_v28 = vrot.slane %v6521_v3, 2  ;;  %v1879_v3 = vld [vmem:[%s8577_s5 + $0x878] sm:$0xff] }
 0x326   : > { %4301 = vmatprep.subr.bf16.mxu1 %v4300_v33  ;;  %v4320_v33 = vpack.c.bf16 %v1795_v57, %v1793_v26  ;;  %v4580_v26 = vpack.c.bf16 %v2576_v15, %v2574_v8  ;;  %v2578_v57 = vld [vmem:[%s8579_s7 + $0x508] sm:$0xff]  ;;  %v1827_v15 = vld [vmem:[%s8577_s5 + $0x6d8] sm:$0xff] }
 0x327   : > { %4567 = vmatpush1.bf16.msra.mxu0 %v4566_v32  ;;  %v1813_v32 = vld [vmem:[%s8577_s5 + $0x668] sm:$0xff] }
 0x328   : > { %4569 = vmatprep.subr.bf16.mxu0 %v4568_v36  ;;  %v2579_v36 = vld [vmem:[%s8579_s7 + $0x510] sm:$0xff] }
 0x329   : > { %4303 = vmatpush1.bf16.msra.mxu1 %v4302_v40  ;;  %v1799_v40 = vld [vmem:[%s8577_s5 + $0x5f8] sm:$0xff] }
 0x32a   : > { %4305 = vmatprep.subr.bf16.mxu1 %v4304_v43  ;;  %v2566_v43 = vld [vmem:[%s8579_s7 + $0x4a8] sm:$0xff]  ;;  %v4324_v35 = vpack.c.bf16 %v1799_v40, %v1797_v54  ;;  %v2577_v54 = vld [vmem:[%s8579_s7 + $0x500] sm:$0xff]  ;;  %v2584_v40 = vld [vmem:[%s8579_s7 + $0x538] sm:$0xff] }
 0x32b   : > { %v4572_v50 = vpack.c.bf16 %v2568_v23, %v2566_v43  ;;  %v4338_v43 = vpack.c.bf16 %v1810_v31, %v1808_v30  ;;  %v4340_v23 = vpack.c.bf16 %v1815_v38, %v1813_v32  ;;  %v4586_v44 = vpack.c.bf16 %v2579_v36, %v2577_v54  ;;  %v1832_v31 = vld [vmem:[%s8577_s5 + $0x700] sm:$0xff]  ;;  %v1834_v32 = vld [vmem:[%s8577_s5 + $0x710] sm:$0xff]  ;;  %v1839_v38 = vld [vmem:[%s8577_s5 + $0x738] sm:$0xff] }
 0x32c   : > { %v1836_v36 = vld [vmem:[%s8577_s5 + $0x720] sm:$0xff] }
 0x32d   : > { %4307 = vmatpush1.bf16.msra.mxu1 %v4306_v47  ;;  %v4570_v47 = vpack.c.bf16 %v2563_v39, %v2561_v37  ;;  %v1606_v37 = vsel %vm1056_vm4, %v6032_v55, %v1579_v28  ;;  %v2582_v39 = vld [vmem:[%s8579_s7 + $0x528] sm:$0xff]  ;;  %v1814_v55 = vld [vmem:[%s8577_s5 + $0x670] sm:$0xff] }
 0x32e   : > { %4309 = vmatprep.subr.bf16.mxu1 %v4308_v52  ;;  %v2565_v52 = vld [vmem:[%s8579_s7 + $0x4a0] sm:$0xff] }
 0x32f   : > { %4571 = vmatpush1.bf16.msra.mxu0 %v4570_v47  ;;  %v4574_v63 = vpack.c.bf16 %v2567_v53, %v2565_v52  ;;  %v4588_v47 = vpack.c.bf16 %v2584_v40, %v2582_v39  ;;  %v2588_v52 = vld [vmem:[%s8579_s7 + $0x558] sm:$0xff]  ;;  %v1841_v39 = vld [vmem:[%s8577_s5 + $0x748] sm:$0xff] }
 0x330   : > { %4573 = vmatprep.subr.bf16.mxu0 %v4572_v50  ;;  %v2586_v50 = vld [vmem:[%s8579_s7 + $0x548] sm:$0xff]  ;;  %v1843_v40 = vld [vmem:[%s8577_s5 + $0x758] sm:$0xff] }
 0x331   : > { %4311 = vmatpush1.bf16.msra.mxu1 %v4310_v4  ;;  %v1802_v4 = vld [vmem:[%s8577_s5 + $0x610] sm:$0xff]  ;;  %v4592_v0 = vpack.c.bf16 %v2588_v52, %v2586_v50  ;;  %v1849_v50 = vld [vmem:[%s8577_s5 + $0x788] sm:$0xff]  ;;  %v1851_v52 = vld [vmem:[%s8577_s5 + $0x798] sm:$0xff] }
 0x332   : > { %4313 = vmatprep.subr.bf16.mxu1 %v4312_v12  ;;  %v1807_v12 = vld [vmem:[%s8577_s5 + $0x638] sm:$0xff]  ;;  %v4330_v17 = vpack.c.bf16 %v1802_v4, %v1800_v2  ;;  %v2587_v2 = vld [vmem:[%s8579_s7 + $0x550] sm:$0xff]  ;;  %v2590_v4 = vld [vmem:[%s8579_s7 + $0x568] sm:$0xff] }
 0x333   : > { %4575 = vmatpush1.bf16.msra.mxu0 %v4574_v63  ;;  %v4332_v20 = vpack.c.bf16 %v1807_v12, %v1805_v5  ;;  %v1823_v63 = vld [vmem:[%s8577_s5 + $0x6b8] sm:$0xff]  ;;  %v1820_v12 = vld [vmem:[%s8577_s5 + $0x6a0] sm:$0xff] }
 0x334   : > { %4577 = vmatprep.subr.bf16.mxu0 %v4576_v6  ;;  %v2592_v5 = vld [vmem:[%s8579_s7 + $0x578] sm:$0xff]  ;;  %v4346_v6 = vpack.c.bf16 %v1818_v58, %v1816_v59  ;;  %v1848_v59 = vld [vmem:[%s8577_s5 + $0x780] sm:$0xff]  ;;  %v1850_v58 = vld [vmem:[%s8577_s5 + $0x790] sm:$0xff] }
 0x335   : > { %4315 = vmatpush1.bf16.msra.mxu1 %v4314_v21  ;;  %v1804_v21 = vld [vmem:[%s8577_s5 + $0x620] sm:$0xff]  ;;  %v4596_v16 = vpack.c.bf16 %v2592_v5, %v2590_v4  ;;  %v1857_v4 = vld [vmem:[%s8577_s5 + $0x7c8] sm:$0xff]  ;;  %v1859_v5 = vld [vmem:[%s8577_s5 + $0x7d8] sm:$0xff] }
 0x336   : > { %4317 = vmatprep.subr.bf16.mxu1 %v4316_v10  ;;  %v1811_v10 = vld [vmem:[%s8577_s5 + $0x658] sm:$0xff]  ;;  %v4334_v29 = vpack.c.bf16 %v1806_v24, %v1804_v21  ;;  %v4352_v21 = vpack.c.bf16 %v1827_v15, %v1825_v14  ;;  %v1824_v24 = vld [vmem:[%s8577_s5 + $0x6c0] sm:$0xff]  ;;  %v1861_v14 = vld [vmem:[%s8577_s5 + $0x7e8] sm:$0xff] }
 0x337   : > { %4579 = vmatpush1.bf16.msra.mxu0 %v4578_v25 }
 0x338   : > { %4581 = vmatprep.subr.bf16.mxu0 %v4580_v26 }
 0x339   : > { %4319 = vmatpush1.bf16.msra.mxu1 %v4318_v51  ;;  %v4336_v51 = vpack.c.bf16 %v1811_v10, %v1809_v49  ;;  %v1826_v49 = vld [vmem:[%s8577_s5 + $0x6d0] sm:$0xff]  ;;  %v1831_v10 = vld [vmem:[%s8577_s5 + $0x6f8] sm:$0xff] }
 0x33a   : > { %4321 = vmatprep.subr.bf16.mxu1 %v4320_v33  ;;  %v4582_v33 = vpack.c.bf16 %v2575_v27, %v2573_v34  ;;  %v4354_v26 = vpack.c.bf16 %v1826_v49, %v1824_v24  ;;  %v1828_v27 = vld [vmem:[%s8577_s5 + $0x6e0] sm:$0xff]  ;;  %v1534_v24 = vld [vmem:[#allocation3 + $0x2a] ss:$2 sm:$0x7] }
 0x33c   : > { %4583 = vmatpush1.bf16.msra.mxu0 %v4582_v33  ;;  %v1837_v33 = vld [vmem:[%s8577_s5 + $0x728] sm:$0xff] }
 0x33d   : > { %4323 = vmatpush1.bf16.msra.mxu1 %v4322_v11  ;;  %v1812_v11 = vld [vmem:[%s8577_s5 + $0x660] sm:$0xff]  ;;  %v4364_v54 = vpack.c.bf16 %v1839_v38, %v1837_v33 }
 0x33e   : > { %4325 = vmatprep.subr.bf16.mxu1 %v4324_v35  ;;  %v2581_v35 = vld [vmem:[%s8579_s7 + $0x520] sm:$0xff]  ;;  %v4342_v53 = vpack.c.bf16 %v1814_v55, %v1812_v11  ;;  %v1842_v55 = vld [vmem:[%s8577_s5 + $0x750] sm:$0xff] }
 0x33f   : > { %v1840_v11 = vld [vmem:[%s8577_s5 + $0x740] sm:$0xff] }
 0x340   : > { %v4370_v45 = vpack.c.bf16 %v1842_v55, %v1840_v11  ;;  %v1880_v55 = vld [vmem:[%s8577_s5 + $0x880] sm:$0xff] }
 0x341   : > { %4327 = vmatpush1.bf16.msra.mxu1 %v4326_v62  ;;  %v4590_v62 = vpack.c.bf16 %v2583_v48, %v2581_v35  ;;  %v1844_v35 = vld [vmem:[%s8577_s5 + $0x760] sm:$0xff]  ;;  %v1846_v48 = vld [vmem:[%s8577_s5 + $0x770] sm:$0xff] }
 0x342   : > { %4329 = vmatprep.subr.bf16.mxu1 %v4328_v1  ;;  %v2585_v1 = vld [vmem:[%s8579_s7 + $0x540] sm:$0xff] }
 0x343   : > { %v4594_v8 = vpack.c.bf16 %v2587_v2, %v2585_v1  ;;  %v1852_v1 = vld [vmem:[%s8577_s5 + $0x7a0] sm:$0xff]  ;;  %v1854_v2 = vld [vmem:[%s8577_s5 + $0x7b0] sm:$0xff] }
 0x344   : > { %2127 = vmatmul.mubr.f32.vlgmr.msra.gmra.mrb[42].mxu1 %v1603_v22  ;;  %v1829_v22 = vld [vmem:[%s8577_s5 + $0x6e8] sm:$0xff] }
 0x345   : > { %2132 = vmatprep.mubr.f32.mxu1 %v1577_v46  ;;  %4331 = vmatpush1.bf16.msra.mxu1 %v4330_v17  ;;  %v4584_v46 = vpack.c.bf16 %v2580_v7, %v2578_v57  ;;  %v2589_v17 = vld [vmem:[%s8579_s7 + $0x560] sm:$0xff]  ;;  %v4356_v34 = vpack.c.bf16 %v1831_v10, %v1829_v22  ;;  %v1830_v57 = vld [vmem:[%s8577_s5 + $0x6f0] sm:$0xff]  ;;  %v1833_v7 = vld [vmem:[%s8577_s5 + $0x708] sm:$0xff] }
 0x346   : > { %4333 = vmatprep.subr.bf16.mxu1 %v4332_v20  ;;  %v4350_v20 = vpack.c.bf16 %v1822_v13, %v1820_v12  ;;  %v4598_v25 = vpack.c.bf16 %v2591_v18, %v2589_v17  ;;  %v1856_v12 = vld [vmem:[%s8577_s5 + $0x7c0] sm:$0xff]  ;;  %v1858_v13 = vld [vmem:[%s8577_s5 + $0x7d0] sm:$0xff] }
 0x347   : > { %4585 = vmatprep.subr.bf16.mxu0 %v4584_v46  ;;  %v4362_v46 = vpack.c.bf16 %v1834_v32, %v1832_v31  ;;  %v4386_v15 = vpack.c.bf16 %v1858_v13, %v1856_v12  ;;  %v1860_v17 = vld [vmem:[%s8577_s5 + $0x7e0] sm:$0xff]  ;;  %v1862_v18 = vld [vmem:[%s8577_s5 + $0x7f0] sm:$0xff]  ;;  %v1873_v31 = vld [vmem:[%s8577_s5 + $0x848] sm:$0xff] }
 0x348   : > { %2133 = vmatmul.mubr.f32.gmra.mrb[44].mxu1 %v1576_v9  ;;  %4587 = vmatpush1.bf16.msra.mxu0 %v4586_v44  ;;  %v4348_v9 = vpack.c.bf16 %v1823_v63, %v1821_v61  ;;  %v1847_v44 = vld [vmem:[%s8577_s5 + $0x778] sm:$0xff]  ;;  %v1853_v61 = vld [vmem:[%s8577_s5 + $0x7a8] sm:$0xff]  ;;  %v4378_v63 = vpack.c.bf16 %v1850_v58, %v1848_v59  ;;  %v4390_v49 = vpack.c.bf16 %v1862_v18, %v1860_v17  ;;  %v1864_v22 = vld [vmem:[%s8577_s5 + $0x800] sm:$0xff] }
 0x349   : > { %4335 = vmatpush1.bf16.msra.mxu1 %v4334_v29  ;;  %2203 = vmatprep.mubr.f32.mxu1 %v1606_v37  ;;  %v1835_v29 = vld [vmem:[%s8577_s5 + $0x718] sm:$0xff]  ;;  %v1838_v37 = vld [vmem:[%s8577_s5 + $0x730] sm:$0xff]  ;;  %v1888_v58 = vld [vmem:[%s8577_s5 + $0x8c0] sm:$0xff] }
 0x34a   : > { %4337 = vmatprep.subr.bf16.mxu1 %v4336_v51  ;;  %4589 = vmatprep.subr.bf16.mxu0 %v4588_v47  ;;  %v4358_v51 = vpack.c.bf16 %v1830_v57, %v1828_v27  ;;  %v4360_v30 = vpack.c.bf16 %v1835_v29, %v1833_v7  ;;  %v4372_v47 = vpack.c.bf16 %v1847_v44, %v1845_v41  ;;  %v1866_v10 = vld [vmem:[%s8577_s5 + $0x810] sm:$0xff]  ;;  %v1871_v27 = vld [vmem:[%s8577_s5 + $0x838] sm:$0xff]  ;;  %v1868_v29 = vld [vmem:[%s8577_s5 + $0x820] sm:$0xff] }
 0x34b   : > { %v4394_v57 = vpack.c.bf16 %v1866_v10, %v1864_v22  ;;  %v1875_v32 = vld [vmem:[%s8577_s5 + $0x858] sm:$0xff]  ;;  %v1882_v41 = vld [vmem:[%s8577_s5 + $0x890] sm:$0xff]  ;;  %v1885_v44 = vld [vmem:[%s8577_s5 + $0x8a8] sm:$0xff] }
 0x34c   : > { %4591 = vmatpush1.bf16.msra.mxu0 %v4590_v62  ;;  %v1855_v62 = vld [vmem:[%s8577_s5 + $0x7b8] sm:$0xff]  ;;  %v4400_v38 = vpack.c.bf16 %v1875_v32, %v1873_v31 }
 0x34d   : > { %4339 = vmatpush1.bf16.msra.mxu1 %v4338_v43  ;;  %4593 = vmatprep.subr.bf16.mxu0 %v4592_v0  ;;  %v4366_v43 = vpack.c.bf16 %v1838_v37, %v1836_v36  ;;  %v4380_v0 = vpack.c.bf16 %v1855_v62, %v1853_v61  ;;  %v1876_v37 = vld [vmem:[%s8577_s5 + $0x860] sm:$0xff]  ;;  %v1890_v61 = vld [vmem:[%s8577_s5 + $0x8d0] sm:$0xff]  ;;  %v1893_v62 = vld [vmem:[%s8577_s5 + $0x8e8] sm:$0xff] }
 0x34e   : > { %4341 = vmatprep.subr.bf16.mxu1 %v4340_v23  ;;  %v4368_v23 = vpack.c.bf16 %v1843_v40, %v1841_v39  ;;  %v1878_v39 = vld [vmem:[%s8577_s5 + $0x870] sm:$0xff]  ;;  %v1881_v40 = vld [vmem:[%s8577_s5 + $0x888] sm:$0xff]  ;;  %v2424_v17 = vld [vmem:[%s8579_s7 + $0x38] sm:$0xff] }
 0x34f   : > { %v2428_v22 = vld [vmem:[%s8579_s7 + $0x58] sm:$0xff] }
 0x350   : > { %4595 = vmatpush1.bf16.msra.mxu0 %v4594_v8  ;;  %v1863_v8 = vld [vmem:[%s8577_s5 + $0x7f8] sm:$0xff] }
 0x351   : > { %4343 = vmatpush1.bf16.msra.mxu1 %v4342_v53  ;;  %4597 = vmatprep.subr.bf16.mxu0 %v4596_v16  ;;  %v4374_v53 = vpack.c.bf16 %v1846_v48, %v1844_v35  ;;  %v4388_v16 = vpack.c.bf16 %v1863_v8, %v1861_v14  ;;  %v1884_v48 = vld [vmem:[%s8577_s5 + $0x8a0] sm:$0xff]  ;;  %v2419_v8 = vld [vmem:[%s8579_s7 + $0x10] sm:$0xff]  ;;  %v2436_v31 = vld [vmem:[%s8579_s7 + $0x98] sm:$0xff] }
 0x352   : > { %4345 = vmatprep.subr.bf16.mxu1 %v4344_v42  ;;  %v4376_v42 = vpack.c.bf16 %v1851_v52, %v1849_v50  ;;  %v1886_v50 = vld [vmem:[%s8577_s5 + $0x8b0] sm:$0xff]  ;;  %v1889_v52 = vld [vmem:[%s8577_s5 + $0x8c8] sm:$0xff]  ;;  %v2417_v14 = vld [vmem:[%s8579_s7] sm:$0xff] }
 0x353   : > { %v4426_v18 = vpack.c.bf16 %v2419_v8, %v2417_v14  ;;  %v2462_v14 = vld [vmem:[%s8579_s7 + $0x168] sm:$0xff]  ;;  %v2464_v8 = vld [vmem:[%s8579_s7 + $0x178] sm:$0xff] }
 0x354   : > { %4599 = vmatpush1.bf16.msra.mxu0 %v4598_v25 }
 0x355   : > { %4347 = vmatpush1.bf16.msra.mxu1 %v4346_v6  ;;  %v4382_v6 = vpack.c.bf16 %v1854_v2, %v1852_v1  ;;  %v1892_v2 = vld [vmem:[%s8577_s5 + $0x8e0] sm:$0xff] }
 0x356   : > { %4349 = vmatprep.subr.bf16.mxu1 %v4348_v9  ;;  %v4384_v9 = vpack.c.bf16 %v1859_v5, %v1857_v4  ;;  %v1894_v4 = vld [vmem:[%s8577_s5 + $0x8f0] sm:$0xff]  ;;  %v2418_v5 = vld [vmem:[%s8579_s7 + $0x8] sm:$0xff] }
 0x357   : > { %v4422_v12 = vpack.c.bf16 %v1894_v4, %v1892_v2  ;;  %v2455_v2 = vld [vmem:[%s8579_s7 + $0x130] sm:$0xff]  ;;  %v2458_v4 = vld [vmem:[%s8579_s7 + $0x148] sm:$0xff] }
 0x359   : > { %4351 = vmatpush1.bf16.msra.mxu1 %v4350_v20  ;;  %v1865_v20 = vld [vmem:[%s8577_s5 + $0x808] sm:$0xff] }
 0x35a   : > { %4353 = vmatprep.subr.bf16.mxu1 %v4352_v21  ;;  %v1867_v21 = vld [vmem:[%s8577_s5 + $0x818] sm:$0xff] }
 0x35b   : > { %v4392_v25 = vpack.c.bf16 %v1867_v21, %v1865_v20  ;;  %v2421_v21 = vld [vmem:[%s8579_s7 + $0x20] sm:$0xff] }
 0x35d   : > { %4355 = vmatpush1.bf16.msra.mxu1 %v4354_v26  ;;  %v1578_v26 = vrot.slane %v1534_v24, 2  ;;  %v2423_v24 = vld [vmem:[%s8579_s7 + $0x30] sm:$0xff] }
 0x35e   : > { %4357 = vmatprep.subr.bf16.mxu1 %v4356_v34  ;;  %v1869_v34 = vld [vmem:[%s8577_s5 + $0x828] sm:$0xff]  ;;  %v4430_v10 = vpack.c.bf16 %v2423_v24, %v2421_v21  ;;  %v2468_v24 = vld [vmem:[%s8579_s7 + $0x198] sm:$0xff] }
 0x35f   : > { %v4396_v7 = vpack.c.bf16 %v1871_v27, %v1869_v34  ;;  %v2425_v34 = vld [vmem:[%s8579_s7 + $0x40] sm:$0xff]  ;;  %v2430_v27 = vld [vmem:[%s8579_s7 + $0x68] sm:$0xff] }
 0x360   : > { %v2466_v21 = vld [vmem:[%s8579_s7 + $0x188] sm:$0xff] }
 0x361   : > { %4359 = vmatpush1.bf16.msra.mxu1 %v4358_v51  ;;  %v1870_v51 = vld [vmem:[%s8577_s5 + $0x830] sm:$0xff] }
 0x362   : > { %4361 = vmatprep.subr.bf16.mxu1 %v4360_v30  ;;  %v1605_v30 = vsel %vm1056_vm4, %v6035_v56, %v1578_v26  ;;  %v4398_v33 = vpack.c.bf16 %v1870_v51, %v1868_v29  ;;  %v1872_v56 = vld [vmem:[%s8577_s5 + $0x840] sm:$0xff]  ;;  %v2431_v51 = vld [vmem:[%s8579_s7 + $0x70] sm:$0xff] }
 0x363   : > { %v2429_v29 = vld [vmem:[%s8579_s7 + $0x60] sm:$0xff] }
 0x364   : > { %v4438_v32 = vpack.c.bf16 %v2431_v51, %v2429_v29  ;;  %v2472_v29 = vld [vmem:[%s8579_s7 + $0x1b8] sm:$0xff]  ;;  %v2598_v51 = vld [vmem:[%s8579_s7 + $0x5a8] sm:$0xff] }
 0x365   : > { %4363 = vmatpush1.bf16.msra.mxu1 %v4362_v46  ;;  %v1874_v46 = vld [vmem:[%s8577_s5 + $0x850] sm:$0xff] }
 0x366   : > { %4365 = vmatprep.subr.bf16.mxu1 %v4364_v54  ;;  %v1877_v54 = vld [vmem:[%s8577_s5 + $0x868] sm:$0xff] }
 0x367   : > { %v4404_v36 = vpack.c.bf16 %v1879_v3, %v1877_v54  ;;  %v2440_v54 = vld [vmem:[%s8579_s7 + $0xb8] sm:$0xff] }
 0x369   : > { %4367 = vmatpush1.bf16.msra.mxu1 %v4366_v43  ;;  %v1883_v43 = vld [vmem:[%s8577_s5 + $0x898] sm:$0xff] }
 0x36a   : > { %4369 = vmatprep.subr.bf16.mxu1 %v4368_v23  ;;  %v4406_v23 = vpack.c.bf16 %v1878_v39, %v1876_v37  ;;  %v4408_v11 = vpack.c.bf16 %v1883_v43, %v1881_v40  ;;  %v2439_v37 = vld [vmem:[%s8579_s7 + $0xb0] sm:$0xff]  ;;  %v2442_v39 = vld [vmem:[%s8579_s7 + $0xc8] sm:$0xff]  ;;  %v2444_v40 = vld [vmem:[%s8579_s7 + $0xd8] sm:$0xff] }
 0x36d   : > { %4371 = vmatpush1.bf16.msra.mxu1 %v4370_v45  ;;  %v1887_v45 = vld [vmem:[%s8577_s5 + $0x8b8] sm:$0xff] }
 0x36e   : > { %4373 = vmatprep.subr.bf16.mxu1 %v4372_v47  ;;  %v4410_v47 = vpack.c.bf16 %v1882_v41, %v1880_v55  ;;  %v4412_v35 = vpack.c.bf16 %v1887_v45, %v1885_v44  ;;  %v2443_v55 = vld [vmem:[%s8579_s7 + $0xd0] sm:$0xff]  ;;  %v2446_v41 = vld [vmem:[%s8579_s7 + $0xe8] sm:$0xff]  ;;  %v2448_v44 = vld [vmem:[%s8579_s7 + $0xf8] sm:$0xff] }
 0x371   : > { %4375 = vmatpush1.bf16.msra.mxu1 %v4374_v53  ;;  %v1891_v53 = vld [vmem:[%s8577_s5 + $0x8d8] sm:$0xff] }
 0x372   : > { %4377 = vmatprep.subr.bf16.mxu1 %v4376_v42  ;;  %v4414_v42 = vpack.c.bf16 %v1886_v50, %v1884_v48  ;;  %v4416_v59 = vpack.c.bf16 %v1891_v53, %v1889_v52  ;;  %v2447_v48 = vld [vmem:[%s8579_s7 + $0xf0] sm:$0xff]  ;;  %v2450_v50 = vld [vmem:[%s8579_s7 + $0x108] sm:$0xff]  ;;  %v2452_v52 = vld [vmem:[%s8579_s7 + $0x118] sm:$0xff] }
 0x375   : > { %4379 = vmatpush1.bf16.msra.mxu1 %v4378_v63  ;;  %v1895_v63 = vld [vmem:[%s8577_s5 + $0x8f8] sm:$0xff] }
 0x376   : > { %4381 = vmatprep.subr.bf16.mxu1 %v4380_v0  ;;  %v4418_v0 = vpack.c.bf16 %v1890_v61, %v1888_v58  ;;  %v4420_v1 = vpack.c.bf16 %v1895_v63, %v1893_v62  ;;  %v2451_v58 = vld [vmem:[%s8579_s7 + $0x110] sm:$0xff]  ;;  %v2454_v61 = vld [vmem:[%s8579_s7 + $0x128] sm:$0xff]  ;;  %v2456_v62 = vld [vmem:[%s8579_s7 + $0x138] sm:$0xff] }
 0x379   : > { %4383 = vmatpush1.bf16.msra.mxu1 %v4382_v6  ;;  %v2420_v6 = vld [vmem:[%s8579_s7 + $0x18] sm:$0xff] }
 0x37a   : > { %4385 = vmatprep.subr.bf16.mxu1 %v4384_v9  ;;  %v1538_v9 = vld [vmem:[#allocation3 + $0x2c] ss:$2 sm:$0x7]  ;;  %v4424_v13 = vpack.c.bf16 %v2420_v6, %v2418_v5  ;;  %v2460_v5 = vld [vmem:[%s8579_s7 + $0x158] sm:$0xff] }
 0x37d   : > { %4387 = vmatpush1.bf16.msra.mxu1 %v4386_v15  ;;  %v1580_v15 = vrot.slane %v1538_v9, 2  ;;  %v4464_v9 = vpack.c.bf16 %v2460_v5, %v2458_v4  ;;  %v2484_v4 = vld [vmem:[%s8579_s7 + $0x218] sm:$0xff]  ;;  %v2610_v5 = vld [vmem:[%s8579_s7 + $0x608] sm:$0xff] }
 0x37e   : > { %4389 = vmatprep.subr.bf16.mxu1 %v4388_v16  ;;  %v2422_v16 = vld [vmem:[%s8579_s7 + $0x28] sm:$0xff] }
 0x37f   : > { %v4428_v20 = vpack.c.bf16 %v2424_v17, %v2422_v16  ;;  %v4468_v16 = vpack.c.bf16 %v2464_v8, %v2462_v14  ;;  %v2461_v17 = vld [vmem:[%s8579_s7 + $0x160] sm:$0xff] }
 0x381   : > { %4391 = vmatpush1.bf16.msra.mxu1 %v4390_v49  ;;  %v1607_v49 = vsel %vm1056_vm4, %v6040_v60, %v1580_v15  ;;  %v2427_v60 = vld [vmem:[%s8579_s7 + $0x50] sm:$0xff] }
 0x382   : > { %4393 = vmatprep.subr.bf16.mxu1 %v4392_v25  ;;  %v2426_v25 = vld [vmem:[%s8579_s7 + $0x48] sm:$0xff] }
 0x384   : > { %2204 = vmatmul.mubr.f32.vlgmr.msra.gmra.mrb[42].mxu1 %v1605_v30  ;;  %v2434_v30 = vld [vmem:[%s8579_s7 + $0x88] sm:$0xff] }
 0x385   : > { %2209 = vmatprep.mubr.f32.mxu1 %v1579_v28  ;;  %4395 = vmatpush1.bf16.msra.mxu1 %v4394_v57  ;;  %v4402_v28 = vpack.c.bf16 %v1874_v46, %v1872_v56  ;;  %v4434_v57 = vpack.c.bf16 %v2427_v60, %v2425_v34  ;;  %v2435_v56 = vld [vmem:[%s8579_s7 + $0x90] sm:$0xff]  ;;  %v2438_v46 = vld [vmem:[%s8579_s7 + $0xa8] sm:$0xff] }
 0x386   : > { %4397 = vmatprep.subr.bf16.mxu1 %v4396_v7 }
 0x388   : > { %2210 = vmatmul.mubr.f32.gmra.mrb[44].mxu1 %v1578_v26  ;;  %v4432_v26 = vpack.c.bf16 %v2428_v22, %v2426_v25  ;;  %v4472_v25 = vpack.c.bf16 %v2468_v24, %v2466_v21  ;;  %v2596_v22 = vld [vmem:[%s8579_s7 + $0x598] sm:$0xff] }
 0x389   : > { %4399 = vmatpush1.bf16.msra.mxu1 %v4398_v33  ;;  %2280 = vmatprep.mubr.f32.mxu1 %v5190_v19  ;;  %v4440_v33 = vpack.c.bf16 %v2436_v31, %v2434_v30  ;;  %v2600_v31 = vld [vmem:[%s8579_s7 + $0x5b8] sm:$0xff] }
 0x38a   : > { %4401 = vmatprep.subr.bf16.mxu1 %v4400_v38  ;;  %v2433_v38 = vld [vmem:[%s8579_s7 + $0x80] sm:$0xff] }
 0x38b   : > { %v4442_v3 = vpack.c.bf16 %v2435_v56, %v2433_v38  ;;  %v4604_v38 = vpack.c.bf16 %v2600_v31, %v2598_v51  ;;  %v2611_v51 = vld [vmem:[%s8579_s7 + $0x610] sm:$0xff]  ;;  %v2488_v31 = vld [vmem:[%s8579_s7 + $0x238] sm:$0xff] }
 0x38d   : > { %4403 = vmatpush1.bf16.msra.mxu1 %v4402_v28  ;;  %v4444_v28 = vpack.c.bf16 %v2440_v54, %v2438_v46  ;;  %v2597_v46 = vld [vmem:[%s8579_s7 + $0x5a0] sm:$0xff]  ;;  %v2599_v54 = vld [vmem:[%s8579_s7 + $0x5b0] sm:$0xff] }
 0x38e   : > { %4405 = vmatprep.subr.bf16.mxu1 %v4404_v36  ;;  %v2437_v36 = vld [vmem:[%s8579_s7 + $0xa0] sm:$0xff] }
 0x38f   : > { %v4446_v43 = vpack.c.bf16 %v2439_v37, %v2437_v36  ;;  %v2476_v36 = vld [vmem:[%s8579_s7 + $0x1d8] sm:$0xff]  ;;  %v2602_v37 = vld [vmem:[%s8579_s7 + $0x5c8] sm:$0xff] }
 0x391   : > { %4407 = vmatpush1.bf16.msra.mxu1 %v4406_v23  ;;  %v4448_v23 = vpack.c.bf16 %v2444_v40, %v2442_v39  ;;  %v2604_v40 = vld [vmem:[%s8579_s7 + $0x5d8] sm:$0xff] }
 0x392   : > { %4409 = vmatprep.subr.bf16.mxu1 %v4408_v11  ;;  %v2441_v11 = vld [vmem:[%s8579_s7 + $0xc0] sm:$0xff] }
 0x393   : > { %v4450_v45 = vpack.c.bf16 %v2443_v55, %v2441_v11  ;;  %v4608_v11 = vpack.c.bf16 %v2604_v40, %v2602_v37 }
 0x395   : > { %4411 = vmatpush1.bf16.msra.mxu1 %v4410_v47  ;;  %v4452_v47 = vpack.c.bf16 %v2448_v44, %v2446_v41  ;;  %v2601_v41 = vld [vmem:[%s8579_s7 + $0x5c0] sm:$0xff]  ;;  %v2603_v44 = vld [vmem:[%s8579_s7 + $0x5d0] sm:$0xff] }
 0x396   : > { %4413 = vmatprep.subr.bf16.mxu1 %v4412_v35  ;;  %v2445_v35 = vld [vmem:[%s8579_s7 + $0xe0] sm:$0xff] }
 0x397   : > { %v4454_v53 = vpack.c.bf16 %v2447_v48, %v2445_v35  ;;  %v362_v35 = vld [vmem:[%s5308_s21 + $0xf8] sm:$0xff]  ;;  %v2478_v48 = vld [vmem:[%s8579_s7 + $0x1e8] sm:$0xff] }
 0x399   : > { %4415 = vmatpush1.bf16.msra.mxu1 %v4414_v42  ;;  %v4456_v42 = vpack.c.bf16 %v2452_v52, %v2450_v50  ;;  %v2480_v50 = vld [vmem:[%s8579_s7 + $0x1f8] sm:$0xff]  ;;  %v2606_v52 = vld [vmem:[%s8579_s7 + $0x5e8] sm:$0xff] }
 0x39a   : > { %4417 = vmatprep.subr.bf16.mxu1 %v4416_v59  ;;  %v2449_v59 = vld [vmem:[%s8579_s7 + $0x100] sm:$0xff] }
 0x39b   : > { %v4458_v63 = vpack.c.bf16 %v2451_v58, %v2449_v59  ;;  %v2477_v58 = vld [vmem:[%s8579_s7 + $0x1e0] sm:$0xff] }
 0x39d   : > { %4419 = vmatpush1.bf16.msra.mxu1 %v4418_v0  ;;  %v4460_v0 = vpack.c.bf16 %v2456_v62, %v2454_v61  ;;  %v2479_v61 = vld [vmem:[%s8579_s7 + $0x1f0] sm:$0xff]  ;;  %v2605_v62 = vld [vmem:[%s8579_s7 + $0x5e0] sm:$0xff] }
 0x39e   : > { %4421 = vmatprep.subr.bf16.mxu1 %v4420_v1  ;;  %v2453_v1 = vld [vmem:[%s8579_s7 + $0x120] sm:$0xff] }
 0x39f   : > { %v4462_v6 = vpack.c.bf16 %v2455_v2, %v2453_v1  ;;  %v2482_v2 = vld [vmem:[%s8579_s7 + $0x208] sm:$0xff] }
 0x3a1   : > { %4423 = vmatpush1.bf16.msra.mxu1 %v4422_v12  ;;  %v2457_v12 = vld [vmem:[%s8579_s7 + $0x140] sm:$0xff] }
 0x3a2   : > { %4425 = vmatprep.subr.bf16.mxu1 %v4424_v13  ;;  %v2459_v13 = vld [vmem:[%s8579_s7 + $0x150] sm:$0xff] }
 0x3a4   : > { %2281 = vmatmul.mubr.f32.vlgmr.msra.gmra.mrb[42].mxu1 %v1607_v49  ;;  %v2594_v49 = vld [vmem:[%s8579_s7 + $0x588] sm:$0xff] }
 0x3a5   : > { %2286 = vmatprep.mubr.f32.mxu1 %v5190_v19  ;;  %4427 = vmatpush1.bf16.msra.mxu1 %v4426_v18  ;;  %v2432_v19 = vld [vmem:[%s8579_s7 + $0x78] sm:$0xff]  ;;  %v2463_v18 = vld [vmem:[%s8579_s7 + $0x170] sm:$0xff]  ;;  %v4600_v34 = vpack.c.bf16 %v2596_v22, %v2594_v49 }
 0x3a6   : > { %4429 = vmatprep.subr.bf16.mxu1 %v4428_v20  ;;  %v4436_v7 = vpack.c.bf16 %v2432_v19, %v2430_v27  ;;  %v4470_v20 = vpack.c.bf16 %v2463_v18, %v2461_v17  ;;  %v2593_v27 = vld [vmem:[%s8579_s7 + $0x580] sm:$0xff]  ;;  %v2595_v19 = vld [vmem:[%s8579_s7 + $0x590] sm:$0xff] }
 0x3a7   : > { %4601 = vmatprep.subr.bf16.mxu0 %v4600_v34 }
 0x3a8   : > { %2287 = vmatmul.mubr.f32.gmra.mrb[44].mxu1 %v1580_v15  ;;  %v4466_v15 = vpack.c.bf16 %v2459_v13, %v2457_v12  ;;  %v1898_v13 = vlaneseq }
 0x3a9   : > { %4431 = vmatpush1.bf16.msra.mxu1 %v4430_v10  ;;  %v2465_v10 = vld [vmem:[%s8579_s7 + $0x180] sm:$0xff] }
 0x3aa   : > { %4433 = vmatprep.subr.bf16.mxu1 %v4432_v26  ;;  %v2467_v26 = vld [vmem:[%s8579_s7 + $0x190] sm:$0xff]  ;;  %v7121_v14 = vshrl.u32 %v1898_v13, 7  ;;  %vm3666_vm9 = vcmp.lt.s32.totalorder %v1898_v13, 256 }
 0x3ab   : > { %v4474_v60 = vpack.c.bf16 %v2467_v26, %v2465_v10 }
 0x3ac   : > { %v7124_v8 = vsub.s32 0, %v7121_v14 }
 0x3ad   : > { %4435 = vmatpush1.bf16.msra.mxu1 %v4434_v57  ;;  %v4602_v57 = vpack.c.bf16 %v2595_v19, %v2593_v27 }
 0x3ae   : > { %4437 = vmatprep.subr.bf16.mxu1 %v4436_v7  ;;  %v2470_v7 = vld [vmem:[%s8579_s7 + $0x1a8] sm:$0xff] }
 0x3af   : > { %4603 = vmatpush1.bf16.msra.mxu0 %v4602_v57  ;;  %v4476_v30 = vpack.c.bf16 %v2472_v29, %v2470_v7  ;;  %v2481_v57 = vld [vmem:[%s8579_s7 + $0x200] sm:$0xff]  ;;  %v2483_v7 = vld [vmem:[%s8579_s7 + $0x210] sm:$0xff] }
 0x3b0   : > { %4605 = vmatprep.subr.bf16.mxu0 %v4604_v38  ;;  %v2609_v29 = vld [vmem:[%s8579_s7 + $0x600] sm:$0xff] }
 0x3b1   : > { %4439 = vmatpush1.bf16.msra.mxu1 %v4438_v32  ;;  %v2469_v32 = vld [vmem:[%s8579_s7 + $0x1a0] sm:$0xff] }
 0x3b2   : > { %4441 = vmatprep.subr.bf16.mxu1 %v4440_v33  ;;  %v2471_v33 = vld [vmem:[%s8579_s7 + $0x1b0] sm:$0xff] }
 0x3b3   : > { %v4478_v56 = vpack.c.bf16 %v2471_v33, %v2469_v32  ;;  %v2614_v32 = vld [vmem:[%s8579_s7 + $0x628] sm:$0xff]  ;;  %v2616_v33 = vld [vmem:[%s8579_s7 + $0x638] sm:$0xff] }
 0x3b5   : > { %4443 = vmatpush1.bf16.msra.mxu1 %v4442_v3  ;;  %v4606_v3 = vpack.c.bf16 %v2599_v54, %v2597_v46  ;;  %v4490_v46 = vpack.c.bf16 %v2483_v7, %v2481_v57  ;;  %v4618_v54 = vpack.c.bf16 %v2611_v51, %v2609_v29  ;;  %v2625_v57 = vld [vmem:[%s8579_s7 + $0x680] sm:$0xff]  ;;  %v2627_v7 = vld [vmem:[%s8579_s7 + $0x690] sm:$0xff]  ;;  %v2502_v29 = vld [vmem:[%s8579_s7 + $0x2a8] sm:$0xff] }
 0x3b6   : > { %4445 = vmatprep.subr.bf16.mxu1 %v4444_v28  ;;  %v2474_v28 = vld [vmem:[%s8579_s7 + $0x1c8] sm:$0xff]  ;;  %v2504_v51 = vld [vmem:[%s8579_s7 + $0x2b8] sm:$0xff] }
 0x3b7   : > { %4607 = vmatpush1.bf16.msra.mxu0 %v4606_v3  ;;  %v4480_v39 = vpack.c.bf16 %v2476_v36, %v2474_v28  ;;  %v2485_v3 = vld [vmem:[%s8579_s7 + $0x220] sm:$0xff]  ;;  %v2487_v28 = vld [vmem:[%s8579_s7 + $0x230] sm:$0xff] }
 0x3b8   : > { %4609 = vmatprep.subr.bf16.mxu0 %v4608_v11  ;;  %v2613_v11 = vld [vmem:[%s8579_s7 + $0x620] sm:$0xff] }
 0x3b9   : > { %4447 = vmatpush1.bf16.msra.mxu1 %v4446_v43  ;;  %v2473_v43 = vld [vmem:[%s8579_s7 + $0x1c0] sm:$0xff] }
 0x3ba   : > { %4449 = vmatprep.subr.bf16.mxu1 %v4448_v23  ;;  %v2475_v23 = vld [vmem:[%s8579_s7 + $0x1d0] sm:$0xff] }
 0x3bb   : > { %v4482_v55 = vpack.c.bf16 %v2475_v23, %v2473_v43 }
 0x3bd   : > { %4451 = vmatpush1.bf16.msra.mxu1 %v4450_v45  ;;  %v4610_v45 = vpack.c.bf16 %v2603_v44, %v2601_v41  ;;  %v2490_v41 = vld [vmem:[%s8579_s7 + $0x248] sm:$0xff] }
 0x3be   : > { %4453 = vmatprep.subr.bf16.mxu1 %v4452_v47  ;;  %v361_v47 = vld [vmem:[%s5308_s21 + $0xf0] sm:$0xff]  ;;  %s3684_s21 = sshll.u32 %s325_s28, 4  ;;  %s8532_s21 = int_to_ptr.vmem [resolvable:$true] %s3684_s21 }
 0x3bf   : > { %4611 = vmatpush1.bf16.msra.mxu0 %v4610_v45  ;;  %4012 = vmatprep.mubr.msk.f32.mxu0 %vm375_vm0, %v361_v47  ;;  %v4620_v45 = vpack.c.bf16 %v2616_v33, %v2614_v32  ;;  %v2492_v47 = vld [vmem:[%s8579_s7 + $0x258] sm:$0xff]  ;;  %v4634_v33 = vpack.c.bf16 %v2627_v7, %v2625_v57  ;;  %s5123_s22 = scalar_lea.vmem %s8532_s21, 32  ;;  %p5130_p0 = scmp.lt.s32.totalorder %s8532_s21, %s5128_s23 }
 0x3c0   : > { %4013 = vmatmul.mubr.msk.f32.gmra.mrb[30].mxu0 %vm375_vm0, %v362_v35  ;;  %v2618_v35 = vld [vmem:[%s8579_s7 + $0x648] sm:$0xff]  ;;  %p5124_p11 = scmp.ne.s32.totalorder %s8532_s21, %s5123_s22  ;;  %p5131_p1 = scmp.lt.s32.totalorder %s5129_s24, %s5123_s22 }
 0x3c1   : > { %4455 = vmatpush1.bf16.msra.mxu1 %v4454_v53  ;;  %v2608_v53 = vld [vmem:[%s8579_s7 + $0x5f8] sm:$0xff] }
 0x3c2   : > { %4457 = vmatprep.subr.bf16.mxu1 %v4456_v42  ;;  %v4484_v42 = vpack.c.bf16 %v2480_v50, %v2478_v48  ;;  %v4612_v59 = vpack.c.bf16 %v2608_v53, %v2606_v52  ;;  %v2620_v48 = vld [vmem:[%s8579_s7 + $0x658] sm:$0xff]  ;;  %v4494_v53 = vpack.c.bf16 %v2487_v28, %v2485_v3  ;;  %v2629_v3 = vld [vmem:[%s8579_s7 + $0x6a0] sm:$0xff]  ;;  %v2631_v28 = vld [vmem:[%s8579_s7 + $0x6b0] sm:$0xff]  ;;  %p5125_p12 = pnand %p5124_p11, %p5281_p5  ;;  %p5132_p2 = por %p5131_p1, %p5130_p0 }
 0x3c4   : > { %4613 = vmatprep.subr.bf16.mxu0 %v4612_v59  ;;  %v2489_v59 = vld [vmem:[%s8579_s7 + $0x240] sm:$0xff]  ;;  %p5126_p13 = pneg %p5125_p12 }
 0x3c5   : > { %4459 = vmatpush1.bf16.msra.mxu1 %v4458_v63  ;;  %v4486_v63 = vpack.c.bf16 %v2479_v61, %v2477_v58  ;;  %v2491_v58 = vld [vmem:[%s8579_s7 + $0x250] sm:$0xff]  ;;  %v4496_v61 = vpack.c.bf16 %v2492_v47, %v2490_v41  ;;  %v2505_v41 = vld [vmem:[%s8579_s7 + $0x2c0] sm:$0xff] }
 0x3c6   : > { %4461 = vmatprep.subr.bf16.mxu1 %v4460_v0  ;;  %v2607_v0 = vld [vmem:[%s8579_s7 + $0x5f0] sm:$0xff]  ;;  %p5133_p3 = pnand %p5132_p2, %p5126_p13 }
 0x3c7   : > { %v4614_v1 = vpack.c.bf16 %v2607_v0, %v2605_v62  ;;  %v4624_v62 = vpack.c.bf16 %v2620_v48, %v2618_v35  ;;  %v2619_v0 = vld [vmem:[%s8579_s7 + $0x650] sm:$0xff]  ;;  %v2633_v35 = vld [vmem:[%s8579_s7 + $0x6c0] sm:$0xff] }
 0x3c8   : > { %v2635_v48 = vld [vmem:[%s8579_s7 + $0x6d0] sm:$0xff] }
 0x3c9   : > { %4463 = vmatpush1.bf16.msra.mxu1 %v4462_v6  ;;  %4615 = vmatpush1.bf16.msra.mxu0 %v4614_v1  ;;  %v4488_v6 = vpack.c.bf16 %v2484_v4, %v2482_v2  ;;  %v2494_v1 = vld [vmem:[%s8579_s7 + $0x268] sm:$0xff]  ;;  %v2496_v2 = vld [vmem:[%s8579_s7 + $0x278] sm:$0xff] }
 0x3ca   : > { %4465 = vmatprep.subr.bf16.mxu1 %v4464_v9  ;;  %v2612_v9 = vld [vmem:[%s8579_s7 + $0x618] sm:$0xff]  ;;  %v2622_v4 = vld [vmem:[%s8579_s7 + $0x668] sm:$0xff] }
 0x3cb   : > { %v4616_v12 = vpack.c.bf16 %v2612_v9, %v2610_v5  ;;  %v2624_v5 = vld [vmem:[%s8579_s7 + $0x678] sm:$0xff] }
 0x3cd   : > { %4467 = vmatpush1.bf16.msra.mxu1 %v4466_v15  ;;  %4617 = vmatprep.subr.bf16.mxu0 %v4616_v12  ;;  %v1896_v15 = vld [vmem:[%s8578_s6] sm:$0x3] }
 0x3ce   : > { %4469 = vmatprep.subr.bf16.mxu1 %v4468_v16  ;;  %v7130_v16 = vsub.s32 1, %v7121_v14  ;;  %v1901_v17 = vrot.slane %v1896_v15, %v7124_v8  ;;  %v2493_v12 = vld [vmem:[%s8579_s7 + $0x260] sm:$0xff] }
 0x3d0   : > { %v1905_v18 = vrot.slane %v1896_v15, %v7130_v16  ;;  %v2495_v15 = vld [vmem:[%s8579_s7 + $0x270] sm:$0xff] }
 0x3d1   : > { %4471 = vmatpush1.bf16.msra.mxu1 %v4470_v20 }
 0x3d2   : > { %4473 = vmatprep.subr.bf16.mxu1 %v4472_v25 }
 0x3d5   : > { %4475 = vmatpush1.bf16.msra.mxu1 %v4474_v60 }
 0x3d6   : > { %4477 = vmatprep.subr.bf16.mxu1 %v4476_v30  ;;  %v2486_v30 = vld [vmem:[%s8579_s7 + $0x228] sm:$0xff] }
 0x3d7   : > { %v4492_v44 = vpack.c.bf16 %v2488_v31, %v2486_v30  ;;  %v2630_v30 = vld [vmem:[%s8579_s7 + $0x6a8] sm:$0xff]  ;;  %v2632_v31 = vld [vmem:[%s8579_s7 + $0x6b8] sm:$0xff] }
 0x3d9   : > { %4479 = vmatpush1.bf16.msra.mxu1 %v4478_v56 }
 0x3da   : > { %4481 = vmatprep.subr.bf16.mxu1 %v4480_v39 }
 0x3dd   : > { %4483 = vmatpush1.bf16.msra.mxu1 %v4482_v55  ;;  %v2615_v55 = vld [vmem:[%s8579_s7 + $0x630] sm:$0xff] }
 0x3de   : > { %4485 = vmatprep.subr.bf16.mxu1 %v4484_v42  ;;  %v4622_v42 = vpack.c.bf16 %v2615_v55, %v2613_v11  ;;  %v4638_v55 = vpack.c.bf16 %v2631_v28, %v2629_v3 }
 0x3e1   : > { %4487 = vmatpush1.bf16.msra.mxu1 %v4486_v63  ;;  %v2617_v63 = vld [vmem:[%s8579_s7 + $0x640] sm:$0xff] }
 0x3e2   : > { %4489 = vmatprep.subr.bf16.mxu1 %v4488_v6  ;;  %v4498_v6 = vpack.c.bf16 %v2491_v58, %v2489_v59  ;;  %v4626_v9 = vpack.c.bf16 %v2619_v0, %v2617_v63  ;;  %v4642_v58 = vpack.c.bf16 %v2635_v48, %v2633_v35 }
 0x477   : > { %v2282_v20 = vpop.f32.mrb[42].mxu1 }
 0x478   : > { %v5000_v21 = vadd.f32 %v2282_v20, %v1901_v17  ;;  %v2284_v24 = vpop.f32.mrb[43].mxu1  ;;  %v2621_v20 = vld [vmem:[%s8579_s7 + $0x660] sm:$0xff] }
 0x479   : > { %v5001_v49 = vadd.f32 %v2284_v24, %v1905_v18  ;;  %v2498_v24 = vld [vmem:[%s8579_s7 + $0x288] sm:$0xff] }
 0x47a   : > { %v2293_v25 = vmax.f32 %v5000_v21, 0.0  ;;  %v2623_v21 = vld [vmem:[%s8579_s7 + $0x670] sm:$0xff] }
 0x47b   : > { %v2294_v22 = vmax.f32 %v5001_v49, 0.0  ;;  %v2288_v10 = vpop.f32.mrb[44].mxu1  ;;  %v2500_v49 = vld [vmem:[%s8579_s7 + $0x298] sm:$0xff] }
 0x47c   : > { %2297 = vst [vmem:[#allocation4] sm:$0xff] %v2293_v25  ;;  %v5002_v26 = vadd.f32 %v2288_v10, %v1901_v17  ;;  %v2290_v34 = vpop.f32.mrb[45].mxu1  ;;  %v4500_v17 = vpack.c.bf16 %v2496_v2, %v2494_v1  ;;  %v2626_v25 = vld [vmem:[%s8579_s7 + $0x688] sm:$0xff]  ;;  %v4502_v10 = vpack.c.bf16 %v2495_v15, %v2493_v12  ;;  %v2637_v1 = vld [vmem:[%s8579_s7 + $0x6e0] sm:$0xff]  ;;  %v2639_v2 = vld [vmem:[%s8579_s7 + $0x6f0] sm:$0xff] }
 0x47d   : > { %2298 = vst [vmem:[#allocation4 + $0x8] sm:$0xff] %v2294_v22  ;;  %v5003_v60 = vadd.f32 %v2290_v34, %v1905_v18  ;;  %v4628_v18 = vpack.c.bf16 %v2624_v5, %v2622_v4  ;;  %v2628_v22 = vld [vmem:[%s8579_s7 + $0x698] sm:$0xff]  ;;  %v2497_v34 = vld [vmem:[%s8579_s7 + $0x280] sm:$0xff]  ;;  %v2514_v4 = vld [vmem:[%s8579_s7 + $0x308] sm:$0xff]  ;;  %v4646_v15 = vpack.c.bf16 %v2639_v2, %v2637_v1 }
 0x47e   : > { %v2295_v27 = vmax.f32 %v5002_v26, 0.0  ;;  %v4630_v26 = vpack.c.bf16 %v2623_v21, %v2621_v20  ;;  %v2516_v5 = vld [vmem:[%s8579_s7 + $0x318] sm:$0xff] }
 0x47f   : > { %v2296_v19 = vmax.f32 %v5003_v60, 0.0  ;;  %v2499_v60 = vld [vmem:[%s8579_s7 + $0x290] sm:$0xff]  ;;  %v4520_v20 = vpack.c.bf16 %v2516_v5, %v2514_v4  ;;  %v2657_v4 = vld [vmem:[%s8579_s7 + $0x780] sm:$0xff] }
 0x480   : > { %2299 = vst [vmem:[#allocation4 + $0x10] sm:$0x1] %v2295_v27  ;;  %v4504_v27 = vpack.c.bf16 %v2500_v49, %v2498_v24  ;;  %v4506_v32 = vpack.c.bf16 %v2499_v60, %v2497_v34  ;;  %v2641_v24 = vld [vmem:[%s8579_s7 + $0x700] sm:$0xff]  ;;  %v2643_v49 = vld [vmem:[%s8579_s7 + $0x710] sm:$0xff] }
 0x481   : > { %2300 = vst [vmem:[#allocation4 + $0x18] sm:$0x1] %v2296_v19  ;;  %v4632_v19 = vpack.c.bf16 %v2628_v22, %v2626_v25  ;;  %v2518_v25 = vld [vmem:[%s8579_s7 + $0x328] sm:$0xff]  ;;  %v2520_v22 = vld [vmem:[%s8579_s7 + $0x338] sm:$0xff]  ;;  %v4650_v60 = vpack.c.bf16 %v2643_v49, %v2641_v24  ;;  %v2659_v5 = vld [vmem:[%s8579_s7 + $0x790] sm:$0xff] }
 0x482   : > { %v4524_v57 = vpack.c.bf16 %v2520_v22, %v2518_v25  ;;  %v2661_v25 = vld [vmem:[%s8579_s7 + $0x7a0] sm:$0xff]  ;;  %v2663_v22 = vld [vmem:[%s8579_s7 + $0x7b0] sm:$0xff] }
 0x484   : > { %v2301_v38 = vld [vmem:[#allocation4] ss:$8 sm:$0x3]  ;;  %v2305_v56 = vld [vmem:[#allocation4 + $0x2] ss:$8 sm:$0x3] }
 0x485   : > { %v2322_v36 = vrot.slane %v2301_v38, %v7124_v8  ;;  %v2326_v37 = vrot.slane %v2301_v38, %v7130_v16  ;;  %v2344_v39 = vrot.slane %v2305_v56, %v7124_v8  ;;  %v2348_v40 = vrot.slane %v2305_v56, %v7130_v16  ;;  %v7168_v43 = vld [vmem:[#allocation4 + $0x1] ss:$8 sm:$0x3]  ;;  %v7170_v23 = vld [vmem:[#allocation4 + $0x3] ss:$8 sm:$0x3] }
 0x486   : > { %v2337_v50 = vrot.slane %v7168_v43, %v7130_v16  ;;  %v2359_v52 = vrot.slane %v7170_v23, %v7130_v16  ;;  %v2501_v38 = vld [vmem:[%s8579_s7 + $0x2a0] sm:$0xff]  ;;  %v2503_v56 = vld [vmem:[%s8579_s7 + $0x2b0] sm:$0xff] }
 0x487   : > { %3069 = vmatprep.mubr.f32.mxu1 %v2326_v37  ;;  %3211 = vmatprep.mubr.f32.mxu0 %v2348_v40  ;;  %v2508_v37 = vld [vmem:[%s8579_s7 + $0x2d8] sm:$0xff]  ;;  %v4510_v11 = vpack.c.bf16 %v2503_v56, %v2501_v38 }
 0x488   : > { %3070 = vmatmul.mubr.f32.vlgmr.msra.gmra.mrb[46].mxu1 %v2322_v36  ;;  %3212 = vmatmul.mubr.f32.vlgmr.msra.gmra.mrb[32].mxu0 %v2344_v39  ;;  %v2506_v36 = vld [vmem:[%s8579_s7 + $0x2c8] sm:$0xff]  ;;  %v2636_v40 = vld [vmem:[%s8579_s7 + $0x6d8] sm:$0xff] }
 0x489   : > { %4491 = vmatpush1.bf16.msra.mxu1 %v4490_v46  ;;  %4619 = vmatpush1.bf16.msra.mxu0 %v4618_v54  ;;  %v4508_v46 = vpack.c.bf16 %v2504_v51, %v2502_v29  ;;  %v4636_v54 = vpack.c.bf16 %v2632_v31, %v2630_v30  ;;  %v2634_v39 = vld [vmem:[%s8579_s7 + $0x6c8] sm:$0xff]  ;;  %v2645_v29 = vld [vmem:[%s8579_s7 + $0x720] sm:$0xff]  ;;  %v2647_v51 = vld [vmem:[%s8579_s7 + $0x730] sm:$0xff] }
 0x48a   : > { %3140 = vmatprep.mubr.f32.mxu1 %v2337_v50  ;;  %3282 = vmatprep.mubr.f32.mxu0 %v2359_v52  ;;  %v4640_v47 = vpack.c.bf16 %v2636_v40, %v2634_v39  ;;  %v2510_v50 = vld [vmem:[%s8579_s7 + $0x2e8] sm:$0xff]  ;;  %v2512_v52 = vld [vmem:[%s8579_s7 + $0x2f8] sm:$0xff]  ;;  %v4654_v56 = vpack.c.bf16 %v2647_v51, %v2645_v29 }
 0x48b   : > { %4493 = vmatprep.subr.bf16.mxu1 %v4492_v44  ;;  %4621 = vmatprep.subr.bf16.mxu0 %v4620_v45  ;;  %v2507_v44 = vld [vmem:[%s8579_s7 + $0x2d0] sm:$0xff]  ;;  %v4512_v45 = vpack.c.bf16 %v2508_v37, %v2506_v36  ;;  %v4516_v63 = vpack.c.bf16 %v2512_v52, %v2510_v50  ;;  %v2522_v30 = vld [vmem:[%s8579_s7 + $0x348] sm:$0xff]  ;;  %v2524_v31 = vld [vmem:[%s8579_s7 + $0x358] sm:$0xff] }
 0x48c   : > { %v4514_v59 = vpack.c.bf16 %v2507_v44, %v2505_v41  ;;  %v4528_v3 = vpack.c.bf16 %v2524_v31, %v2522_v30  ;;  %v2649_v36 = vld [vmem:[%s8579_s7 + $0x740] sm:$0xff]  ;;  %v2651_v37 = vld [vmem:[%s8579_s7 + $0x750] sm:$0xff]  ;;  %v2526_v39 = vld [vmem:[%s8579_s7 + $0x368] sm:$0xff] }
 0x48d   : > { %4495 = vmatpush1.bf16.msra.mxu1 %v4494_v53  ;;  %4623 = vmatpush1.bf16.msra.mxu0 %v4622_v42  ;;  %v2638_v53 = vld [vmem:[%s8579_s7 + $0x6e8] sm:$0xff]  ;;  %v2640_v42 = vld [vmem:[%s8579_s7 + $0x6f8] sm:$0xff]  ;;  %v4658_v44 = vpack.c.bf16 %v2651_v37, %v2649_v36  ;;  %v2653_v50 = vld [vmem:[%s8579_s7 + $0x760] sm:$0xff] }
 0x48e   : > { %4497 = vmatprep.subr.bf16.mxu1 %v4496_v61  ;;  %4625 = vmatprep.subr.bf16.mxu0 %v4624_v62  ;;  %v2509_v61 = vld [vmem:[%s8579_s7 + $0x2e0] sm:$0xff]  ;;  %v2511_v62 = vld [vmem:[%s8579_s7 + $0x2f0] sm:$0xff]  ;;  %v4644_v0 = vpack.c.bf16 %v2640_v42, %v2638_v53  ;;  %v2528_v40 = vld [vmem:[%s8579_s7 + $0x378] sm:$0xff] }
 0x48f   : > { %v4518_v12 = vpack.c.bf16 %v2511_v62, %v2509_v61  ;;  %v4532_v35 = vpack.c.bf16 %v2528_v40, %v2526_v39  ;;  %v2655_v52 = vld [vmem:[%s8579_s7 + $0x770] sm:$0xff]  ;;  %v2530_v53 = vld [vmem:[%s8579_s7 + $0x388] sm:$0xff]  ;;  %v2532_v42 = vld [vmem:[%s8579_s7 + $0x398] sm:$0xff] }
 0x490   : > { %v4662_v62 = vpack.c.bf16 %v2655_v52, %v2653_v50  ;;  %v4536_v1 = vpack.c.bf16 %v2532_v42, %v2530_v53  ;;  %v2665_v30 = vld [vmem:[%s8579_s7 + $0x7c0] sm:$0xff]  ;;  %v2667_v31 = vld [vmem:[%s8579_s7 + $0x7d0] sm:$0xff]  ;;  %v2680_v50 = vld [vmem:[%s8579_s7 + $0x838] sm:$0xff]  ;;  %v2333_v42 = vrot.slane %v7168_v43, %v7124_v8 }
 0x491   : > { %4499 = vmatpush1.bf16.msra.mxu1 %v4498_v6  ;;  %4627 = vmatpush1.bf16.msra.mxu0 %v4626_v9  ;;  %v2642_v6 = vld [vmem:[%s8579_s7 + $0x708] sm:$0xff]  ;;  %v2644_v9 = vld [vmem:[%s8579_s7 + $0x718] sm:$0xff]  ;;  %v2543_v37 = vld [vmem:[%s8579_s7 + $0x3f0] sm:$0xff] }
 0x492   : > { %4501 = vmatprep.subr.bf16.mxu1 %v4500_v17  ;;  %4629 = vmatprep.subr.bf16.mxu0 %v4628_v18  ;;  %v2513_v17 = vld [vmem:[%s8579_s7 + $0x300] sm:$0xff]  ;;  %v2515_v18 = vld [vmem:[%s8579_s7 + $0x310] sm:$0xff]  ;;  %v4648_v21 = vpack.c.bf16 %v2644_v9, %v2642_v6  ;;  %v2534_v6 = vld [vmem:[%s8579_s7 + $0x3a8] sm:$0xff] }
 0x493   : > { %v4522_v34 = vpack.c.bf16 %v2515_v18, %v2513_v17  ;;  %v2536_v9 = vld [vmem:[%s8579_s7 + $0x3b8] sm:$0xff]  ;;  %v4666_v18 = vpack.c.bf16 %v2659_v5, %v2657_v4  ;;  %v2669_v39 = vld [vmem:[%s8579_s7 + $0x7e0] sm:$0xff]  ;;  %v2671_v40 = vld [vmem:[%s8579_s7 + $0x7f0] sm:$0xff] }
 0x494   : > { %v4540_v24 = vpack.c.bf16 %v2536_v9, %v2534_v6  ;;  %v7536_v52 = vld [vmem:[#allocation4 + $0x4] ss:$8 sm:$0x3]  ;;  %v2682_v43 = vld [vmem:[%s8579_s7 + $0x848] sm:$0xff]  ;;  %v2683_v4 = vld [vmem:[%s8579_s7 + $0x850] sm:$0xff] }
 0x495   : > { %4503 = vmatpush1.bf16.msra.mxu1 %v4502_v10  ;;  %4631 = vmatpush1.bf16.msra.mxu0 %v4630_v26  ;;  %v2646_v10 = vld [vmem:[%s8579_s7 + $0x728] sm:$0xff]  ;;  %v2648_v26 = vld [vmem:[%s8579_s7 + $0x738] sm:$0xff] }
 0x496   : > { %4505 = vmatprep.subr.bf16.mxu1 %v4504_v27  ;;  %4633 = vmatprep.subr.bf16.mxu0 %v4632_v19  ;;  %v2517_v27 = vld [vmem:[%s8579_s7 + $0x320] sm:$0xff]  ;;  %v2519_v19 = vld [vmem:[%s8579_s7 + $0x330] sm:$0xff]  ;;  %v4652_v7 = vpack.c.bf16 %v2648_v26, %v2646_v10  ;;  %v2538_v10 = vld [vmem:[%s8579_s7 + $0x3c8] sm:$0xff] }
 0x497   : > { %v4526_v38 = vpack.c.bf16 %v2519_v19, %v2517_v27  ;;  %v2540_v26 = vld [vmem:[%s8579_s7 + $0x3d8] sm:$0xff]  ;;  %v4670_v19 = vpack.c.bf16 %v2663_v22, %v2661_v25  ;;  %v2686_v5 = vld [vmem:[%s8579_s7 + $0x868] sm:$0xff]  ;;  %v2691_v25 = vld [vmem:[%s8579_s7 + $0x890] sm:$0xff] }
 0x498   : > { %v4544_v29 = vpack.c.bf16 %v2540_v26, %v2538_v10  ;;  %v2688_v6 = vld [vmem:[%s8579_s7 + $0x878] sm:$0xff]  ;;  %v2694_v22 = vld [vmem:[%s8579_s7 + $0x8a8] sm:$0xff] }
 0x499   : > { %4507 = vmatpush1.bf16.msra.mxu1 %v4506_v32  ;;  %4635 = vmatpush1.bf16.msra.mxu0 %v4634_v33  ;;  %v2650_v32 = vld [vmem:[%s8579_s7 + $0x748] sm:$0xff]  ;;  %v2652_v33 = vld [vmem:[%s8579_s7 + $0x758] sm:$0xff] }
 0x49a   : > { %4509 = vmatprep.subr.bf16.mxu1 %v4508_v46  ;;  %4637 = vmatprep.subr.bf16.mxu0 %v4636_v54  ;;  %v2521_v46 = vld [vmem:[%s8579_s7 + $0x340] sm:$0xff]  ;;  %v2523_v54 = vld [vmem:[%s8579_s7 + $0x350] sm:$0xff]  ;;  %v4656_v28 = vpack.c.bf16 %v2652_v33, %v2650_v32  ;;  %v2542_v32 = vld [vmem:[%s8579_s7 + $0x3e8] sm:$0xff] }
 0x49b   : > { %v4530_v41 = vpack.c.bf16 %v2523_v54, %v2521_v46  ;;  %v2544_v33 = vld [vmem:[%s8579_s7 + $0x3f8] sm:$0xff]  ;;  %v4674_v54 = vpack.c.bf16 %v2667_v31, %v2665_v30  ;;  %v2697_v31 = vld [vmem:[%s8579_s7 + $0x8c0] sm:$0xff] }
 0x49c   : > { %v2696_v10 = vld [vmem:[%s8579_s7 + $0x8b8] sm:$0xff] }
 0x49d   : > { %4511 = vmatpush1.bf16.msra.mxu1 %v4510_v11  ;;  %4639 = vmatpush1.bf16.msra.mxu0 %v4638_v55  ;;  %v2654_v11 = vld [vmem:[%s8579_s7 + $0x768] sm:$0xff]  ;;  %v2656_v55 = vld [vmem:[%s8579_s7 + $0x778] sm:$0xff] }
 0x49e   : > { %4513 = vmatprep.subr.bf16.mxu1 %v4512_v45  ;;  %4641 = vmatprep.subr.bf16.mxu0 %v4640_v47  ;;  %v2525_v45 = vld [vmem:[%s8579_s7 + $0x360] sm:$0xff]  ;;  %v2527_v47 = vld [vmem:[%s8579_s7 + $0x370] sm:$0xff]  ;;  %v4660_v48 = vpack.c.bf16 %v2656_v55, %v2654_v11  ;;  %v2674_v11 = vld [vmem:[%s8579_s7 + $0x808] sm:$0xff] }
 0x49f   : > { %v4534_v61 = vpack.c.bf16 %v2527_v47, %v2525_v45  ;;  %v2676_v55 = vld [vmem:[%s8579_s7 + $0x818] sm:$0xff]  ;;  %v2673_v47 = vld [vmem:[%s8579_s7 + $0x800] sm:$0xff] }
 0x4a0   : > { %v4680_v45 = vpack.c.bf16 %v2676_v55, %v2674_v11  ;;  %v2707_v11 = vld [vmem:[%s8579_s7 + $0x910] sm:$0xff]  ;;  %v2710_v55 = vld [vmem:[%s8579_s7 + $0x928] sm:$0xff] }
 0x4a1   : > { %4515 = vmatpush1.bf16.msra.mxu1 %v4514_v59  ;;  %4643 = vmatpush1.bf16.msra.mxu0 %v4642_v58  ;;  %v2658_v59 = vld [vmem:[%s8579_s7 + $0x788] sm:$0xff]  ;;  %v2660_v58 = vld [vmem:[%s8579_s7 + $0x798] sm:$0xff] }
 0x4a2   : > { %4517 = vmatprep.subr.bf16.mxu1 %v4516_v63  ;;  %4645 = vmatprep.subr.bf16.mxu0 %v4644_v0  ;;  %v2529_v63 = vld [vmem:[%s8579_s7 + $0x380] sm:$0xff]  ;;  %v2531_v0 = vld [vmem:[%s8579_s7 + $0x390] sm:$0xff]  ;;  %v4664_v2 = vpack.c.bf16 %v2660_v58, %v2658_v59  ;;  %v2355_v59 = vrot.slane %v7170_v23, %v7124_v8  ;;  %v2684_v23 = vld [vmem:[%s8579_s7 + $0x858] sm:$0xff] }
 0x4a3   : > { %v4538_v17 = vpack.c.bf16 %v2531_v0, %v2529_v63  ;;  %v2370_v63 = vrot.slane %v7536_v52, %v7130_v16 }
 0x4a5   : > { %4519 = vmatpush1.bf16.msra.mxu1 %v4518_v12  ;;  %4647 = vmatpush1.bf16.msra.mxu0 %v4646_v15  ;;  %v2662_v12 = vld [vmem:[%s8579_s7 + $0x7a8] sm:$0xff]  ;;  %v2664_v15 = vld [vmem:[%s8579_s7 + $0x7b8] sm:$0xff] }
 0x4a6   : > { %4521 = vmatprep.subr.bf16.mxu1 %v4520_v20  ;;  %4649 = vmatprep.subr.bf16.mxu0 %v4648_v21  ;;  %v2533_v20 = vld [vmem:[%s8579_s7 + $0x3a0] sm:$0xff]  ;;  %v2535_v21 = vld [vmem:[%s8579_s7 + $0x3b0] sm:$0xff]  ;;  %v4668_v49 = vpack.c.bf16 %v2664_v15, %v2662_v12  ;;  %v4692_v12 = vpack.c.bf16 %v2688_v6, %v2686_v5 }
 0x4a7   : > { %v4542_v27 = vpack.c.bf16 %v2535_v21, %v2533_v20  ;;  %v2685_v15 = vld [vmem:[%s8579_s7 + $0x860] sm:$0xff]  ;;  %v2692_v20 = vld [vmem:[%s8579_s7 + $0x898] sm:$0xff] }
 0x4a8   : > { %v2721_v6 = vld [vmem:[%s8579_s7 + $0x980] sm:$0xff] }
 0x4a9   : > { %4523 = vmatpush1.bf16.msra.mxu1 %v4522_v34  ;;  %4651 = vmatpush1.bf16.msra.mxu0 %v4650_v60  ;;  %v2666_v34 = vld [vmem:[%s8579_s7 + $0x7c8] sm:$0xff]  ;;  %v2668_v60 = vld [vmem:[%s8579_s7 + $0x7d8] sm:$0xff] }
 0x4aa   : > { %4525 = vmatprep.subr.bf16.mxu1 %v4524_v57  ;;  %4653 = vmatprep.subr.bf16.mxu0 %v4652_v7  ;;  %v2537_v57 = vld [vmem:[%s8579_s7 + $0x3c0] sm:$0xff]  ;;  %v2539_v7 = vld [vmem:[%s8579_s7 + $0x3d0] sm:$0xff]  ;;  %v4672_v51 = vpack.c.bf16 %v2668_v60, %v2666_v34  ;;  %v4700_v34 = vpack.c.bf16 %v2696_v10, %v2694_v22 }
 0x4ab   : > { %v4546_v46 = vpack.c.bf16 %v2539_v7, %v2537_v57  ;;  %v2693_v60 = vld [vmem:[%s8579_s7 + $0x8a0] sm:$0xff]  ;;  %v2700_v57 = vld [vmem:[%s8579_s7 + $0x8d8] sm:$0xff]  ;;  %v4014_v7 = vpop.f32.mrb[30].mxu0 }
 0x4ac   : > { %v2729_v10 = vld [vmem:[%s8579_s7 + $0x9c0] sm:$0xff]  ;;  %v2735_v7 = vld [vmem:[%s8579_s7 + $0x9f0] sm:$0xff] }
 0x4ad   : > { %4527 = vmatpush1.bf16.msra.mxu1 %v4526_v38  ;;  %4655 = vmatpush1.bf16.msra.mxu0 %v4654_v56  ;;  %v2670_v38 = vld [vmem:[%s8579_s7 + $0x7e8] sm:$0xff]  ;;  %v2672_v56 = vld [vmem:[%s8579_s7 + $0x7f8] sm:$0xff] }
 0x4ae   : > { %4529 = vmatprep.subr.bf16.mxu1 %v4528_v3  ;;  %4657 = vmatprep.subr.bf16.mxu0 %v4656_v28  ;;  %v2541_v3 = vld [vmem:[%s8579_s7 + $0x3e0] sm:$0xff]  ;;  %v4548_v28 = vpack.c.bf16 %v2544_v33, %v2542_v32  ;;  %v4676_v36 = vpack.c.bf16 %v2672_v56, %v2670_v38  ;;  %v2699_v32 = vld [vmem:[%s8579_s7 + $0x8d0] sm:$0xff]  ;;  %v2702_v33 = vld [vmem:[%s8579_s7 + $0x8e8] sm:$0xff] }
 0x4af   : > { %v2704_v38 = vld [vmem:[%s8579_s7 + $0x8f8] sm:$0xff]  ;;  %v4706_v56 = vpack.c.bf16 %v2699_v32, %v2697_v31  ;;  %v2737_v32 = vld [vmem:[%s8579_s7 + $0xa00] sm:$0xff] }
 0x4b1   : > { %4531 = vmatpush1.bf16.msra.mxu1 %v4530_v41  ;;  %4659 = vmatpush1.bf16.msra.mxu0 %v4658_v44  ;;  %v4550_v41 = vpack.c.bf16 %v2543_v37, %v2541_v3  ;;  %v4678_v44 = vpack.c.bf16 %v2671_v40, %v2669_v39  ;;  %v2703_v3 = vld [vmem:[%s8579_s7 + $0x8f0] sm:$0xff]  ;;  %v2705_v40 = vld [vmem:[%s8579_s7 + $0x900] sm:$0xff] }
 0x4b2   : > { %4533 = vmatprep.subr.bf16.mxu1 %v4532_v35  ;;  %4661 = vmatprep.subr.bf16.mxu0 %v4660_v48  ;;  %v2675_v35 = vld [vmem:[%s8579_s7 + $0x810] sm:$0xff]  ;;  %v2678_v48 = vld [vmem:[%s8579_s7 + $0x828] sm:$0xff] }
 0x4b3   : > { %v4682_v53 = vpack.c.bf16 %v2675_v35, %v2673_v47  ;;  %v4684_v58 = vpack.c.bf16 %v2680_v50, %v2678_v48  ;;  %v2709_v47 = vld [vmem:[%s8579_s7 + $0x920] sm:$0xff]  ;;  %v2711_v35 = vld [vmem:[%s8579_s7 + $0x930] sm:$0xff]  ;;  %v2714_v48 = vld [vmem:[%s8579_s7 + $0x948] sm:$0xff] }
 0x4b4   : > { %v2716_v50 = vld [vmem:[%s8579_s7 + $0x958] sm:$0xff] }
 0x4b5   : > { %4535 = vmatpush1.bf16.msra.mxu1 %v4534_v61  ;;  %4663 = vmatpush1.bf16.msra.mxu0 %v4662_v62  ;;  %v2677_v61 = vld [vmem:[%s8579_s7 + $0x820] sm:$0xff]  ;;  %v2679_v62 = vld [vmem:[%s8579_s7 + $0x830] sm:$0xff] }
 0x4b6   : > { %4537 = vmatprep.subr.bf16.mxu1 %v4536_v1  ;;  %4665 = vmatprep.subr.bf16.mxu0 %v4664_v2  ;;  %v4686_v0 = vpack.c.bf16 %v2679_v62, %v2677_v61  ;;  %v4688_v1 = vpack.c.bf16 %v2684_v23, %v2682_v43  ;;  %v2681_v2 = vld [vmem:[%s8579_s7 + $0x840] sm:$0xff]  ;;  %v2718_v61 = vld [vmem:[%s8579_s7 + $0x968] sm:$0xff]  ;;  %v2720_v62 = vld [vmem:[%s8579_s7 + $0x978] sm:$0xff] }
 0x4b7   : > { %v4690_v9 = vpack.c.bf16 %v2683_v4, %v2681_v2  ;;  %v4724_v43 = vpack.c.bf16 %v2720_v62, %v2718_v61  ;;  %v2717_v23 = vld [vmem:[%s8579_s7 + $0x960] sm:$0xff]  ;;  %v2724_v2 = vld [vmem:[%s8579_s7 + $0x998] sm:$0xff] }
 0x4b8   : > { %v2753_v62 = vld [vmem:[%s8579_s7 + $0xa80] sm:$0xff] }
 0x4b9   : > { %4539 = vmatpush1.bf16.msra.mxu1 %v4538_v17  ;;  %4667 = vmatpush1.bf16.msra.mxu0 %v4666_v18  ;;  %v2687_v17 = vld [vmem:[%s8579_s7 + $0x870] sm:$0xff]  ;;  %v2690_v18 = vld [vmem:[%s8579_s7 + $0x888] sm:$0xff] }
 0x4ba   : > { %4541 = vmatprep.subr.bf16.mxu1 %v4540_v24  ;;  %4669 = vmatprep.subr.bf16.mxu0 %v4668_v49  ;;  %v4694_v21 = vpack.c.bf16 %v2687_v17, %v2685_v15  ;;  %v4696_v24 = vpack.c.bf16 %v2692_v20, %v2690_v18  ;;  %v2689_v49 = vld [vmem:[%s8579_s7 + $0x880] sm:$0xff]  ;;  %v2728_v15 = vld [vmem:[%s8579_s7 + $0x9b8] sm:$0xff] }
 0x4bb   : > { %v4698_v26 = vpack.c.bf16 %v2691_v25, %v2689_v49  ;;  %v2725_v20 = vld [vmem:[%s8579_s7 + $0x9a0] sm:$0xff]  ;;  %v2732_v49 = vld [vmem:[%s8579_s7 + $0x9d8] sm:$0xff] }
 0x4bd   : > { %4543 = vmatpush1.bf16.msra.mxu1 %v4542_v27  ;;  %4671 = vmatpush1.bf16.msra.mxu0 %v4670_v19  ;;  %v2695_v27 = vld [vmem:[%s8579_s7 + $0x8b0] sm:$0xff]  ;;  %v2698_v19 = vld [vmem:[%s8579_s7 + $0x8c8] sm:$0xff] }
 0x4be   : > { %4545 = vmatprep.subr.bf16.mxu1 %v4544_v29  ;;  %4673 = vmatprep.subr.bf16.mxu0 %v4672_v51  ;;  %v692_v29 = vpop.f32.mrb[31].mxu0  ;;  %v4702_v51 = vpack.c.bf16 %v2695_v27, %v2693_v60  ;;  %v4704_v30 = vpack.c.bf16 %v2700_v57, %v2698_v19  ;;  %v2736_v60 = vld [vmem:[%s8579_s7 + $0x9f8] sm:$0xff]  ;;  %v2733_v57 = vld [vmem:[%s8579_s7 + $0x9e0] sm:$0xff] }
 0x4bf   : > { %v2738_v29 = vld [vmem:[%s8579_s7 + $0xa08] sm:$0xff] }
 0x4c1   : > { %4547 = vmatpush1.bf16.msra.mxu1 %v4546_v46  ;;  %4675 = vmatpush1.bf16.msra.mxu0 %v4674_v54  ;;  %v4708_v46 = vpack.c.bf16 %v2704_v38, %v2702_v33  ;;  %v2701_v54 = vld [vmem:[%s8579_s7 + $0x8e0] sm:$0xff]  ;;  %v2739_v33 = vld [vmem:[%s8579_s7 + $0xa10] sm:$0xff]  ;;  %v2742_v38 = vld [vmem:[%s8579_s7 + $0xa28] sm:$0xff] }
 0x4c2   : > { %4549 = vmatprep.subr.bf16.mxu1 %v4548_v28  ;;  %4677 = vmatprep.subr.bf16.mxu0 %v4676_v36  ;;  %v2706_v28 = vld [vmem:[%s8579_s7 + $0x908] sm:$0xff]  ;;  %v2708_v36 = vld [vmem:[%s8579_s7 + $0x918] sm:$0xff]  ;;  %v4710_v37 = vpack.c.bf16 %v2703_v3, %v2701_v54  ;;  %v4746_v54 = vpack.c.bf16 %v2739_v33, %v2737_v32  ;;  %v2366_v3 = vrot.slane %v7536_v52, %v7124_v8 }
 0x4c3   : > { %v4712_v39 = vpack.c.bf16 %v2708_v36, %v2706_v28  ;;  %v2741_v36 = vld [vmem:[%s8579_s7 + $0xa20] sm:$0xff]  ;;  %v2748_v52 = vld [vmem:[%s8579_s7 + $0xa58] sm:$0xff] }
 0x4c4   : > { %v2780_v32 = vld [vmem:[%s8579_s7 + $0xb58] sm:$0xff] }
 0x4c5   : > { %4551 = vmatpush1.bf16.msra.mxu1 %v4550_v41  ;;  %4679 = vmatpush1.bf16.msra.mxu0 %v4678_v44  ;;  %v2712_v41 = vld [vmem:[%s8579_s7 + $0x938] sm:$0xff]  ;;  %v4714_v44 = vpack.c.bf16 %v2707_v11, %v2705_v40  ;;  %v2746_v40 = vld [vmem:[%s8579_s7 + $0xa48] sm:$0xff] }
 0x4c6   : > { %4681 = vmatprep.subr.bf16.mxu0 %v4680_v45  ;;  %v4716_v45 = vpack.c.bf16 %v2712_v41, %v2710_v55  ;;  %v4752_v55 = vpack.c.bf16 %v2748_v52, %v2746_v40  ;;  %v2745_v41 = vld [vmem:[%s8579_s7 + $0xa40] sm:$0xff]  ;;  %v2783_v40 = vld [vmem:[%s8579_s7 + $0xb70] sm:$0xff]  ;;  %v2786_v52 = vld [vmem:[%s8579_s7 + $0xb88] sm:$0xff] }
 0x4c8   : > { %3141 = vmatmul.mubr.f32.vlgmr.msra.gmra.mrb[46].mxu1 %v2333_v42  ;;  %3283 = vmatmul.mubr.f32.vlgmr.msra.gmra.mrb[32].mxu0 %v2355_v59  ;;  %v4720_v42 = vpack.c.bf16 %v2716_v50, %v2714_v48  ;;  %v2713_v59 = vld [vmem:[%s8579_s7 + $0x940] sm:$0xff] }
 0x4c9   : > { %4683 = vmatpush1.bf16.msra.mxu0 %v4682_v53  ;;  %3353 = vmatprep.mubr.f32.mxu0 %v2370_v63  ;;  %v4718_v53 = vpack.c.bf16 %v2711_v35, %v2709_v47  ;;  %v2752_v47 = vld [vmem:[%s8579_s7 + $0xa78] sm:$0xff]  ;;  %v2749_v50 = vld [vmem:[%s8579_s7 + $0xa60] sm:$0xff] }
 0x4ca   : > { %4685 = vmatprep.subr.bf16.mxu0 %v4684_v58  ;;  %v2715_v58 = vld [vmem:[%s8579_s7 + $0x950] sm:$0xff] }
 0x4cb   : > { %v4722_v63 = vpack.c.bf16 %v2715_v58, %v2713_v59  ;;  %v2756_v59 = vld [vmem:[%s8579_s7 + $0xa98] sm:$0xff] }
 0x4cd   : > { %4687 = vmatpush1.bf16.msra.mxu0 %v4686_v0  ;;  %v2719_v0 = vld [vmem:[%s8579_s7 + $0x970] sm:$0xff] }
 0x4ce   : > { %4689 = vmatprep.subr.bf16.mxu0 %v4688_v1  ;;  %v2722_v1 = vld [vmem:[%s8579_s7 + $0x988] sm:$0xff]  ;;  %v4726_v4 = vpack.c.bf16 %v2719_v0, %v2717_v23  ;;  %v2760_v23 = vld [vmem:[%s8579_s7 + $0xab8] sm:$0xff] }
 0x4cf   : > { %v4728_v5 = vpack.c.bf16 %v2724_v2, %v2722_v1  ;;  %v2757_v2 = vld [vmem:[%s8579_s7 + $0xaa0] sm:$0xff] }
 0x4d1   : > { %4691 = vmatpush1.bf16.msra.mxu0 %v4690_v9  ;;  %v2723_v9 = vld [vmem:[%s8579_s7 + $0x990] sm:$0xff] }
 0x4d2   : > { %4693 = vmatprep.subr.bf16.mxu0 %v4692_v12  ;;  %v2726_v12 = vld [vmem:[%s8579_s7 + $0x9a8] sm:$0xff]  ;;  %v4730_v17 = vpack.c.bf16 %v2723_v9, %v2721_v6  ;;  %v2764_v6 = vld [vmem:[%s8579_s7 + $0xad8] sm:$0xff] }
 0x4d3   : > { %v4732_v18 = vpack.c.bf16 %v2728_v15, %v2726_v12  ;;  %v2761_v15 = vld [vmem:[%s8579_s7 + $0xac0] sm:$0xff] }
 0x4d5   : > { %4695 = vmatpush1.bf16.msra.mxu0 %v4694_v21  ;;  %v2727_v21 = vld [vmem:[%s8579_s7 + $0x9b0] sm:$0xff] }
 0x4d6   : > { %4697 = vmatprep.subr.bf16.mxu0 %v4696_v24  ;;  %v2730_v24 = vld [vmem:[%s8579_s7 + $0x9c8] sm:$0xff]  ;;  %v4734_v25 = vpack.c.bf16 %v2727_v21, %v2725_v20  ;;  %v2768_v20 = vld [vmem:[%s8579_s7 + $0xaf8] sm:$0xff] }
 0x4d7   : > { %v4736_v22 = vpack.c.bf16 %v2732_v49, %v2730_v24  ;;  %v2765_v49 = vld [vmem:[%s8579_s7 + $0xae0] sm:$0xff] }
 0x4d9   : > { %4699 = vmatpush1.bf16.msra.mxu0 %v4698_v26  ;;  %v2731_v26 = vld [vmem:[%s8579_s7 + $0x9d0] sm:$0xff] }
 0x4da   : > { %4701 = vmatprep.subr.bf16.mxu0 %v4700_v34  ;;  %v2734_v34 = vld [vmem:[%s8579_s7 + $0x9e8] sm:$0xff]  ;;  %v4738_v27 = vpack.c.bf16 %v2731_v26, %v2729_v10  ;;  %v2772_v10 = vld [vmem:[%s8579_s7 + $0xb18] sm:$0xff] }
 0x4db   : > { %v4740_v19 = vpack.c.bf16 %v2736_v60, %v2734_v34  ;;  %v2769_v60 = vld [vmem:[%s8579_s7 + $0xb00] sm:$0xff] }
 0x4dd   : > { %4703 = vmatpush1.bf16.msra.mxu0 %v4702_v51  ;;  %v2740_v51 = vld [vmem:[%s8579_s7 + $0xa18] sm:$0xff] }
 0x4de   : > { %4705 = vmatprep.subr.bf16.mxu0 %v4704_v30  ;;  %v4742_v30 = vpack.c.bf16 %v2735_v7, %v2733_v57  ;;  %v4744_v31 = vpack.c.bf16 %v2740_v51, %v2738_v29  ;;  %v2776_v57 = vld [vmem:[%s8579_s7 + $0xb38] sm:$0xff]  ;;  %v2773_v51 = vld [vmem:[%s8579_s7 + $0xb20] sm:$0xff] }
 0x4e1   : > { %4707 = vmatpush1.bf16.msra.mxu0 %v4706_v56  ;;  %v2744_v56 = vld [vmem:[%s8579_s7 + $0xa38] sm:$0xff] }
 0x4e2   : > { %4709 = vmatprep.subr.bf16.mxu0 %v4708_v46  ;;  %v7736_v46 = vld [vmem:[#allocation4 + $0x5] ss:$8 sm:$0x3]  ;;  %v4748_v28 = vpack.c.bf16 %v2744_v56, %v2742_v38 }
 0x4e3   : > { %v2777_v56 = vld [vmem:[%s8579_s7 + $0xb40] sm:$0xff] }
 0x4e5   : > { %4711 = vmatpush1.bf16.msra.mxu0 %v4710_v37  ;;  %v2743_v37 = vld [vmem:[%s8579_s7 + $0xa30] sm:$0xff] }
 0x4e6   : > { %4713 = vmatprep.subr.bf16.mxu0 %v4712_v39  ;;  %v2381_v39 = vrot.slane %v7736_v46, %v7130_v16  ;;  %v4750_v11 = vpack.c.bf16 %v2743_v37, %v2741_v36 }
 0x4e9   : > { %4715 = vmatpush1.bf16.msra.mxu0 %v4714_v44  ;;  %v2747_v44 = vld [vmem:[%s8579_s7 + $0xa50] sm:$0xff] }
 0x4ea   : > { %4717 = vmatprep.subr.bf16.mxu0 %v4716_v45  ;;  %v2750_v45 = vld [vmem:[%s8579_s7 + $0xa68] sm:$0xff]  ;;  %v4754_v35 = vpack.c.bf16 %v2747_v44, %v2745_v41  ;;  %v2785_v44 = vld [vmem:[%s8579_s7 + $0xb80] sm:$0xff] }
 0x4eb   : > { %v4756_v48 = vpack.c.bf16 %v2752_v47, %v2750_v45  ;;  %v2787_v45 = vld [vmem:[%s8579_s7 + $0xb90] sm:$0xff]  ;;  %v2790_v47 = vld [vmem:[%s8579_s7 + $0xba8] sm:$0xff] }
 0x4ed   : > { %4719 = vmatpush1.bf16.msra.mxu0 %v4718_v53  ;;  %v2751_v53 = vld [vmem:[%s8579_s7 + $0xa70] sm:$0xff] }
 0x4ee   : > { %4721 = vmatprep.subr.bf16.mxu0 %v4720_v42  ;;  %v2754_v42 = vld [vmem:[%s8579_s7 + $0xa88] sm:$0xff]  ;;  %v4758_v58 = vpack.c.bf16 %v2751_v53, %v2749_v50  ;;  %v2789_v53 = vld [vmem:[%s8579_s7 + $0xba0] sm:$0xff] }
 0x4ef   : > { %v4760_v61 = vpack.c.bf16 %v2756_v59, %v2754_v42  ;;  %v2791_v42 = vld [vmem:[%s8579_s7 + $0xbb0] sm:$0xff]  ;;  %v2794_v59 = vld [vmem:[%s8579_s7 + $0xbc8] sm:$0xff] }
 0x4f1   : > { %4723 = vmatpush1.bf16.msra.mxu0 %v4722_v63  ;;  %v2755_v63 = vld [vmem:[%s8579_s7 + $0xa90] sm:$0xff] }
 0x4f2   : > { %4725 = vmatprep.subr.bf16.mxu0 %v4724_v43  ;;  %v2758_v43 = vld [vmem:[%s8579_s7 + $0xaa8] sm:$0xff]  ;;  %v4762_v0 = vpack.c.bf16 %v2755_v63, %v2753_v62  ;;  %v2793_v63 = vld [vmem:[%s8579_s7 + $0xbc0] sm:$0xff] }
 0x4f3   : > { %v4764_v1 = vpack.c.bf16 %v2760_v23, %v2758_v43  ;;  %v2795_v43 = vld [vmem:[%s8579_s7 + $0xbd0] sm:$0xff]  ;;  %v2798_v23 = vld [vmem:[%s8579_s7 + $0xbe8] sm:$0xff] }
 0x4f5   : > { %4727 = vmatpush1.bf16.msra.mxu0 %v4726_v4  ;;  %v2759_v4 = vld [vmem:[%s8579_s7 + $0xab0] sm:$0xff] }
 0x4f6   : > { %4729 = vmatprep.subr.bf16.mxu0 %v4728_v5  ;;  %v2762_v5 = vld [vmem:[%s8579_s7 + $0xac8] sm:$0xff]  ;;  %v4766_v9 = vpack.c.bf16 %v2759_v4, %v2757_v2  ;;  %v2797_v4 = vld [vmem:[%s8579_s7 + $0xbe0] sm:$0xff] }
 0x4f7   : > { %v4768_v12 = vpack.c.bf16 %v2764_v6, %v2762_v5  ;;  %v2799_v5 = vld [vmem:[%s8579_s7 + $0xbf0] sm:$0xff]  ;;  %v2802_v6 = vld [vmem:[%s8579_s7 + $0xc08] sm:$0xff] }
 0x4f9   : > { %4731 = vmatpush1.bf16.msra.mxu0 %v4730_v17  ;;  %v2763_v17 = vld [vmem:[%s8579_s7 + $0xad0] sm:$0xff] }
 0x4fa   : > { %4733 = vmatprep.subr.bf16.mxu0 %v4732_v18  ;;  %v2766_v18 = vld [vmem:[%s8579_s7 + $0xae8] sm:$0xff]  ;;  %v4770_v21 = vpack.c.bf16 %v2763_v17, %v2761_v15  ;;  %v2801_v17 = vld [vmem:[%s8579_s7 + $0xc00] sm:$0xff] }
 0x4fb   : > { %v4772_v24 = vpack.c.bf16 %v2768_v20, %v2766_v18  ;;  %v2803_v18 = vld [vmem:[%s8579_s7 + $0xc10] sm:$0xff]  ;;  %v2806_v20 = vld [vmem:[%s8579_s7 + $0xc28] sm:$0xff] }
 0x4fd   : > { %4735 = vmatpush1.bf16.msra.mxu0 %v4734_v25  ;;  %v2767_v25 = vld [vmem:[%s8579_s7 + $0xaf0] sm:$0xff] }
 0x4fe   : > { %4737 = vmatprep.subr.bf16.mxu0 %v4736_v22  ;;  %v2770_v22 = vld [vmem:[%s8579_s7 + $0xb08] sm:$0xff]  ;;  %v4774_v26 = vpack.c.bf16 %v2767_v25, %v2765_v49  ;;  %v4810_v49 = vpack.c.bf16 %v2803_v18, %v2801_v17  ;;  %v2377_v25 = vrot.slane %v7736_v46, %v7124_v8  ;;  %v2812_v46 = vld [vmem:[%s8579_s7 + $0xc58] sm:$0xff] }
 0x4ff   : > { %v4776_v34 = vpack.c.bf16 %v2772_v10, %v2770_v22  ;;  %v2805_v10 = vld [vmem:[%s8579_s7 + $0xc20] sm:$0xff]  ;;  %v2844_v17 = vld [vmem:[%s8579_s7 + $0xd58] sm:$0xff] }
 0x501   : > { %4739 = vmatpush1.bf16.msra.mxu0 %v4738_v27  ;;  %v2771_v27 = vld [vmem:[%s8579_s7 + $0xb10] sm:$0xff] }
 0x502   : > { %4741 = vmatprep.subr.bf16.mxu0 %v4740_v19  ;;  %v2774_v19 = vld [vmem:[%s8579_s7 + $0xb28] sm:$0xff]  ;;  %v4778_v7 = vpack.c.bf16 %v2771_v27, %v2769_v60 }
 0x503   : > { %v4780_v29 = vpack.c.bf16 %v2776_v57, %v2774_v19  ;;  %v2810_v60 = vld [vmem:[%s8579_s7 + $0xc48] sm:$0xff]  ;;  %v2809_v57 = vld [vmem:[%s8579_s7 + $0xc40] sm:$0xff] }
 0x504   : > { %v4816_v19 = vpack.c.bf16 %v2812_v46, %v2810_v60  ;;  %v2847_v60 = vld [vmem:[%s8579_s7 + $0xd70] sm:$0xff]  ;;  %v2850_v46 = vld [vmem:[%s8579_s7 + $0xd88] sm:$0xff] }
 0x505   : > { %4743 = vmatpush1.bf16.msra.mxu0 %v4742_v30  ;;  %v2775_v30 = vld [vmem:[%s8579_s7 + $0xb30] sm:$0xff] }
 0x506   : > { %4745 = vmatprep.subr.bf16.mxu0 %v4744_v31  ;;  %v2778_v31 = vld [vmem:[%s8579_s7 + $0xb48] sm:$0xff]  ;;  %v4782_v33 = vpack.c.bf16 %v2775_v30, %v2773_v51  ;;  %v2816_v51 = vld [vmem:[%s8579_s7 + $0xc78] sm:$0xff] }
 0x507   : > { %v4784_v38 = vpack.c.bf16 %v2780_v32, %v2778_v31  ;;  %v2813_v32 = vld [vmem:[%s8579_s7 + $0xc60] sm:$0xff] }
 0x508   : > { %3354 = vmatmul.mubr.f32.vlgmr.msra.gmra.mrb[32].mxu0 %v2366_v3  ;;  %v2782_v3 = vld [vmem:[%s8579_s7 + $0xb68] sm:$0xff] }
 0x509   : > { %4747 = vmatpush1.bf16.msra.mxu0 %v4746_v54  ;;  %3424 = vmatprep.mubr.f32.mxu0 %v2381_v39  ;;  %v2779_v54 = vld [vmem:[%s8579_s7 + $0xb50] sm:$0xff]  ;;  %v2781_v39 = vld [vmem:[%s8579_s7 + $0xb60] sm:$0xff] }
 0x50a   : > { %4749 = vmatprep.subr.bf16.mxu0 %v4748_v28  ;;  %v2784_v28 = vld [vmem:[%s8579_s7 + $0xb78] sm:$0xff]  ;;  %v4786_v36 = vpack.c.bf16 %v2779_v54, %v2777_v56 }
 0x50b   : > { %v4788_v37 = vpack.c.bf16 %v2784_v28, %v2782_v3  ;;  %v2820_v56 = vld [vmem:[%s8579_s7 + $0xc98] sm:$0xff]  ;;  %v2817_v28 = vld [vmem:[%s8579_s7 + $0xc80] sm:$0xff] }
 0x50d   : > { %4751 = vmatpush1.bf16.msra.mxu0 %v4750_v11  ;;  %v2788_v11 = vld [vmem:[%s8579_s7 + $0xb98] sm:$0xff] }
 0x50e   : > { %4753 = vmatprep.subr.bf16.mxu0 %v4752_v55  ;;  %v4790_v55 = vpack.c.bf16 %v2783_v40, %v2781_v39  ;;  %v4792_v41 = vpack.c.bf16 %v2788_v11, %v2786_v52  ;;  %v2824_v39 = vld [vmem:[%s8579_s7 + $0xcb8] sm:$0xff]  ;;  %v2821_v11 = vld [vmem:[%s8579_s7 + $0xca0] sm:$0xff] }
 0x511   : > { %4755 = vmatpush1.bf16.msra.mxu0 %v4754_v35  ;;  %v2792_v35 = vld [vmem:[%s8579_s7 + $0xbb8] sm:$0xff] }
 0x512   : > { %4757 = vmatprep.subr.bf16.mxu0 %v4756_v48  ;;  %v4794_v48 = vpack.c.bf16 %v2787_v45, %v2785_v44  ;;  %v4796_v50 = vpack.c.bf16 %v2792_v35, %v2790_v47  ;;  %v2828_v44 = vld [vmem:[%s8579_s7 + $0xcd8] sm:$0xff]  ;;  %v2825_v35 = vld [vmem:[%s8579_s7 + $0xcc0] sm:$0xff] }
 0x515   : > { %4759 = vmatpush1.bf16.msra.mxu0 %v4758_v58  ;;  %v2796_v58 = vld [vmem:[%s8579_s7 + $0xbd8] sm:$0xff] }
 0x516   : > { %4761 = vmatprep.subr.bf16.mxu0 %v4760_v61  ;;  %v4798_v61 = vpack.c.bf16 %v2791_v42, %v2789_v53  ;;  %v4800_v62 = vpack.c.bf16 %v2796_v58, %v2794_v59  ;;  %v2832_v53 = vld [vmem:[%s8579_s7 + $0xcf8] sm:$0xff]  ;;  %v2829_v58 = vld [vmem:[%s8579_s7 + $0xce0] sm:$0xff] }
 0x519   : > { %4763 = vmatpush1.bf16.msra.mxu0 %v4762_v0  ;;  %v2800_v0 = vld [vmem:[%s8579_s7 + $0xbf8] sm:$0xff] }
 0x51a   : > { %4765 = vmatprep.subr.bf16.mxu0 %v4764_v1  ;;  %v4802_v1 = vpack.c.bf16 %v2795_v43, %v2793_v63  ;;  %v4804_v2 = vpack.c.bf16 %v2800_v0, %v2798_v23  ;;  %v2836_v63 = vld [vmem:[%s8579_s7 + $0xd18] sm:$0xff]  ;;  %v2833_v0 = vld [vmem:[%s8579_s7 + $0xd00] sm:$0xff] }
 0x51d   : > { %4767 = vmatpush1.bf16.msra.mxu0 %v4766_v9  ;;  %v2804_v9 = vld [vmem:[%s8579_s7 + $0xc18] sm:$0xff] }
 0x51e   : > { %4769 = vmatprep.subr.bf16.mxu0 %v4768_v12  ;;  %v4806_v12 = vpack.c.bf16 %v2799_v5, %v2797_v4  ;;  %v4808_v15 = vpack.c.bf16 %v2804_v9, %v2802_v6  ;;  %v2840_v4 = vld [vmem:[%s8579_s7 + $0xd38] sm:$0xff]  ;;  %v2837_v9 = vld [vmem:[%s8579_s7 + $0xd20] sm:$0xff] }
 0x521   : > { %4771 = vmatpush1.bf16.msra.mxu0 %v4770_v21  ;;  %v2808_v21 = vld [vmem:[%s8579_s7 + $0xc38] sm:$0xff] }
 0x522   : > { %4773 = vmatprep.subr.bf16.mxu0 %v4772_v24  ;;  %v7934_v24 = vld [vmem:[#allocation4 + $0x6] ss:$8 sm:$0x3]  ;;  %v4812_v22 = vpack.c.bf16 %v2808_v21, %v2806_v20 }
 0x523   : > { %v2841_v21 = vld [vmem:[%s8579_s7 + $0xd40] sm:$0xff] }
 0x525   : > { %4775 = vmatpush1.bf16.msra.mxu0 %v4774_v26  ;;  %v2807_v26 = vld [vmem:[%s8579_s7 + $0xc30] sm:$0xff] }
 0x526   : > { %4777 = vmatprep.subr.bf16.mxu0 %v4776_v34  ;;  %v2392_v34 = vrot.slane %v7934_v24, %v7130_v16  ;;  %v4814_v27 = vpack.c.bf16 %v2807_v26, %v2805_v10 }
 0x529   : > { %4779 = vmatpush1.bf16.msra.mxu0 %v4778_v7  ;;  %v2811_v7 = vld [vmem:[%s8579_s7 + $0xc50] sm:$0xff] }
 0x52a   : > { %4781 = vmatprep.subr.bf16.mxu0 %v4780_v29  ;;  %v2814_v29 = vld [vmem:[%s8579_s7 + $0xc68] sm:$0xff]  ;;  %v4818_v30 = vpack.c.bf16 %v2811_v7, %v2809_v57  ;;  %v2849_v7 = vld [vmem:[%s8579_s7 + $0xd80] sm:$0xff] }
 0x52b   : > { %v4820_v31 = vpack.c.bf16 %v2816_v51, %v2814_v29  ;;  %v2851_v29 = vld [vmem:[%s8579_s7 + $0xd90] sm:$0xff]  ;;  %v2854_v51 = vld [vmem:[%s8579_s7 + $0xda8] sm:$0xff] }
 0x52d   : > { %4783 = vmatpush1.bf16.msra.mxu0 %v4782_v33  ;;  %v2815_v33 = vld [vmem:[%s8579_s7 + $0xc70] sm:$0xff] }
 0x52e   : > { %4785 = vmatprep.subr.bf16.mxu0 %v4784_v38  ;;  %v2818_v38 = vld [vmem:[%s8579_s7 + $0xc88] sm:$0xff]  ;;  %v4822_v54 = vpack.c.bf16 %v2815_v33, %v2813_v32  ;;  %v2853_v33 = vld [vmem:[%s8579_s7 + $0xda0] sm:$0xff] }
 0x52f   : > { %v4824_v3 = vpack.c.bf16 %v2820_v56, %v2818_v38  ;;  %v2855_v38 = vld [vmem:[%s8579_s7 + $0xdb0] sm:$0xff]  ;;  %v2858_v56 = vld [vmem:[%s8579_s7 + $0xdc8] sm:$0xff] }
 0x531   : > { %4787 = vmatpush1.bf16.msra.mxu0 %v4786_v36  ;;  %v2819_v36 = vld [vmem:[%s8579_s7 + $0xc90] sm:$0xff] }
 0x532   : > { %4789 = vmatprep.subr.bf16.mxu0 %v4788_v37  ;;  %v2822_v37 = vld [vmem:[%s8579_s7 + $0xca8] sm:$0xff]  ;;  %v4826_v40 = vpack.c.bf16 %v2819_v36, %v2817_v28  ;;  %v2857_v36 = vld [vmem:[%s8579_s7 + $0xdc0] sm:$0xff] }
 0x533   : > { %v4828_v52 = vpack.c.bf16 %v2824_v39, %v2822_v37  ;;  %v2859_v37 = vld [vmem:[%s8579_s7 + $0xdd0] sm:$0xff]  ;;  %v2862_v39 = vld [vmem:[%s8579_s7 + $0xde8] sm:$0xff] }
 0x535   : > { %4791 = vmatpush1.bf16.msra.mxu0 %v4790_v55  ;;  %v2823_v55 = vld [vmem:[%s8579_s7 + $0xcb0] sm:$0xff] }
 0x536   : > { %4793 = vmatprep.subr.bf16.mxu0 %v4792_v41  ;;  %v2826_v41 = vld [vmem:[%s8579_s7 + $0xcc8] sm:$0xff]  ;;  %v4830_v45 = vpack.c.bf16 %v2823_v55, %v2821_v11  ;;  %v2861_v55 = vld [vmem:[%s8579_s7 + $0xde0] sm:$0xff] }
 0x537   : > { %v4832_v47 = vpack.c.bf16 %v2828_v44, %v2826_v41  ;;  %v2863_v41 = vld [vmem:[%s8579_s7 + $0xdf0] sm:$0xff]  ;;  %v2866_v44 = vld [vmem:[%s8579_s7 + $0xe08] sm:$0xff] }
 0x539   : > { %4795 = vmatpush1.bf16.msra.mxu0 %v4794_v48  ;;  %v2827_v48 = vld [vmem:[%s8579_s7 + $0xcd0] sm:$0xff] }
 0x53a   : > { %4797 = vmatprep.subr.bf16.mxu0 %v4796_v50  ;;  %v2830_v50 = vld [vmem:[%s8579_s7 + $0xce8] sm:$0xff]  ;;  %v4834_v42 = vpack.c.bf16 %v2827_v48, %v2825_v35  ;;  %v2865_v48 = vld [vmem:[%s8579_s7 + $0xe00] sm:$0xff] }
 0x53b   : > { %v4836_v59 = vpack.c.bf16 %v2832_v53, %v2830_v50  ;;  %v2867_v50 = vld [vmem:[%s8579_s7 + $0xe10] sm:$0xff]  ;;  %v2870_v53 = vld [vmem:[%s8579_s7 + $0xe28] sm:$0xff] }
 0x53d   : > { %4799 = vmatpush1.bf16.msra.mxu0 %v4798_v61  ;;  %v2831_v61 = vld [vmem:[%s8579_s7 + $0xcf0] sm:$0xff] }
 0x53e   : > { %4801 = vmatprep.subr.bf16.mxu0 %v4800_v62  ;;  %v2834_v62 = vld [vmem:[%s8579_s7 + $0xd08] sm:$0xff]  ;;  %v4838_v43 = vpack.c.bf16 %v2831_v61, %v2829_v58  ;;  %v4874_v58 = vpack.c.bf16 %v2867_v50, %v2865_v48  ;;  %v2388_v61 = vrot.slane %v7934_v24, %v7124_v8  ;;  %v2876_v24 = vld [vmem:[%s8579_s7 + $0xe58] sm:$0xff]  ;;  %v2903_v48 = vld [vmem:[%s8579_s7 + $0xf30] sm:$0xff] }
 0x53f   : > { %v4840_v23 = vpack.c.bf16 %v2836_v63, %v2834_v62  ;;  %v2869_v63 = vld [vmem:[%s8579_s7 + $0xe20] sm:$0xff]  ;;  %v2906_v50 = vld [vmem:[%s8579_s7 + $0xf48] sm:$0xff] }
 0x541   : > { %4803 = vmatpush1.bf16.msra.mxu0 %v4802_v1  ;;  %v2835_v1 = vld [vmem:[%s8579_s7 + $0xd10] sm:$0xff] }
 0x542   : > { %4805 = vmatprep.subr.bf16.mxu0 %v4804_v2  ;;  %v2838_v2 = vld [vmem:[%s8579_s7 + $0xd28] sm:$0xff]  ;;  %v4842_v5 = vpack.c.bf16 %v2835_v1, %v2833_v0 }
 0x543   : > { %v4844_v6 = vpack.c.bf16 %v2840_v4, %v2838_v2  ;;  %v2874_v0 = vld [vmem:[%s8579_s7 + $0xe48] sm:$0xff]  ;;  %v2873_v4 = vld [vmem:[%s8579_s7 + $0xe40] sm:$0xff] }
 0x544   : > { %v4880_v2 = vpack.c.bf16 %v2876_v24, %v2874_v0  ;;  %v2909_v24 = vld [vmem:[%s8579_s7 + $0xf60] sm:$0xff] }
 0x545   : > { %4807 = vmatpush1.bf16.msra.mxu0 %v4806_v12  ;;  %v2839_v12 = vld [vmem:[%s8579_s7 + $0xd30] sm:$0xff] }
 0x546   : > { %4809 = vmatprep.subr.bf16.mxu0 %v4808_v15  ;;  %v2842_v15 = vld [vmem:[%s8579_s7 + $0xd48] sm:$0xff]  ;;  %v4846_v18 = vpack.c.bf16 %v2839_v12, %v2837_v9  ;;  %v2880_v9 = vld [vmem:[%s8579_s7 + $0xe78] sm:$0xff] }
 0x547   : > { %v4848_v20 = vpack.c.bf16 %v2844_v17, %v2842_v15  ;;  %v2877_v17 = vld [vmem:[%s8579_s7 + $0xe60] sm:$0xff] }
 0x548   : > { %3425 = vmatmul.mubr.f32.vlgmr.msra.gmra.mrb[32].mxu0 %v2377_v25  ;;  %v2846_v25 = vld [vmem:[%s8579_s7 + $0xd68] sm:$0xff] }
 0x549   : > { %4811 = vmatpush1.bf16.msra.mxu0 %v4810_v49  ;;  %3495 = vmatprep.mubr.f32.mxu0 %v2392_v34  ;;  %v2843_v49 = vld [vmem:[%s8579_s7 + $0xd50] sm:$0xff]  ;;  %v2845_v34 = vld [vmem:[%s8579_s7 + $0xd60] sm:$0xff] }
 0x54a   : > { %4813 = vmatprep.subr.bf16.mxu0 %v4812_v22  ;;  %v2848_v22 = vld [vmem:[%s8579_s7 + $0xd78] sm:$0xff]  ;;  %v4850_v10 = vpack.c.bf16 %v2843_v49, %v2841_v21 }
 0x54b   : > { %v4852_v26 = vpack.c.bf16 %v2848_v22, %v2846_v25  ;;  %v2884_v21 = vld [vmem:[%s8579_s7 + $0xe98] sm:$0xff]  ;;  %v2881_v22 = vld [vmem:[%s8579_s7 + $0xe80] sm:$0xff] }
 0x54d   : > { %4815 = vmatpush1.bf16.msra.mxu0 %v4814_v27  ;;  %v2852_v27 = vld [vmem:[%s8579_s7 + $0xd98] sm:$0xff] }
 0x54e   : > { %4817 = vmatprep.subr.bf16.mxu0 %v4816_v19  ;;  %v4854_v19 = vpack.c.bf16 %v2847_v60, %v2845_v34  ;;  %v4856_v57 = vpack.c.bf16 %v2852_v27, %v2850_v46  ;;  %v2888_v34 = vld [vmem:[%s8579_s7 + $0xeb8] sm:$0xff]  ;;  %v2885_v27 = vld [vmem:[%s8579_s7 + $0xea0] sm:$0xff] }
 0x551   : > { %4819 = vmatpush1.bf16.msra.mxu0 %v4818_v30  ;;  %v2856_v30 = vld [vmem:[%s8579_s7 + $0xdb8] sm:$0xff] }
 0x552   : > { %4821 = vmatprep.subr.bf16.mxu0 %v4820_v31  ;;  %v4858_v31 = vpack.c.bf16 %v2851_v29, %v2849_v7  ;;  %v4860_v32 = vpack.c.bf16 %v2856_v30, %v2854_v51  ;;  %v2892_v7 = vld [vmem:[%s8579_s7 + $0xed8] sm:$0xff]  ;;  %v2889_v30 = vld [vmem:[%s8579_s7 + $0xec0] sm:$0xff] }
 0x555   : > { %4823 = vmatpush1.bf16.msra.mxu0 %v4822_v54  ;;  %v2860_v54 = vld [vmem:[%s8579_s7 + $0xdd8] sm:$0xff] }
 0x556   : > { %4825 = vmatprep.subr.bf16.mxu0 %v4824_v3  ;;  %v4862_v3 = vpack.c.bf16 %v2855_v38, %v2853_v33  ;;  %v4864_v28 = vpack.c.bf16 %v2860_v54, %v2858_v56  ;;  %v2894_v33 = vld [vmem:[%s8579_s7 + $0xee8] sm:$0xff]  ;;  %v2896_v38 = vld [vmem:[%s8579_s7 + $0xef8] sm:$0xff] }
 0x559   : > { %4827 = vmatpush1.bf16.msra.mxu0 %v4826_v40  ;;  %v2864_v40 = vld [vmem:[%s8579_s7 + $0xdf8] sm:$0xff] }
 0x55a   : > { %4829 = vmatprep.subr.bf16.mxu0 %v4828_v52  ;;  %v4866_v52 = vpack.c.bf16 %v2859_v37, %v2857_v36  ;;  %v4868_v11 = vpack.c.bf16 %v2864_v40, %v2862_v39  ;;  %v2895_v36 = vld [vmem:[%s8579_s7 + $0xef0] sm:$0xff]  ;;  %v2898_v37 = vld [vmem:[%s8579_s7 + $0xf08] sm:$0xff]  ;;  %v2900_v39 = vld [vmem:[%s8579_s7 + $0xf18] sm:$0xff] }
 0x55d   : > { %4831 = vmatpush1.bf16.msra.mxu0 %v4830_v45  ;;  %v2868_v45 = vld [vmem:[%s8579_s7 + $0xe18] sm:$0xff] }
 0x55e   : > { %4833 = vmatprep.subr.bf16.mxu0 %v4832_v47  ;;  %v4870_v47 = vpack.c.bf16 %v2863_v41, %v2861_v55  ;;  %v4872_v35 = vpack.c.bf16 %v2868_v45, %v2866_v44  ;;  %v2899_v55 = vld [vmem:[%s8579_s7 + $0xf10] sm:$0xff]  ;;  %v2902_v41 = vld [vmem:[%s8579_s7 + $0xf28] sm:$0xff]  ;;  %v2904_v44 = vld [vmem:[%s8579_s7 + $0xf38] sm:$0xff] }
 0x561   : > { %4835 = vmatpush1.bf16.msra.mxu0 %v4834_v42  ;;  %v2872_v42 = vld [vmem:[%s8579_s7 + $0xe38] sm:$0xff] }
 0x562   : > { %4837 = vmatprep.subr.bf16.mxu0 %v4836_v59  ;;  %v8132_v59 = vld [vmem:[#allocation4 + $0x7] ss:$8 sm:$0x3]  ;;  %v4876_v62 = vpack.c.bf16 %v2872_v42, %v2870_v53 }
 0x563   : > { %v2908_v53 = vld [vmem:[%s8579_s7 + $0xf58] sm:$0xff] }
 0x565   : > { %4839 = vmatpush1.bf16.msra.mxu0 %v4838_v43  ;;  %v2871_v43 = vld [vmem:[%s8579_s7 + $0xe30] sm:$0xff] }
 0x566   : > { %4841 = vmatprep.subr.bf16.mxu0 %v4840_v23  ;;  %v2403_v23 = vrot.slane %v8132_v59, %v7130_v16  ;;  %v4878_v1 = vpack.c.bf16 %v2871_v43, %v2869_v63  ;;  %v2910_v63 = vld [vmem:[%s8579_s7 + $0xf68] sm:$0xff]  ;;  %v2912_v43 = vld [vmem:[%s8579_s7 + $0xf78] sm:$0xff] }
 0x567   : > { %v4916_v0 = vpack.c.bf16 %v2912_v43, %v2910_v63  ;;  %v2948_v63 = vld [vmem:[%s8579_s7 + $0x1098] sm:$0xff] }
 0x569   : > { %4843 = vmatpush1.bf16.msra.mxu0 %v4842_v5  ;;  %v2875_v5 = vld [vmem:[%s8579_s7 + $0xe50] sm:$0xff] }
 0x56a   : > { %4845 = vmatprep.subr.bf16.mxu0 %v4844_v6  ;;  %v2878_v6 = vld [vmem:[%s8579_s7 + $0xe68] sm:$0xff]  ;;  %v4882_v12 = vpack.c.bf16 %v2875_v5, %v2873_v4  ;;  %v2916_v4 = vld [vmem:[%s8579_s7 + $0xf98] sm:$0xff] }
 0x56b   : > { %v4884_v15 = vpack.c.bf16 %v2880_v9, %v2878_v6  ;;  %v2913_v9 = vld [vmem:[%s8579_s7 + $0xf80] sm:$0xff] }
 0x56d   : > { %4847 = vmatpush1.bf16.msra.mxu0 %v4846_v18  ;;  %v2879_v18 = vld [vmem:[%s8579_s7 + $0xe70] sm:$0xff] }
 0x56e   : > { %4849 = vmatprep.subr.bf16.mxu0 %v4848_v20  ;;  %v2882_v20 = vld [vmem:[%s8579_s7 + $0xe88] sm:$0xff]  ;;  %v4886_v49 = vpack.c.bf16 %v2879_v18, %v2877_v17  ;;  %v2920_v17 = vld [vmem:[%s8579_s7 + $0xfb8] sm:$0xff] }
 0x56f   : > { %v4888_v25 = vpack.c.bf16 %v2884_v21, %v2882_v20  ;;  %v2917_v21 = vld [vmem:[%s8579_s7 + $0xfa0] sm:$0xff] }
 0x571   : > { %4851 = vmatpush1.bf16.msra.mxu0 %v4850_v10  ;;  %v2883_v10 = vld [vmem:[%s8579_s7 + $0xe90] sm:$0xff] }
 0x572   : > { %4853 = vmatprep.subr.bf16.mxu0 %v4852_v26  ;;  %v2886_v26 = vld [vmem:[%s8579_s7 + $0xea8] sm:$0xff]  ;;  %v4890_v60 = vpack.c.bf16 %v2883_v10, %v2881_v22  ;;  %v2924_v22 = vld [vmem:[%s8579_s7 + $0xfd8] sm:$0xff] }
 0x573   : > { %v4892_v46 = vpack.c.bf16 %v2888_v34, %v2886_v26  ;;  %v2921_v34 = vld [vmem:[%s8579_s7 + $0xfc0] sm:$0xff] }
 0x575   : > { %4855 = vmatpush1.bf16.msra.mxu0 %v4854_v19  ;;  %v2887_v19 = vld [vmem:[%s8579_s7 + $0xeb0] sm:$0xff] }
 0x576   : > { %4857 = vmatprep.subr.bf16.mxu0 %v4856_v57  ;;  %v2890_v57 = vld [vmem:[%s8579_s7 + $0xec8] sm:$0xff]  ;;  %v4894_v29 = vpack.c.bf16 %v2887_v19, %v2885_v27  ;;  %v2928_v27 = vld [vmem:[%s8579_s7 + $0xff8] sm:$0xff] }
 0x577   : > { %v4896_v51 = vpack.c.bf16 %v2892_v7, %v2890_v57  ;;  %v2925_v7 = vld [vmem:[%s8579_s7 + $0xfe0] sm:$0xff] }
 0x579   : > { %4859 = vmatpush1.bf16.msra.mxu0 %v4858_v31  ;;  %v2891_v31 = vld [vmem:[%s8579_s7 + $0xed0] sm:$0xff] }
 0x57a   : > { %4861 = vmatprep.subr.bf16.mxu0 %v4860_v32  ;;  %v4898_v54 = vpack.c.bf16 %v2891_v31, %v2889_v30  ;;  %v2932_v30 = vld [vmem:[%s8579_s7 + $0x1018] sm:$0xff] }
 0x57d   : > { %4863 = vmatpush1.bf16.msra.mxu0 %v4862_v3  ;;  %v4900_v3 = vpack.c.bf16 %v2896_v38, %v2894_v33  ;;  %v2929_v38 = vld [vmem:[%s8579_s7 + $0x1000] sm:$0xff] }
 0x57e   : > { %4865 = vmatprep.subr.bf16.mxu0 %v4864_v28  ;;  %v2893_v28 = vld [vmem:[%s8579_s7 + $0xee0] sm:$0xff] }
 0x57f   : > { %v4902_v40 = vpack.c.bf16 %v2895_v36, %v2893_v28  ;;  %v2936_v28 = vld [vmem:[%s8579_s7 + $0x1038] sm:$0xff]  ;;  %v8334_v36 = vld [vmem:[#allocation4 + $0x10] ss:$8 sm:$0x3] }
 0x581   : > { %4867 = vmatpush1.bf16.msra.mxu0 %v4866_v52  ;;  %v4904_v52 = vpack.c.bf16 %v2900_v39, %v2898_v37  ;;  %v2399_v39 = vrot.slane %v8132_v59, %v7124_v8  ;;  %v2940_v59 = vld [vmem:[%s8579_s7 + $0x1058] sm:$0xff] }
 0x582   : > { %4869 = vmatprep.subr.bf16.mxu0 %v4868_v11  ;;  %v2897_v11 = vld [vmem:[%s8579_s7 + $0xf00] sm:$0xff] }
 0x583   : > { %v4906_v45 = vpack.c.bf16 %v2899_v55, %v2897_v11  ;;  %v2935_v11 = vld [vmem:[%s8579_s7 + $0x1030] sm:$0xff]  ;;  %v2414_v55 = vrot.slane %v8334_v36, %v7130_v16 }
 0x585   : > { %4871 = vmatpush1.bf16.msra.mxu0 %v4870_v47  ;;  %v4908_v47 = vpack.c.bf16 %v2904_v44, %v2902_v41  ;;  %v2938_v41 = vld [vmem:[%s8579_s7 + $0x1048] sm:$0xff] }
 0x586   : > { %4873 = vmatprep.subr.bf16.mxu0 %v4872_v35  ;;  %v2901_v35 = vld [vmem:[%s8579_s7 + $0xf20] sm:$0xff] }
 0x587   : > { %v4910_v42 = vpack.c.bf16 %v2903_v48, %v2901_v35  ;;  %v2939_v35 = vld [vmem:[%s8579_s7 + $0x1050] sm:$0xff]  ;;  %v2942_v48 = vld [vmem:[%s8579_s7 + $0x1068] sm:$0xff] }
 0x588   : > { %3496 = vmatmul.mubr.f32.vlgmr.msra.gmra.mrb[32].mxu0 %v2388_v61  ;;  %v2905_v61 = vld [vmem:[%s8579_s7 + $0xf40] sm:$0xff] }
 0x589   : > { %4875 = vmatpush1.bf16.msra.mxu0 %v4874_v58  ;;  %3566 = vmatprep.mubr.f32.mxu0 %v2403_v23  ;;  %v4912_v58 = vpack.c.bf16 %v2908_v53, %v2906_v50  ;;  %v2944_v50 = vld [vmem:[%s8579_s7 + $0x1078] sm:$0xff] }
 0x58a   : > { %4877 = vmatprep.subr.bf16.mxu0 %v4876_v62  ;;  %v2907_v62 = vld [vmem:[%s8579_s7 + $0xf50] sm:$0xff] }
 0x58b   : > { %v4914_v23 = vpack.c.bf16 %v2907_v62, %v2905_v61  ;;  %v2943_v61 = vld [vmem:[%s8579_s7 + $0x1070] sm:$0xff]  ;;  %v2946_v62 = vld [vmem:[%s8579_s7 + $0x1088] sm:$0xff] }
 0x58d   : > { %4879 = vmatpush1.bf16.msra.mxu0 %v4878_v1  ;;  %v2911_v1 = vld [vmem:[%s8579_s7 + $0xf70] sm:$0xff] }
 0x58e   : > { %4881 = vmatprep.subr.bf16.mxu0 %v4880_v2  ;;  %v2914_v2 = vld [vmem:[%s8579_s7 + $0xf88] sm:$0xff]  ;;  %v4918_v5 = vpack.c.bf16 %v2911_v1, %v2909_v24  ;;  %v2947_v24 = vld [vmem:[%s8579_s7 + $0x1090] sm:$0xff] }
 0x58f   : > { %v4920_v6 = vpack.c.bf16 %v2916_v4, %v2914_v2  ;;  %v2950_v1 = vld [vmem:[%s8579_s7 + $0x10a8] sm:$0xff]  ;;  %v2952_v2 = vld [vmem:[%s8579_s7 + $0x10b8] sm:$0xff] }
 0x591   : > { %4883 = vmatpush1.bf16.msra.mxu0 %v4882_v12  ;;  %v2915_v12 = vld [vmem:[%s8579_s7 + $0xf90] sm:$0xff] }
 0x592   : > { %4885 = vmatprep.subr.bf16.mxu0 %v4884_v15  ;;  %v2918_v15 = vld [vmem:[%s8579_s7 + $0xfa8] sm:$0xff]  ;;  %v4922_v18 = vpack.c.bf16 %v2915_v12, %v2913_v9  ;;  %v2951_v9 = vld [vmem:[%s8579_s7 + $0x10b0] sm:$0xff] }
 0x593   : > { %v4924_v20 = vpack.c.bf16 %v2920_v17, %v2918_v15  ;;  %v2954_v12 = vld [vmem:[%s8579_s7 + $0x10c8] sm:$0xff]  ;;  %v2956_v15 = vld [vmem:[%s8579_s7 + $0x10d8] sm:$0xff] }
 0x595   : > { %4887 = vmatpush1.bf16.msra.mxu0 %v4886_v49  ;;  %v2919_v49 = vld [vmem:[%s8579_s7 + $0xfb0] sm:$0xff] }
 0x596   : > { %4889 = vmatprep.subr.bf16.mxu0 %v4888_v25  ;;  %v2922_v25 = vld [vmem:[%s8579_s7 + $0xfc8] sm:$0xff]  ;;  %v4926_v10 = vpack.c.bf16 %v2919_v49, %v2917_v21  ;;  %v2955_v21 = vld [vmem:[%s8579_s7 + $0x10d0] sm:$0xff] }
 0x597   : > { %v4928_v26 = vpack.c.bf16 %v2924_v22, %v2922_v25  ;;  %v2958_v49 = vld [vmem:[%s8579_s7 + $0x10e8] sm:$0xff]  ;;  %v2960_v25 = vld [vmem:[%s8579_s7 + $0x10f8] sm:$0xff] }
 0x599   : > { %4891 = vmatpush1.bf16.msra.mxu0 %v4890_v60  ;;  %v2923_v60 = vld [vmem:[%s8579_s7 + $0xfd0] sm:$0xff] }
 0x59a   : > { %4893 = vmatprep.subr.bf16.mxu0 %v4892_v46  ;;  %v2926_v46 = vld [vmem:[%s8579_s7 + $0xfe8] sm:$0xff]  ;;  %v4930_v19 = vpack.c.bf16 %v2923_v60, %v2921_v34  ;;  %v2959_v34 = vld [vmem:[%s8579_s7 + $0x10f0] sm:$0xff] }
 0x59b   : > { %v8204_v32 = vpop.f32.mrb[46].mxu1  ;;  %v4932_v57 = vpack.c.bf16 %v2928_v27, %v2926_v46  ;;  %v2962_v60 = vld [vmem:[%s8579_s7 + $0x1108] sm:$0xff]  ;;  %v2964_v46 = vld [vmem:[%s8579_s7 + $0x1118] sm:$0xff] }
 0x59c   : > { %v8212_v56 = vpop.f32.mrb[47].mxu1 }
 0x59d   : > { %4895 = vmatpush1.bf16.msra.mxu0 %v4894_v29  ;;  %v2927_v29 = vld [vmem:[%s8579_s7 + $0xff0] sm:$0xff] }
 0x59e   : > { %4897 = vmatprep.subr.bf16.mxu0 %v4896_v51  ;;  %v2930_v51 = vld [vmem:[%s8579_s7 + $0x1008] sm:$0xff]  ;;  %v4934_v31 = vpack.c.bf16 %v2927_v29, %v2925_v7  ;;  %v2963_v7 = vld [vmem:[%s8579_s7 + $0x1110] sm:$0xff] }
 0x59f   : > { %v4936_v33 = vpack.c.bf16 %v2932_v30, %v2930_v51  ;;  %v2966_v29 = vld [vmem:[%s8579_s7 + $0x1128] sm:$0xff]  ;;  %v2968_v51 = vld [vmem:[%s8579_s7 + $0x1138] sm:$0xff] }
 0x5a1   : > { %4899 = vmatpush1.bf16.msra.mxu0 %v4898_v54  ;;  %v2931_v54 = vld [vmem:[%s8579_s7 + $0x1010] sm:$0xff] }
 0x5a2   : > { %4901 = vmatprep.subr.bf16.mxu0 %v4900_v3  ;;  %v2934_v3 = vld [vmem:[%s8579_s7 + $0x1028] sm:$0xff]  ;;  %v4938_v37 = vpack.c.bf16 %v2931_v54, %v2929_v38  ;;  %v2967_v38 = vld [vmem:[%s8579_s7 + $0x1130] sm:$0xff] }
 0x5a3   : > { %v2970_v54 = vld [vmem:[%s8579_s7 + $0x1148] sm:$0xff] }
 0x5a5   : > { %4903 = vmatpush1.bf16.msra.mxu0 %v4902_v40  ;;  %v4940_v40 = vpack.c.bf16 %v2936_v28, %v2934_v3  ;;  %v2972_v3 = vld [vmem:[%s8579_s7 + $0x1158] sm:$0xff] }
 0x5a6   : > { %4905 = vmatprep.subr.bf16.mxu0 %v4904_v52  ;;  %v2933_v52 = vld [vmem:[%s8579_s7 + $0x1020] sm:$0xff] }
 0x5a7   : > { %v4942_v44 = vpack.c.bf16 %v2935_v11, %v2933_v52  ;;  %v2974_v52 = vld [vmem:[%s8579_s7 + $0x1168] sm:$0xff]  ;;  %v2976_v11 = vld [vmem:[%s8579_s7 + $0x1178] sm:$0xff] }
 0x5a9   : > { %4907 = vmatpush1.bf16.msra.mxu0 %v4906_v45  ;;  %v4944_v45 = vpack.c.bf16 %v2940_v59, %v2938_v41  ;;  %v4980_v41 = vpack.c.bf16 %v2976_v11, %v2974_v52  ;;  %v2973_v59 = vld [vmem:[%s8579_s7 + $0x1160] sm:$0xff] }
 0x5aa   : > { %4909 = vmatprep.subr.bf16.mxu0 %v4908_v47  ;;  %v2937_v47 = vld [vmem:[%s8579_s7 + $0x1040] sm:$0xff] }
 0x5ab   : > { %v4946_v53 = vpack.c.bf16 %v2939_v35, %v2937_v47  ;;  %v2980_v47 = vld [vmem:[%s8579_s7 + $0x1198] sm:$0xff] }
 0x5ad   : > { %4911 = vmatpush1.bf16.msra.mxu0 %v4910_v42  ;;  %v4948_v42 = vpack.c.bf16 %v2944_v50, %v2942_v48  ;;  %v2977_v50 = vld [vmem:[%s8579_s7 + $0x1180] sm:$0xff] }
 0x5ae   : > { %4913 = vmatprep.subr.bf16.mxu0 %v4912_v58  ;;  %v2941_v58 = vld [vmem:[%s8579_s7 + $0x1060] sm:$0xff] }
 0x5af   : > { %v4950_v43 = vpack.c.bf16 %v2943_v61, %v2941_v58  ;;  %v2984_v58 = vld [vmem:[%s8579_s7 + $0x11b8] sm:$0xff] }
 0x5b1   : > { %4915 = vmatpush1.bf16.msra.mxu0 %v4914_v23  ;;  %v4952_v23 = vpack.c.bf16 %v2948_v63, %v2946_v62  ;;  %v2981_v63 = vld [vmem:[%s8579_s7 + $0x11a0] sm:$0xff] }
 0x5b2   : > { %4917 = vmatprep.subr.bf16.mxu0 %v4916_v0  ;;  %v2945_v0 = vld [vmem:[%s8579_s7 + $0x1080] sm:$0xff] }
 0x5b3   : > { %v4954_v4 = vpack.c.bf16 %v2947_v24, %v2945_v0  ;;  %v2988_v0 = vld [vmem:[%s8579_s7 + $0x11d8] sm:$0xff] }
 0x5b5   : > { %4919 = vmatpush1.bf16.msra.mxu0 %v4918_v5  ;;  %v4956_v5 = vpack.c.bf16 %v2952_v2, %v2950_v1  ;;  %v2985_v2 = vld [vmem:[%s8579_s7 + $0x11c0] sm:$0xff] }
 0x5b6   : > { %4921 = vmatprep.subr.bf16.mxu0 %v4920_v6  ;;  %v2949_v6 = vld [vmem:[%s8579_s7 + $0x10a0] sm:$0xff] }
 0x5b7   : > { %v4958_v17 = vpack.c.bf16 %v2951_v9, %v2949_v6  ;;  %v2992_v6 = vld [vmem:[%s8579_s7 + $0x11f8] sm:$0xff] }
 0x5b9   : > { %4923 = vmatpush1.bf16.msra.mxu0 %v4922_v18  ;;  %v4960_v18 = vpack.c.bf16 %v2956_v15, %v2954_v12  ;;  %v2989_v15 = vld [vmem:[%s8579_s7 + $0x11e0] sm:$0xff] }
 0x5ba   : > { %4925 = vmatprep.subr.bf16.mxu0 %v4924_v20  ;;  %v2953_v20 = vld [vmem:[%s8579_s7 + $0x10c0] sm:$0xff] }
 0x5bb   : > { %v4962_v22 = vpack.c.bf16 %v2955_v21, %v2953_v20  ;;  %v2410_v20 = vrot.slane %v8334_v36, %v7124_v8  ;;  %v2993_v21 = vld [vmem:[%s8580_s8] sm:$0x3] }
 0x5bd   : > { %4927 = vmatpush1.bf16.msra.mxu0 %v4926_v10  ;;  %v4964_v10 = vpack.c.bf16 %v2960_v25, %v2958_v49  ;;  %v2998_v49 = vrot.slane %v2993_v21, %v7124_v8  ;;  %v3002_v25 = vrot.slane %v2993_v21, %v7130_v16 }
 0x5be   : > { %4929 = vmatprep.subr.bf16.mxu0 %v4928_v26  ;;  %v2957_v26 = vld [vmem:[%s8579_s7 + $0x10e0] sm:$0xff] }
 0x5bf   : > { %v4966_v27 = vpack.c.bf16 %v2959_v34, %v2957_v26  ;;  %v5004_v26 = vadd.f32 %v8204_v32, %v2998_v49  ;;  %v5006_v34 = vadd.f32 %v8212_v56, %v3002_v25 }
 0x5c1   : > { %4931 = vmatpush1.bf16.msra.mxu0 %v4930_v19  ;;  %v4968_v19 = vpack.c.bf16 %v2964_v46, %v2962_v60 }
 0x5c2   : > { %4933 = vmatprep.subr.bf16.mxu0 %v4932_v57  ;;  %v2961_v57 = vld [vmem:[%s8579_s7 + $0x1100] sm:$0xff] }
 0x5c3   : > { %v4970_v30 = vpack.c.bf16 %v2963_v7, %v2961_v57 }
 0x5c5   : > { %4935 = vmatpush1.bf16.msra.mxu0 %v4934_v31  ;;  %v4972_v31 = vpack.c.bf16 %v2968_v51, %v2966_v29 }
 0x5c6   : > { %4937 = vmatprep.subr.bf16.mxu0 %v4936_v33  ;;  %v2965_v33 = vld [vmem:[%s8579_s7 + $0x1120] sm:$0xff] }
 0x5c7   : > { %v4974_v28 = vpack.c.bf16 %v2967_v38, %v2965_v33 }
 0x5c8   : > { %3567 = vmatmul.mubr.f32.vlgmr.msra.gmra.mrb[32].mxu0 %v2399_v39  ;;  %v2969_v39 = vld [vmem:[%s8579_s7 + $0x1140] sm:$0xff] }
 0x5c9   : > { %4939 = vmatpush1.bf16.msra.mxu0 %v4938_v37  ;;  %3637 = vmatprep.mubr.f32.mxu0 %v2414_v55  ;;  %v4976_v37 = vpack.c.bf16 %v2972_v3, %v2970_v54 }
 0x5ca   : > { %4941 = vmatprep.subr.bf16.mxu0 %v4940_v40  ;;  %v2971_v40 = vld [vmem:[%s8579_s7 + $0x1150] sm:$0xff] }
 0x5cb   : > { %v4978_v55 = vpack.c.bf16 %v2971_v40, %v2969_v39 }
 0x5cd   : > { %4943 = vmatpush1.bf16.msra.mxu0 %v4942_v44  ;;  %v2975_v44 = vld [vmem:[%s8579_s7 + $0x1170] sm:$0xff] }
 0x5ce   : > { %4945 = vmatprep.subr.bf16.mxu0 %v4944_v45  ;;  %v2978_v45 = vld [vmem:[%s8579_s7 + $0x1188] sm:$0xff]  ;;  %v4982_v35 = vpack.c.bf16 %v2975_v44, %v2973_v59 }
 0x5cf   : > { %v4984_v48 = vpack.c.bf16 %v2980_v47, %v2978_v45 }
 0x5d1   : > { %4947 = vmatpush1.bf16.msra.mxu0 %v4946_v53  ;;  %v2979_v53 = vld [vmem:[%s8579_s7 + $0x1190] sm:$0xff] }
 0x5d2   : > { %4949 = vmatprep.subr.bf16.mxu0 %v4948_v42  ;;  %v2982_v42 = vld [vmem:[%s8579_s7 + $0x11a8] sm:$0xff]  ;;  %v4986_v61 = vpack.c.bf16 %v2979_v53, %v2977_v50 }
 0x5d3   : > { %v4988_v62 = vpack.c.bf16 %v2984_v58, %v2982_v42 }
 0x5d5   : > { %4951 = vmatpush1.bf16.msra.mxu0 %v4950_v43  ;;  %v2983_v43 = vld [vmem:[%s8579_s7 + $0x11b0] sm:$0xff] }
 0x5d6   : > { %4953 = vmatprep.subr.bf16.mxu0 %v4952_v23  ;;  %v2986_v23 = vld [vmem:[%s8579_s7 + $0x11c8] sm:$0xff]  ;;  %v4990_v24 = vpack.c.bf16 %v2983_v43, %v2981_v63 }
 0x5d7   : > { %v4992_v1 = vpack.c.bf16 %v2988_v0, %v2986_v23 }
 0x5d9   : > { %4955 = vmatpush1.bf16.msra.mxu0 %v4954_v4  ;;  %v2987_v4 = vld [vmem:[%s8579_s7 + $0x11d0] sm:$0xff] }
 0x5da   : > { %4957 = vmatprep.subr.bf16.mxu0 %v4956_v5  ;;  %v2990_v5 = vld [vmem:[%s8579_s7 + $0x11e8] sm:$0xff]  ;;  %v4994_v9 = vpack.c.bf16 %v2987_v4, %v2985_v2 }
 0x5db   : > { %v4996_v12 = vpack.c.bf16 %v2992_v6, %v2990_v5 }
 0x5dd   : > { %4959 = vmatpush1.bf16.msra.mxu0 %v4958_v17  ;;  %v2991_v17 = vld [vmem:[%s8579_s7 + $0x11f0] sm:$0xff] }
 0x5de   : > { %4961 = vmatprep.subr.bf16.mxu0 %v4960_v18  ;;  %v4998_v18 = vpack.c.bf16 %v2991_v17, %v2989_v15 }
 0x5e1   : > { %4963 = vmatpush1.bf16.msra.mxu0 %v4962_v22  ;;  %v5191_v22 = vmov 1966171168  }
 0x5e2   : > { %4965 = vmatprep.subr.bf16.mxu0 %v4964_v10  ;;  %v3650_v10 = vunpack.c.l.s4 %v5191_v22 }
 0x5e4   : > { %v3651_v46 = vunpack.c.0.s8 %v3650_v10 }
 0x5e5   : > { %4967 = vmatpush1.bf16.msra.mxu0 %v4966_v27 }
 0x5e6   : > { %4969 = vmatprep.subr.bf16.mxu0 %v4968_v19  ;;  %v3654_v8 = vsub.s32 %v3651_v46, %v7121_v14 }
 0x5e9   : > { %4971 = vmatpush1.bf16.msra.mxu0 %v4970_v30 }
 0x5ea   : > { %4973 = vmatprep.subr.bf16.mxu0 %v4972_v31 }
 0x5ed   : > { %4975 = vmatpush1.bf16.msra.mxu0 %v4974_v28 }
 0x5ee   : > { %4977 = vmatprep.subr.bf16.mxu0 %v4976_v37 }
 0x5f1   : > { %4979 = vmatpush1.bf16.msra.mxu0 %v4978_v55 }
 0x5f2   : > { %4981 = vmatprep.subr.bf16.mxu0 %v4980_v41 }
 0x5f5   : > { %4983 = vmatpush1.bf16.msra.mxu0 %v4982_v35 }
 0x5f6   : > { %4985 = vmatprep.subr.bf16.mxu0 %v4984_v48 }
 0x5f9   : > { %4987 = vmatpush1.bf16.msra.mxu0 %v4986_v61 }
 0x5fa   : > { %4989 = vmatprep.subr.bf16.mxu0 %v4988_v62 }
 0x5fd   : > { %4991 = vmatpush1.bf16.msra.mxu0 %v4990_v24 }
 0x5fe   : > { %4993 = vmatprep.subr.bf16.mxu0 %v4992_v1 }
 0x601   : > { %4995 = vmatpush1.bf16.msra.mxu0 %v4994_v9 }
 0x602   : > { %4997 = vmatprep.subr.bf16.mxu0 %v4996_v12 }
 0x605   : > { %4999 = vmatpush1.bf16.msra.mxu0 %v4998_v18 }
 0x608   : > { %3638 = vmatmul.mubr.f32.vlgmr.msra.gmra.mrb[32].mxu0 %v2410_v20 }
 0x6db   : > { %v3639_v60 = vpop.f32.mrb[32].mxu0 }
 0x6dc   : > { %v5005_v36 = vadd.f32 %v5004_v26, %v3639_v60  ;;  %v3641_v27 = vpop.f32.mrb[33].mxu0 }
 0x6dd   : > { %v5007_v19 = vadd.f32 %v5006_v34, %v3641_v27 }
 0x6de   : > { %v3644_v57 = vmax.f32 %v5005_v36, 0.0 }
 0x6df   : > { %v3645_v7 = vmax.f32 %v5007_v19, 0.0 }
 0x6e1   : > { %v3648_v16 = vcombine.low %v3644_v57, %v3645_v7 }
 0x6e3   : > { %v3655_v29 = vrot.slane %v3648_v16, %v3654_v8 }
 0x6e5   : > { %v3662_v32 = vrot.slane %v3655_v29, %v3654_v8 }
 0x6e7   : > { %3668 = vst.msk [vmem:[%s325_s28] sm:$0x3] %vm3666_vm9, %v3662_v32 }
 0x6e8   : > { %5136 = shalt.err (!%p5133_p3)
}
 0x6e9   : > { %s5137_s25 = scalar_lea.hbm %s8530_s16, 32  ;;  %s5141_s28 = scalar_lea.hbm %s8581_s9, 64 }
 0x6ea   : > { %p5138_p4 = scmp.ne.s32.totalorder %s8530_s16, %s5137_s25  ;;  %p5142_p9 = scmp.lt.u32.totalorder %s8530_s16, %s8581_s9 }
 0x6eb   : > { %p5143_p10 = scmp.lt.u32.totalorder %s5141_s28, %s5137_s25  ;;  %p5145_p12 = scmp.lt.u32.totalorder %s5137_s25, %s8530_s16 }
 0x6ec   : > { %p5139_p7 = pnand %p5138_p4, %p5281_p5 }
 0x6ed   : > { %p5144_p11 = por %p5143_p10, %p5142_p9 }
 0x6ee   : > { %p5140_p8 = pneg %p5139_p7 }
 0x6ef   : > { %p5146_p13 = por %p5145_p12, %p5144_p11 }
 0x6f1   : > { %p5147_p0 = pnand %p5146_p13, %p5140_p8 }
 0x6f3   : > { %5150 = shalt.err (!%p5147_p0)
}
 0x6f4   : > { %5038 = dma.vmem_to_hbm [thread:$0]  (%p5281_p5), %s8532_s21, 32, %s8530_s16, %s3670_s17  }
 0x6f5 PF: > { %p5044_p1 = scmp.ge.s32.totalorder %s5185_s12, 2  ;;  %s3696_s22 = sand.u32 1, %s5173_s30  }
 0x6f6   : > { %s3697_s13 = scalar_lea.sflag [#allocation6], %s3696_s22 }
 0x6f7   : > { %p5041_p2 = pnand %p5044_p1, %p5285_p6 }
 0x6f9   : > { %5168 = dma.done.wait (!%p5041_p2), %s3697_s13, 32  }
 0x6fa   : > { %5170 = vsyncadd (!%p5041_p2), %s3697_s13, 4294967264  ;;  %p19_p3 = scmp.ge.s32.totalorder %s5268_s15, 4   ;;  %s8584_s30 = smov %s5177_s10 }
 0x6fb   : > { %s8585_s10 = smov %s5181_s11  ;;  %s8586_s11 = smov %s5279_s18 }
 0x6fc   : > { %s8587_s12 = smov %s5268_s15  ;;  %21 = sbr.rel (!%p19_p3) target bundleno = 3 (0x3), region = 163 }
 0x703   :  { %3702 = vsyncpa [#allocation6], 1 }
 0x704   :  { %3704 = vsyncpa [#allocation6 + $0x1], 1 }

</bundles_post_ra>
